<compile_context>
chip_gen: v7x
topology: tpu7x:2x2x1
jax: 0.10.0
libtpu: 0.0.40
codegen_flags: <defaults>
</compile_context>

<pallas_src>
import functools
import math

import jax
import jax.numpy as jnp
from jax.experimental import pallas as pl
from jax.experimental.pallas import tpu as pltpu


# ----------------------------------------------------------------------------
# Kernel bodies
# ----------------------------------------------------------------------------
def _encoder_kernel(src_ref, bias_ref, hmask_ref, wp_ref, bp_ref,
                    wqkv_ref, bqkv_ref, wo_ref, bo_ref,
                    ln1g_ref, ln1b_ref, w1_ref, b1_ref, w2t_ref, b2_ref,
                    ln2g_ref, ln2b_ref, o_ref, x_sc, *, nhead, H, eps):
    """One grid step == one transformer encoder layer (weights streamed per layer)."""
    BS = x_sc.shape[0]
    scale = 1.0 / math.sqrt(H // nhead)
    l = pl.program_id(0)

    # Layer 0: fuse the input projection and initialize the carried activation.
    @pl.when(l == 0)
    def _():
        x_sc[...] = (jnp.dot(src_ref[...], wp_ref[...],
                             preferred_element_type=jnp.float32) + bp_ref[...])

    def layer_norm(y, g, b):
        mu = jnp.mean(y, axis=-1, keepdims=True)
        var = jnp.mean((y - mu) ** 2, axis=-1, keepdims=True)
        return (y - mu) * jax.lax.rsqrt(var + eps) * g + b

    x = x_sc[...]                                 # [BS, H] f32, carried across layers
    hm = hmask_ref[...]                           # [nhead, H] per-head channel masks

    # --- self-attention: all heads in two MXU pushes ---
    qkv = jnp.dot(x.astype(jnp.bfloat16), wqkv_ref[...],
                  preferred_element_type=jnp.float32) + bqkv_ref[...]   # [BS, 3H]
    q = qkv[:, 0 * H:1 * H] * scale
    k = qkv[:, 1 * H:2 * H].astype(jnp.bfloat16)
    v = qkv[:, 2 * H:3 * H].astype(jnp.bfloat16)

    # Stack per-head masked queries along rows -> [nhead*BS, H]; the masked
    # contraction over H is then exactly head h's score for row block h.
    q_stack = jnp.concatenate([q * hm[h:h + 1] for h in range(nhead)],
                              axis=0).astype(jnp.bfloat16)
    s = jax.lax.dot_general(q_stack, k, (((1,), (1,)), ((), ())),
                            preferred_element_type=jnp.float32)          # [nhead*BS, BS]
    s = s + bias_ref[...]                         # block-diag batch mask (tiled per head)
    s = s - jnp.max(s, axis=-1, keepdims=True)
    p = jnp.exp(s)
    p = p / jnp.sum(p, axis=-1, keepdims=True)    # plain row softmax (per head block)
    attn_stack = jnp.dot(p.astype(jnp.bfloat16), v,
                         preferred_element_type=jnp.float32)              # [nhead*BS, H]
    # Scatter each head's rows into its own channel columns (VPU mask-adds).
    attn = jnp.zeros((BS, H), jnp.float32)
    for h in range(nhead):
        attn = attn + attn_stack[h * BS:(h + 1) * BS, :] * hm[h:h + 1]
    attn = jnp.dot(attn.astype(jnp.bfloat16), wo_ref[...],
                   preferred_element_type=jnp.float32) + bo_ref[...]
    x = layer_norm(x + attn, ln1g_ref[...], ln1b_ref[...])               # post-norm

    # --- feed-forward (w2 pre-transposed -> plain NN matmuls) ---
    ff = jnp.dot(x.astype(jnp.bfloat16), w1_ref[...],
                 preferred_element_type=jnp.float32) + b1_ref[...]
    ff = jnp.maximum(ff, 0.0)
    ff = jnp.dot(ff.astype(jnp.bfloat16), w2t_ref[...],
                 preferred_element_type=jnp.float32) + b2_ref[...]
    x = layer_norm(x + ff, ln2g_ref[...], ln2b_ref[...])

    x_sc[...] = x                                 # carry to next layer

    @pl.when(l == pl.num_programs(0) - 1)
    def _():
        o_ref[...] = x.astype(o_ref.dtype)        # single HBM writeback at the end


def _decoder_kernel(emb_ref, enc_ref, bias_ref, wie_ref, wc_ref, wh_ref, b_ref,
                    wout_ref, bout_ref, out_ref, hs_ref, *, T, B, H):
    enc = enc_ref[...]                            # [B*S, H] encoder output (VMEM resident)
    enc_t = jnp.transpose(enc)                    # [H, B*S] transposed ONCE (hoisted)
    wc = wc_ref[...]                              # [H, 4H] context -> gates
    wh = wh_ref[...]                              # [H, 4H] hidden  -> gates
    attn_bias = bias_ref[...]                     # [B, B*S] block-diag batch mask

    # Embedding contribution to the LSTM gates for ALL steps: one big MXU push.
    emb_gates = jnp.dot(emb_ref[...], wie_ref[...],
                        preferred_element_type=jnp.float32) + b_ref[...]  # [T*B, 4H]

    h = jnp.zeros((B, H), jnp.float32)
    c = jnp.zeros((B, H), jnp.float32)
    ctx = jnp.zeros((B, H), jnp.float32)

    for t in range(T):                            # recurrence: must stay sequential
        # LSTM cell -- two independent recurrent MXU pushes (no lane concat).
        gates = (emb_gates[t * B:(t + 1) * B, :]
                 + jnp.dot(ctx, wc, preferred_element_type=jnp.float32)
                 + jnp.dot(h, wh, preferred_element_type=jnp.float32))    # [B, 4H]
        i_g = jax.nn.sigmoid(gates[:, 0 * H:1 * H])
        f_g = jax.nn.sigmoid(gates[:, 1 * H:2 * H])
        g_g = jnp.tanh(gates[:, 2 * H:3 * H])
        o_g = jax.nn.sigmoid(gates[:, 3 * H:4 * H])
        c = f_g * c + i_g * g_g
        h = o_g * jnp.tanh(c)

        # Dot-product attention on the MXU (no scaling, matches the reference).
        s = jnp.dot(h, enc_t, preferred_element_type=jnp.float32) + attn_bias  # [B, B*S]
        s = s - jnp.max(s, axis=-1, keepdims=True)
        p = jnp.exp(s)
        p = p / jnp.sum(p, axis=-1, keepdims=True)
        ctx = jnp.dot(p, enc, preferred_element_type=jnp.float32)         # [B, H]

        hs_ref[t * B:(t + 1) * B, :] = h          # stash h_t in VMEM scratch

    # Output projection hoisted out of the time loop: ONE matmul + ONE store.
    out_ref[...] = (jnp.dot(hs_ref[...], wout_ref[...],
                            preferred_element_type=jnp.float32) + bout_ref[...]
                    ).astype(out_ref.dtype)


# ----------------------------------------------------------------------------
# Parameter preparation (done once): transpose / stack / cast weights, masks.
# ----------------------------------------------------------------------------
def prepare_params(params, nhead):
    H = params["input_proj_w"].shape[0]
    E = params["out_fc_w"].shape[0]
    dh = H // nhead
    head_mask = (jnp.arange(H)[None, :] // dh
                 == jnp.arange(nhead)[:, None]).astype(jnp.float32)       # [nhead, H]

    layers = params["layers"]
    bf16 = jnp.bfloat16

    def stack_w(key, transpose, dtype):
        return jnp.stack([lp[key].T if transpose else lp[key]
                          for lp in layers]).astype(dtype)

    def stack_v(key):
        return jnp.stack([lp[key].reshape(1, -1) for lp in layers])

    w_ih = params["lstm_w_ih"]                                            # [4H, E+H]
    return {
        "wp": params["input_proj_w"].T,                                   # [Din, H]
        "bp": params["input_proj_b"].reshape(1, -1),
        "head_mask": head_mask,
        "wqkv": stack_w("in_proj_w", True, bf16),                         # [L, H, 3H] bf16
        "bqkv": stack_v("in_proj_b"),                                     # [L, 1, 3H]
        "wo": stack_w("out_proj_w", True, bf16),                          # [L, H, H]  bf16
        "bo": stack_v("out_proj_b"),
        "ln1g": stack_v("ln1_g"),
        "ln1b": stack_v("ln1_b"),
        "w1": stack_w("lin1_w", True, bf16),                              # [L, H, F]  bf16
        "b1": stack_v("lin1_b"),
        "w2t": stack_w("lin2_w", True, bf16),                             # [L, F, H]  bf16 (pre-T)
        "b2": stack_v("lin2_b"),
        "ln2g": stack_v("ln2_g"),
        "ln2b": stack_v("ln2_b"),
        "embedding": params["embedding"],                                 # [V, E]
        "wie": w_ih[:, :E].T,                                             # [E, 4H]
        "wc": w_ih[:, E:].T,                                              # [H, 4H]
        "wh": params["lstm_w_hh"].T,                                      # [H, 4H]
        "b_lstm": (params["lstm_b_ih"] + params["lstm_b_hh"]).reshape(1, -1),
        "wout": params["out_fc_w"].T,                                     # [H, E]
        "bout": params["out_fc_b"].reshape(1, -1),
    }


# ----------------------------------------------------------------------------
# Forward pass: 2 pallas_calls total (encoder, decoder).
# ----------------------------------------------------------------------------
@jax.jit
def attention_transcriber_forward(prepped, src, trg):
    B, S, Din = src.shape
    H = prepped["wp"].shape[1]
    E = prepped["wout"].shape[1]
    L = prepped["wqkv"].shape[0]
    F = prepped["w1"].shape[2]
    nhead = prepped["head_mask"].shape[0]
    T = trg.shape[1]
    BS = B * S

    # ---- encoder: input_proj + all transformer layers, weights streamed per layer ----
    rows = jnp.arange(BS) // S
    enc_bias = jnp.where(rows[:, None] == rows[None, :], 0.0, -1e30).astype(jnp.float32)
    enc_bias_tiled = jnp.tile(enc_bias, (nhead, 1))                       # [nhead*BS, BS]

    grid_spec = pltpu.PrefetchScalarGridSpec(
        num_scalar_prefetch=0,
        grid=(L,),
        in_specs=[
            pl.BlockSpec((BS, Din), lambda l: (0, 0)),                    # src
            pl.BlockSpec((nhead * BS, BS), lambda l: (0, 0)),             # attn bias (tiled)
            pl.BlockSpec((nhead, H), lambda l: (0, 0)),                   # head masks
            pl.BlockSpec((Din, H), lambda l: (0, 0)),                     # wp
            pl.BlockSpec((1, H), lambda l: (0, 0)),                       # bp
            pl.BlockSpec((None, H, 3 * H), lambda l: (l, 0, 0)),          # wqkv
            pl.BlockSpec((None, 1, 3 * H), lambda l: (l, 0, 0)),          # bqkv
            pl.BlockSpec((None, H, H), lambda l: (l, 0, 0)),              # wo
            pl.BlockSpec((None, 1, H), lambda l: (l, 0, 0)),              # bo
            pl.BlockSpec((None, 1, H), lambda l: (l, 0, 0)),              # ln1g
            pl.BlockSpec((None, 1, H), lambda l: (l, 0, 0)),              # ln1b
            pl.BlockSpec((None, H, F), lambda l: (l, 0, 0)),              # w1
            pl.BlockSpec((None, 1, F), lambda l: (l, 0, 0)),              # b1
            pl.BlockSpec((None, F, H), lambda l: (l, 0, 0)),              # w2t
            pl.BlockSpec((None, 1, H), lambda l: (l, 0, 0)),              # b2
            pl.BlockSpec((None, 1, H), lambda l: (l, 0, 0)),              # ln2g
            pl.BlockSpec((None, 1, H), lambda l: (l, 0, 0)),              # ln2b
        ],
        out_specs=pl.BlockSpec((BS, H), lambda l: (0, 0)),
        scratch_shapes=[pltpu.VMEM((BS, H), jnp.float32)],                # carried x
    )
    enc_weight_bytes = sum(
        int(prepped[k].size) * prepped[k].dtype.itemsize
        for k in ("wqkv", "bqkv", "wo", "bo", "ln1g", "ln1b",
                  "w1", "b1", "w2t", "b2", "ln2g", "ln2b", "wp", "bp"))
    enc_cost = pl.CostEstimate(
        flops=int(2 * BS * Din * H
                  + L * (2 * BS * H * 3 * H + 4 * nhead * BS * BS * H
                         + 2 * BS * H * H + 4 * BS * H * F)),
        transcendentals=int(L * nhead * BS * BS),
        bytes_accessed=int(enc_weight_bytes
                           + (BS * Din + BS * H + nhead * BS * BS + nhead * H) * 4),
    )
    enc2 = pl.pallas_call(
        functools.partial(_encoder_kernel, nhead=nhead, H=H, eps=1e-5),
        out_shape=jax.ShapeDtypeStruct((BS, H), jnp.float32),
        grid_spec=grid_spec,
        compiler_params=pltpu.CompilerParams(
            dimension_semantics=("arbitrary",),
            vmem_limit_bytes=32 * 1024 * 1024),
        cost_estimate=enc_cost,
    )(src.reshape(BS, Din), enc_bias_tiled, prepped["head_mask"],
      prepped["wp"], prepped["bp"],
      prepped["wqkv"], prepped["bqkv"], prepped["wo"], prepped["bo"],
      prepped["ln1g"], prepped["ln1b"], prepped["w1"], prepped["b1"],
      prepped["w2t"], prepped["b2"], prepped["ln2g"], prepped["ln2b"])

    # ---- decoder: teacher-forced LSTM + attention, one fused kernel ----
    # TODO(synk): embedding gather stays in plain JAX (no clean tiled Pallas gather here);
    # it is independent of the encoder so XLA can overlap it with the encoder kernel.
    emb = jnp.take(prepped["embedding"], trg, axis=0)                     # [B, T, E]
    emb_flat = jnp.transpose(emb, (1, 0, 2)).reshape(T * B, E)            # row = t*B + b
    dec_bias = jnp.where(jnp.arange(B)[:, None] == rows[None, :],
                         0.0, -1e30).astype(jnp.float32)                  # [B, B*S]
    dec_cost = pl.CostEstimate(
        flops=int(2 * T * B * E * 4 * H + T * (4 * B * H * 4 * H + 4 * B * BS * H)
                  + 2 * T * B * H * E),
        transcendentals=int(T * (4 * B * H + B * BS)),
        bytes_accessed=int((T * B * E + BS * H + B * BS + E * 4 * H
                            + 2 * H * 4 * H + 4 * H + H * E + E + T * B * E) * 4),
    )
    out_flat = pl.pallas_call(
        functools.partial(_decoder_kernel, T=T, B=B, H=H),
        out_shape=jax.ShapeDtypeStruct((T * B, E), jnp.float32),
        scratch_shapes=[pltpu.VMEM((T * B, H), jnp.float32)],             # stacked h_t
        cost_estimate=dec_cost,
    )(emb_flat, enc2, dec_bias,
      prepped["wie"], prepped["wc"], prepped["wh"], prepped["b_lstm"],
      prepped["wout"], prepped["bout"])
    return out_flat.reshape(T, B, E).transpose(1, 0, 2)                   # [B, T, E]


# ----------------------------------------------------------------------------
# Deterministic parameter init (shapes match the PyTorch module __init__)
# ----------------------------------------------------------------------------
def init_params(key, input_size, output_size, hidden_dim, num_encoder_layers, ff_dim):
    keys = iter(jax.random.split(key, 64))

    def w(shape, scale=0.1):
        return jax.random.normal(next(keys), shape, jnp.float32) * scale

    params = {
        "input_proj_w": w((hidden_dim, input_size)),
        "input_proj_b": w((hidden_dim,)),
        "embedding": w((output_size, output_size)),
        "lstm_w_ih": w((4 * hidden_dim, output_size + hidden_dim)),
        "lstm_w_hh": w((4 * hidden_dim, hidden_dim)),
        "lstm_b_ih": w((4 * hidden_dim,)),
        "lstm_b_hh": w((4 * hidden_dim,)),
        "out_fc_w": w((output_size, hidden_dim)),
        "out_fc_b": w((output_size,)),
        "layers": [],
    }
    for _ in range(num_encoder_layers):
        params["layers"].append({
            "in_proj_w": w((3 * hidden_dim, hidden_dim)),
            "in_proj_b": w((3 * hidden_dim,)),
            "out_proj_w": w((hidden_dim, hidden_dim)),
            "out_proj_b": w((hidden_dim,)),
            "lin1_w": w((ff_dim, hidden_dim)),
            "lin1_b": w((ff_dim,)),
            "lin2_w": w((hidden_dim, ff_dim)),
            "lin2_b": w((hidden_dim,)),
            "ln1_g": jnp.ones((hidden_dim,), jnp.float32),
            "ln1_b": jnp.zeros((hidden_dim,), jnp.float32),
            "ln2_g": jnp.ones((hidden_dim,), jnp.float32),
            "ln2_b": jnp.zeros((hidden_dim,), jnp.float32),
        })
    return params


# ----------------------------------------------------------------------------
if __name__ == "__main__":
    B, S_SRC, T_TRG = 2, 16, 8
    INPUT_SIZE, OUTPUT_SIZE, HIDDEN_DIM, NHEAD = 8, 16, 32, 8
    NUM_ENC_LAYERS = 2
    FF_DIM = 2048  # nn.TransformerEncoderLayer default dim_feedforward

    key = jax.random.PRNGKey(0)
    kp, ks, kt = jax.random.split(key, 3)
    params = init_params(kp, INPUT_SIZE, OUTPUT_SIZE, HIDDEN_DIM, NUM_ENC_LAYERS, FF_DIM)
    prepped = prepare_params(params, NHEAD)

    src = jax.random.normal(ks, (B, S_SRC, INPUT_SIZE), jnp.float32)
    trg = jax.random.randint(kt, (B, T_TRG), 0, OUTPUT_SIZE, jnp.int32)

    out = attention_transcriber_forward(prepped, src, trg)
    out = jax.block_until_ready(out)

    assert out.shape == (B, T_TRG, OUTPUT_SIZE), out.shape
    assert bool(jnp.all(jnp.isfinite(out)))
    print("KERNEL_OK")
</pallas_src>

<mosaic_0001>
module attributes {stable_mosaic.version = 11 : i64} {
  func.func @_encoder_kernel(%arg0: i32, %arg1: memref<32x8xf32, #tpu.memory_space<vmem>>, %arg2: memref<256x32xf32, #tpu.memory_space<vmem>>, %arg3: memref<8x32xf32, #tpu.memory_space<vmem>>, %arg4: memref<8x32xf32, #tpu.memory_space<vmem>>, %arg5: memref<1x32xf32, #tpu.memory_space<vmem>>, %arg6: memref<1x32x96xbf16, #tpu.memory_space<vmem>>, %arg7: memref<1x1x96xf32, #tpu.memory_space<vmem>>, %arg8: memref<1x32x32xbf16, #tpu.memory_space<vmem>>, %arg9: memref<1x1x32xf32, #tpu.memory_space<vmem>>, %arg10: memref<1x1x32xf32, #tpu.memory_space<vmem>>, %arg11: memref<1x1x32xf32, #tpu.memory_space<vmem>>, %arg12: memref<1x32x2048xbf16, #tpu.memory_space<vmem>>, %arg13: memref<1x1x2048xf32, #tpu.memory_space<vmem>>, %arg14: memref<1x2048x32xbf16, #tpu.memory_space<vmem>>, %arg15: memref<1x1x32xf32, #tpu.memory_space<vmem>>, %arg16: memref<1x1x32xf32, #tpu.memory_space<vmem>>, %arg17: memref<1x1x32xf32, #tpu.memory_space<vmem>>, %arg18: memref<32x32xf32, #tpu.memory_space<vmem>>, %arg19: memref<32x32xf32, #tpu.memory_space<vmem>>) attributes {dimension_semantics = [#tpu.dimension_semantics<arbitrary>], iteration_bounds = array<i64: 2>, scalar_prefetch = 0 : i64, scratch_operands = 1 : i64, tpu.core_type = #tpu.core_type<tc>, window_params = [{pipeline_mode = #tpu.pipeline_mode<synchronous>, transform_indices = @transform_0, window_bounds = array<i64: 32, 8>}, {pipeline_mode = #tpu.pipeline_mode<synchronous>, transform_indices = @transform_1, window_bounds = array<i64: 256, 32>}, {pipeline_mode = #tpu.pipeline_mode<synchronous>, transform_indices = @transform_2, window_bounds = array<i64: 8, 32>}, {pipeline_mode = #tpu.pipeline_mode<synchronous>, transform_indices = @transform_3, window_bounds = array<i64: 8, 32>}, {pipeline_mode = #tpu.pipeline_mode<synchronous>, transform_indices = @transform_4, window_bounds = array<i64: 1, 32>}, {transform_indices = @transform_5, window_bounds = array<i64: 1, 32, 96>}, {transform_indices = @transform_6, window_bounds = array<i64: 1, 1, 96>}, {transform_indices = @transform_7, window_bounds = array<i64: 1, 32, 32>}, {transform_indices = @transform_8, window_bounds = array<i64: 1, 1, 32>}, {transform_indices = @transform_9, window_bounds = array<i64: 1, 1, 32>}, {transform_indices = @transform_10, window_bounds = array<i64: 1, 1, 32>}, {transform_indices = @transform_11, window_bounds = array<i64: 1, 32, 2048>}, {transform_indices = @transform_12, window_bounds = array<i64: 1, 1, 2048>}, {transform_indices = @transform_13, window_bounds = array<i64: 1, 2048, 32>}, {transform_indices = @transform_14, window_bounds = array<i64: 1, 1, 32>}, {transform_indices = @transform_15, window_bounds = array<i64: 1, 1, 32>}, {transform_indices = @transform_16, window_bounds = array<i64: 1, 1, 32>}, {pipeline_mode = #tpu.pipeline_mode<synchronous>, transform_indices = @transform_17, window_bounds = array<i64: 32, 32>}]} {
    %c0_i32 = arith.constant 0 : i32
    %0 = arith.cmpi eq, %arg0, %c0_i32 : i32
    %1 = arith.extui %0 : i1 to i32
    %c0_i32_0 = arith.constant 0 : i32
    %2 = arith.cmpi ne, %1, %c0_i32_0 : i32
    scf.if %2 {
      %c0_65 = arith.constant 0 : index
      %c0_66 = arith.constant 0 : index
      %185 = vector.load %arg1[%c0_65, %c0_66] : memref<32x8xf32, #tpu.memory_space<vmem>>, vector<32x8xf32>
      %c0_67 = arith.constant 0 : index
      %c0_68 = arith.constant 0 : index
      %186 = vector.load %arg4[%c0_67, %c0_68] : memref<8x32xf32, #tpu.memory_space<vmem>>, vector<8x32xf32>
      %cst_69 = arith.constant dense<0.000000e+00> : vector<32x32xf32>
      %187 = tpu.matmul %185, %186, %cst_69 {dimension_numbers = #tpu.dot_dimension_numbers<[1], [0], [0], [1], [0, 0, 1, 1], [], []>} : vector<32x8xf32>, vector<8x32xf32>, vector<32x32xf32> -> vector<32x32xf32>
      %c0_70 = arith.constant 0 : index
      %c0_71 = arith.constant 0 : index
      %188 = vector.load %arg5[%c0_70, %c0_71] : memref<1x32xf32, #tpu.memory_space<vmem>>, vector<1x32xf32>
      %189 = vector.broadcast %188 : vector<1x32xf32> to vector<32x32xf32>
      %190 = arith.addf %187, %189 : vector<32x32xf32>
      %c0_72 = arith.constant 0 : index
      %c0_73 = arith.constant 0 : index
      %191 = vector.load %arg19[%c0_72, %c0_73] : memref<32x32xf32, #tpu.memory_space<vmem>>, vector<32x32xf32>
      tpu.vector_store %arg19[%c0_72, %c0_73], %190 {strides = array<i32>} : memref<32x32xf32, #tpu.memory_space<vmem>>, vector<32x32xf32>,
    } else {
    }
    %c0 = arith.constant 0 : index
    %c0_1 = arith.constant 0 : index
    %3 = vector.load %arg19[%c0, %c0_1] : memref<32x32xf32, #tpu.memory_space<vmem>>, vector<32x32xf32>
    %c0_2 = arith.constant 0 : index
    %c0_3 = arith.constant 0 : index
    %4 = vector.load %arg3[%c0_2, %c0_3] : memref<8x32xf32, #tpu.memory_space<vmem>>, vector<8x32xf32>
    %5 = arith.truncf %3 : vector<32x32xf32> to vector<32x32xbf16>
    %c0_4 = arith.constant 0 : index
    %c0_5 = arith.constant 0 : index
    %c0_6 = arith.constant 0 : index
    %6 = vector.load %arg6[%c0_4, %c0_5, %c0_6] : memref<1x32x96xbf16, #tpu.memory_space<vmem>>, vector<1x32x96xbf16>
    %7 = vector.shape_cast %6 : vector<1x32x96xbf16> to vector<32x96xbf16>
    %cst = arith.constant dense<0.000000e+00> : vector<32x96xf32>
    %8 = tpu.matmul %5, %7, %cst {dimension_numbers = #tpu.dot_dimension_numbers<[1], [0], [0], [1], [0, 0, 1, 1], [], []>} : vector<32x32xbf16>, vector<32x96xbf16>, vector<32x96xf32> -> vector<32x96xf32>
    %c0_7 = arith.constant 0 : index
    %c0_8 = arith.constant 0 : index
    %c0_9 = arith.constant 0 : index
    %9 = vector.load %arg7[%c0_7, %c0_8, %c0_9] : memref<1x1x96xf32, #tpu.memory_space<vmem>>, vector<1x1x96xf32>
    %10 = vector.shape_cast %9 : vector<1x1x96xf32> to vector<1x96xf32>
    %11 = vector.broadcast %10 : vector<1x96xf32> to vector<32x96xf32>
    %12 = arith.addf %8, %11 : vector<32x96xf32>
    %13 = vector.extract_strided_slice %12 {offsets = [0, 0], sizes = [32, 32], strides = [1, 1]} : vector<32x96xf32> to vector<32x32xf32>
    %cst_10 = arith.constant 5.000000e-01 : f32
    %14 = vector.broadcast %cst_10 : f32 to vector<32x32xf32>
    %15 = arith.mulf %13, %14 : vector<32x32xf32>
    %16 = vector.extract_strided_slice %12 {offsets = [0, 32], sizes = [32, 32], strides = [1, 1]} : vector<32x96xf32> to vector<32x32xf32>
    %17 = arith.truncf %16 : vector<32x32xf32> to vector<32x32xbf16>
    %18 = vector.extract_strided_slice %12 {offsets = [0, 64], sizes = [32, 32], strides = [1, 1]} : vector<32x96xf32> to vector<32x32xf32>
    %19 = arith.truncf %18 : vector<32x32xf32> to vector<32x32xbf16>
    %20 = vector.extract_strided_slice %4 {offsets = [0, 0], sizes = [1, 32], strides = [1, 1]} : vector<8x32xf32> to vector<1x32xf32>
    %21 = vector.broadcast %20 : vector<1x32xf32> to vector<32x32xf32>
    %22 = arith.mulf %15, %21 : vector<32x32xf32>
    %23 = vector.extract_strided_slice %4 {offsets = [1, 0], sizes = [1, 32], strides = [1, 1]} : vector<8x32xf32> to vector<1x32xf32>
    %24 = vector.broadcast %23 : vector<1x32xf32> to vector<32x32xf32>
    %25 = arith.mulf %15, %24 : vector<32x32xf32>
    %26 = vector.extract_strided_slice %4 {offsets = [2, 0], sizes = [1, 32], strides = [1, 1]} : vector<8x32xf32> to vector<1x32xf32>
    %27 = vector.broadcast %26 : vector<1x32xf32> to vector<32x32xf32>
    %28 = arith.mulf %15, %27 : vector<32x32xf32>
    %29 = vector.extract_strided_slice %4 {offsets = [3, 0], sizes = [1, 32], strides = [1, 1]} : vector<8x32xf32> to vector<1x32xf32>
    %30 = vector.broadcast %29 : vector<1x32xf32> to vector<32x32xf32>
    %31 = arith.mulf %15, %30 : vector<32x32xf32>
    %32 = vector.extract_strided_slice %4 {offsets = [4, 0], sizes = [1, 32], strides = [1, 1]} : vector<8x32xf32> to vector<1x32xf32>
    %33 = vector.broadcast %32 : vector<1x32xf32> to vector<32x32xf32>
    %34 = arith.mulf %15, %33 : vector<32x32xf32>
    %35 = vector.extract_strided_slice %4 {offsets = [5, 0], sizes = [1, 32], strides = [1, 1]} : vector<8x32xf32> to vector<1x32xf32>
    %36 = vector.broadcast %35 : vector<1x32xf32> to vector<32x32xf32>
    %37 = arith.mulf %15, %36 : vector<32x32xf32>
    %38 = vector.extract_strided_slice %4 {offsets = [6, 0], sizes = [1, 32], strides = [1, 1]} : vector<8x32xf32> to vector<1x32xf32>
    %39 = vector.broadcast %38 : vector<1x32xf32> to vector<32x32xf32>
    %40 = arith.mulf %15, %39 : vector<32x32xf32>
    %41 = vector.extract_strided_slice %4 {offsets = [7, 0], sizes = [1, 32], strides = [1, 1]} : vector<8x32xf32> to vector<1x32xf32>
    %42 = vector.broadcast %41 : vector<1x32xf32> to vector<32x32xf32>
    %43 = arith.mulf %15, %42 : vector<32x32xf32>
    %44 = tpu.concatenate %22, %25, %28, %31, %34, %37, %40, %43 in 0 : vector<32x32xf32>, vector<32x32xf32>, vector<32x32xf32>, vector<32x32xf32>, vector<32x32xf32>, vector<32x32xf32>, vector<32x32xf32>, vector<32x32xf32> -> vector<256x32xf32>
    %45 = arith.truncf %44 : vector<256x32xf32> to vector<256x32xbf16>
    %cst_11 = arith.constant dense<0.000000e+00> : vector<256x32xf32>
    %46 = tpu.matmul %45, %17, %cst_11 {dimension_numbers = #tpu.dot_dimension_numbers<[1], [1], [0], [0], [0, 0, 1, 0], [], []>} : vector<256x32xbf16>, vector<32x32xbf16>, vector<256x32xf32> -> vector<256x32xf32>
    %c0_12 = arith.constant 0 : index
    %c0_13 = arith.constant 0 : index
    %47 = vector.load %arg2[%c0_12, %c0_13] : memref<256x32xf32, #tpu.memory_space<vmem>>, vector<256x32xf32>
    %48 = arith.addf %46, %47 : vector<256x32xf32>
    %cst_14 = arith.constant dense<0xFF800000> : vector<256xf32>
    %49 = vector.multi_reduction <maximumf>, %48, %cst_14 [1] : vector<256x32xf32> to vector<256xf32>
    %50 = vector.shape_cast %49 : vector<256xf32> to vector<256x1xf32>
    %51 = vector.broadcast %50 : vector<256x1xf32> to vector<256x32xf32>
    %52 = arith.subf %48, %51 : vector<256x32xf32>
    %53 = math.exp %52 : vector<256x32xf32>
    %cst_15 = arith.constant dense<0.000000e+00> : vector<256xf32>
    %54 = vector.multi_reduction <add>, %53, %cst_15 [1] : vector<256x32xf32> to vector<256xf32>
    %55 = vector.shape_cast %54 : vector<256xf32> to vector<256x1xf32>
    %56 = vector.broadcast %55 : vector<256x1xf32> to vector<256x32xf32>
    %57 = arith.divf %53, %56 : vector<256x32xf32>
    %58 = arith.truncf %57 : vector<256x32xf32> to vector<256x32xbf16>
    %cst_16 = arith.constant dense<0.000000e+00> : vector<256x32xf32>
    %59 = tpu.matmul %58, %19, %cst_16 {dimension_numbers = #tpu.dot_dimension_numbers<[1], [0], [0], [1], [0, 0, 1, 1], [], []>} : vector<256x32xbf16>, vector<32x32xbf16>, vector<256x32xf32> -> vector<256x32xf32>
    %cst_17 = arith.constant 0.000000e+00 : f32
    %60 = vector.broadcast %cst_17 : f32 to vector<32x32xf32>
    %61 = vector.extract_strided_slice %59 {offsets = [0, 0], sizes = [32, 32], strides = [1, 1]} : vector<256x32xf32> to vector<32x32xf32>
    %62 = vector.extract_strided_slice %4 {offsets = [0, 0], sizes = [1, 32], strides = [1, 1]} : vector<8x32xf32> to vector<1x32xf32>
    %63 = vector.broadcast %62 : vector<1x32xf32> to vector<32x32xf32>
    %64 = arith.mulf %61, %63 : vector<32x32xf32>
    %65 = arith.addf %60, %64 : vector<32x32xf32>
    %66 = vector.extract_strided_slice %59 {offsets = [32, 0], sizes = [32, 32], strides = [1, 1]} : vector<256x32xf32> to vector<32x32xf32>
    %67 = vector.extract_strided_slice %4 {offsets = [1, 0], sizes = [1, 32], strides = [1, 1]} : vector<8x32xf32> to vector<1x32xf32>
    %68 = vector.broadcast %67 : vector<1x32xf32> to vector<32x32xf32>
    %69 = arith.mulf %66, %68 : vector<32x32xf32>
    %70 = arith.addf %65, %69 : vector<32x32xf32>
    %71 = vector.extract_strided_slice %59 {offsets = [64, 0], sizes = [32, 32], strides = [1, 1]} : vector<256x32xf32> to vector<32x32xf32>
    %72 = vector.extract_strided_slice %4 {offsets = [2, 0], sizes = [1, 32], strides = [1, 1]} : vector<8x32xf32> to vector<1x32xf32>
    %73 = vector.broadcast %72 : vector<1x32xf32> to vector<32x32xf32>
    %74 = arith.mulf %71, %73 : vector<32x32xf32>
    %75 = arith.addf %70, %74 : vector<32x32xf32>
    %76 = vector.extract_strided_slice %59 {offsets = [96, 0], sizes = [32, 32], strides = [1, 1]} : vector<256x32xf32> to vector<32x32xf32>
    %77 = vector.extract_strided_slice %4 {offsets = [3, 0], sizes = [1, 32], strides = [1, 1]} : vector<8x32xf32> to vector<1x32xf32>
    %78 = vector.broadcast %77 : vector<1x32xf32> to vector<32x32xf32>
    %79 = arith.mulf %76, %78 : vector<32x32xf32>
    %80 = arith.addf %75, %79 : vector<32x32xf32>
    %81 = vector.extract_strided_slice %59 {offsets = [128, 0], sizes = [32, 32], strides = [1, 1]} : vector<256x32xf32> to vector<32x32xf32>
    %82 = vector.extract_strided_slice %4 {offsets = [4, 0], sizes = [1, 32], strides = [1, 1]} : vector<8x32xf32> to vector<1x32xf32>
    %83 = vector.broadcast %82 : vector<1x32xf32> to vector<32x32xf32>
    %84 = arith.mulf %81, %83 : vector<32x32xf32>
    %85 = arith.addf %80, %84 : vector<32x32xf32>
    %86 = vector.extract_strided_slice %59 {offsets = [160, 0], sizes = [32, 32], strides = [1, 1]} : vector<256x32xf32> to vector<32x32xf32>
    %87 = vector.extract_strided_slice %4 {offsets = [5, 0], sizes = [1, 32], strides = [1, 1]} : vector<8x32xf32> to vector<1x32xf32>
    %88 = vector.broadcast %87 : vector<1x32xf32> to vector<32x32xf32>
    %89 = arith.mulf %86, %88 : vector<32x32xf32>
    %90 = arith.addf %85, %89 : vector<32x32xf32>
    %91 = vector.extract_strided_slice %59 {offsets = [192, 0], sizes = [32, 32], strides = [1, 1]} : vector<256x32xf32> to vector<32x32xf32>
    %92 = vector.extract_strided_slice %4 {offsets = [6, 0], sizes = [1, 32], strides = [1, 1]} : vector<8x32xf32> to vector<1x32xf32>
    %93 = vector.broadcast %92 : vector<1x32xf32> to vector<32x32xf32>
    %94 = arith.mulf %91, %93 : vector<32x32xf32>
    %95 = arith.addf %90, %94 : vector<32x32xf32>
    %96 = vector.extract_strided_slice %59 {offsets = [224, 0], sizes = [32, 32], strides = [1, 1]} : vector<256x32xf32> to vector<32x32xf32>
    %97 = vector.extract_strided_slice %4 {offsets = [7, 0], sizes = [1, 32], strides = [1, 1]} : vector<8x32xf32> to vector<1x32xf32>
    %98 = vector.broadcast %97 : vector<1x32xf32> to vector<32x32xf32>
    %99 = arith.mulf %96, %98 : vector<32x32xf32>
    %100 = arith.addf %95, %99 : vector<32x32xf32>
    %101 = arith.truncf %100 : vector<32x32xf32> to vector<32x32xbf16>
    %c0_18 = arith.constant 0 : index
    %c0_19 = arith.constant 0 : index
    %c0_20 = arith.constant 0 : index
    %102 = vector.load %arg8[%c0_18, %c0_19, %c0_20] : memref<1x32x32xbf16, #tpu.memory_space<vmem>>, vector<1x32x32xbf16>
    %103 = vector.shape_cast %102 : vector<1x32x32xbf16> to vector<32x32xbf16>
    %cst_21 = arith.constant dense<0.000000e+00> : vector<32x32xf32>
    %104 = tpu.matmul %101, %103, %cst_21 {dimension_numbers = #tpu.dot_dimension_numbers<[1], [0], [0], [1], [0, 0, 1, 1], [], []>} : vector<32x32xbf16>, vector<32x32xbf16>, vector<32x32xf32> -> vector<32x32xf32>
    %c0_22 = arith.constant 0 : index
    %c0_23 = arith.constant 0 : index
    %c0_24 = arith.constant 0 : index
    %105 = vector.load %arg9[%c0_22, %c0_23, %c0_24] : memref<1x1x32xf32, #tpu.memory_space<vmem>>, vector<1x1x32xf32>
    %106 = vector.shape_cast %105 : vector<1x1x32xf32> to vector<1x32xf32>
    %107 = vector.broadcast %106 : vector<1x32xf32> to vector<32x32xf32>
    %108 = arith.addf %104, %107 : vector<32x32xf32>
    %109 = arith.addf %3, %108 : vector<32x32xf32>
    %c0_25 = arith.constant 0 : index
    %c0_26 = arith.constant 0 : index
    %c0_27 = arith.constant 0 : index
    %110 = vector.load %arg10[%c0_25, %c0_26, %c0_27] : memref<1x1x32xf32, #tpu.memory_space<vmem>>, vector<1x1x32xf32>
    %111 = vector.shape_cast %110 : vector<1x1x32xf32> to vector<1x32xf32>
    %c0_28 = arith.constant 0 : index
    %c0_29 = arith.constant 0 : index
    %c0_30 = arith.constant 0 : index
    %112 = vector.load %arg11[%c0_28, %c0_29, %c0_30] : memref<1x1x32xf32, #tpu.memory_space<vmem>>, vector<1x1x32xf32>
    %113 = vector.shape_cast %112 : vector<1x1x32xf32> to vector<1x32xf32>
    %cst_31 = arith.constant dense<0.000000e+00> : vector<32xf32>
    %114 = vector.multi_reduction <add>, %109, %cst_31 [1] : vector<32x32xf32> to vector<32xf32>
    %115 = vector.shape_cast %114 : vector<32xf32> to vector<32x1xf32>
    %cst_32 = arith.constant 3.200000e+01 : f32
    %116 = vector.broadcast %cst_32 : f32 to vector<32x1xf32>
    %117 = arith.divf %115, %116 : vector<32x1xf32>
    %118 = vector.broadcast %117 : vector<32x1xf32> to vector<32x32xf32>
    %119 = arith.subf %109, %118 : vector<32x32xf32>
    %120 = arith.mulf %119, %119 : vector<32x32xf32>
    %cst_33 = arith.constant dense<0.000000e+00> : vector<32xf32>
    %121 = vector.multi_reduction <add>, %120, %cst_33 [1] : vector<32x32xf32> to vector<32xf32>
    %122 = vector.shape_cast %121 : vector<32xf32> to vector<32x1xf32>
    %cst_34 = arith.constant 3.200000e+01 : f32
    %123 = vector.broadcast %cst_34 : f32 to vector<32x1xf32>
    %124 = arith.divf %122, %123 : vector<32x1xf32>
    %125 = vector.broadcast %117 : vector<32x1xf32> to vector<32x32xf32>
    %126 = arith.subf %109, %125 : vector<32x32xf32>
    %cst_35 = arith.constant 9.99999974E-6 : f32
    %127 = vector.broadcast %cst_35 : f32 to vector<32x1xf32>
    %128 = arith.addf %124, %127 : vector<32x1xf32>
    %129 = math.rsqrt %128 : vector<32x1xf32>
    %130 = vector.broadcast %129 : vector<32x1xf32> to vector<32x32xf32>
    %131 = arith.mulf %126, %130 : vector<32x32xf32>
    %132 = vector.broadcast %111 : vector<1x32xf32> to vector<32x32xf32>
    %133 = arith.mulf %131, %132 : vector<32x32xf32>
    %134 = vector.broadcast %113 : vector<1x32xf32> to vector<32x32xf32>
    %135 = arith.addf %133, %134 : vector<32x32xf32>
    %136 = arith.truncf %135 : vector<32x32xf32> to vector<32x32xbf16>
    %c0_36 = arith.constant 0 : index
    %c0_37 = arith.constant 0 : index
    %c0_38 = arith.constant 0 : index
    %137 = vector.load %arg12[%c0_36, %c0_37, %c0_38] : memref<1x32x2048xbf16, #tpu.memory_space<vmem>>, vector<1x32x2048xbf16>
    %138 = vector.shape_cast %137 : vector<1x32x2048xbf16> to vector<32x2048xbf16>
    %cst_39 = arith.constant dense<0.000000e+00> : vector<32x2048xf32>
    %139 = tpu.matmul %136, %138, %cst_39 {dimension_numbers = #tpu.dot_dimension_numbers<[1], [0], [0], [1], [0, 0, 1, 1], [], []>} : vector<32x32xbf16>, vector<32x2048xbf16>, vector<32x2048xf32> -> vector<32x2048xf32>
    %c0_40 = arith.constant 0 : index
    %c0_41 = arith.constant 0 : index
    %c0_42 = arith.constant 0 : index
    %140 = vector.load %arg13[%c0_40, %c0_41, %c0_42] : memref<1x1x2048xf32, #tpu.memory_space<vmem>>, vector<1x1x2048xf32>
    %141 = vector.shape_cast %140 : vector<1x1x2048xf32> to vector<1x2048xf32>
    %142 = vector.broadcast %141 : vector<1x2048xf32> to vector<32x2048xf32>
    %143 = arith.addf %139, %142 : vector<32x2048xf32>
    %cst_43 = arith.constant 0.000000e+00 : f32
    %144 = vector.broadcast %cst_43 : f32 to vector<32x2048xf32>
    %145 = arith.maximumf %143, %144 : vector<32x2048xf32>
    %146 = arith.truncf %145 : vector<32x2048xf32> to vector<32x2048xbf16>
    %c0_44 = arith.constant 0 : index
    %c0_45 = arith.constant 0 : index
    %c0_46 = arith.constant 0 : index
    %147 = vector.load %arg14[%c0_44, %c0_45, %c0_46] : memref<1x2048x32xbf16, #tpu.memory_space<vmem>>, vector<1x2048x32xbf16>
    %148 = vector.shape_cast %147 : vector<1x2048x32xbf16> to vector<2048x32xbf16>
    %cst_47 = arith.constant dense<0.000000e+00> : vector<32x32xf32>
    %149 = tpu.matmul %146, %148, %cst_47 {dimension_numbers = #tpu.dot_dimension_numbers<[1], [0], [0], [1], [0, 0, 1, 1], [], []>} : vector<32x2048xbf16>, vector<2048x32xbf16>, vector<32x32xf32> -> vector<32x32xf32>
    %c0_48 = arith.constant 0 : index
    %c0_49 = arith.constant 0 : index
    %c0_50 = arith.constant 0 : index
    %150 = vector.load %arg15[%c0_48, %c0_49, %c0_50] : memref<1x1x32xf32, #tpu.memory_space<vmem>>, vector<1x1x32xf32>
    %151 = vector.shape_cast %150 : vector<1x1x32xf32> to vector<1x32xf32>
    %152 = vector.broadcast %151 : vector<1x32xf32> to vector<32x32xf32>
    %153 = arith.addf %149, %152 : vector<32x32xf32>
    %154 = arith.addf %135, %153 : vector<32x32xf32>
    %c0_51 = arith.constant 0 : index
    %c0_52 = arith.constant 0 : index
    %c0_53 = arith.constant 0 : index
    %155 = vector.load %arg16[%c0_51, %c0_52, %c0_53] : memref<1x1x32xf32, #tpu.memory_space<vmem>>, vector<1x1x32xf32>
    %156 = vector.shape_cast %155 : vector<1x1x32xf32> to vector<1x32xf32>
    %c0_54 = arith.constant 0 : index
    %c0_55 = arith.constant 0 : index
    %c0_56 = arith.constant 0 : index
    %157 = vector.load %arg17[%c0_54, %c0_55, %c0_56] : memref<1x1x32xf32, #tpu.memory_space<vmem>>, vector<1x1x32xf32>
    %158 = vector.shape_cast %157 : vector<1x1x32xf32> to vector<1x32xf32>
    %cst_57 = arith.constant dense<0.000000e+00> : vector<32xf32>
    %159 = vector.multi_reduction <add>, %154, %cst_57 [1] : vector<32x32xf32> to vector<32xf32>
    %160 = vector.shape_cast %159 : vector<32xf32> to vector<32x1xf32>
    %cst_58 = arith.constant 3.200000e+01 : f32
    %161 = vector.broadcast %cst_58 : f32 to vector<32x1xf32>
    %162 = arith.divf %160, %161 : vector<32x1xf32>
    %163 = vector.broadcast %162 : vector<32x1xf32> to vector<32x32xf32>
    %164 = arith.subf %154, %163 : vector<32x32xf32>
    %165 = arith.mulf %164, %164 : vector<32x32xf32>
    %cst_59 = arith.constant dense<0.000000e+00> : vector<32xf32>
    %166 = vector.multi_reduction <add>, %165, %cst_59 [1] : vector<32x32xf32> to vector<32xf32>
    %167 = vector.shape_cast %166 : vector<32xf32> to vector<32x1xf32>
    %cst_60 = arith.constant 3.200000e+01 : f32
    %168 = vector.broadcast %cst_60 : f32 to vector<32x1xf32>
    %169 = arith.divf %167, %168 : vector<32x1xf32>
    %170 = vector.broadcast %162 : vector<32x1xf32> to vector<32x32xf32>
    %171 = arith.subf %154, %170 : vector<32x32xf32>
    %cst_61 = arith.constant 9.99999974E-6 : f32
    %172 = vector.broadcast %cst_61 : f32 to vector<32x1xf32>
    %173 = arith.addf %169, %172 : vector<32x1xf32>
    %174 = math.rsqrt %173 : vector<32x1xf32>
    %175 = vector.broadcast %174 : vector<32x1xf32> to vector<32x32xf32>
    %176 = arith.mulf %171, %175 : vector<32x32xf32>
    %177 = vector.broadcast %156 : vector<1x32xf32> to vector<32x32xf32>
    %178 = arith.mulf %176, %177 : vector<32x32xf32>
    %179 = vector.broadcast %158 : vector<1x32xf32> to vector<32x32xf32>
    %180 = arith.addf %178, %179 : vector<32x32xf32>
    %c0_62 = arith.constant 0 : index
    %c0_63 = arith.constant 0 : index
    %181 = vector.load %arg19[%c0_62, %c0_63] : memref<32x32xf32, #tpu.memory_space<vmem>>, vector<32x32xf32>
    tpu.vector_store %arg19[%c0_62, %c0_63], %180 {strides = array<i32>} : memref<32x32xf32, #tpu.memory_space<vmem>>, vector<32x32xf32>,
    %c1_i32 = arith.constant 1 : i32
    %182 = arith.cmpi eq, %arg0, %c1_i32 : i32
    %183 = arith.extui %182 : i1 to i32
    %c0_i32_64 = arith.constant 0 : i32
    %184 = arith.cmpi ne, %183, %c0_i32_64 : i32
    scf.if %184 {
      %c0_65 = arith.constant 0 : index
      %c0_66 = arith.constant 0 : index
      %185 = vector.load %arg18[%c0_65, %c0_66] : memref<32x32xf32, #tpu.memory_space<vmem>>, vector<32x32xf32>
      tpu.vector_store %arg18[%c0_65, %c0_66], %180 {strides = array<i32>} : memref<32x32xf32, #tpu.memory_space<vmem>>, vector<32x32xf32>,
    } else {
    }
    return
  }
  func.func @transform_0(%arg0: i32) -> (i32, i32) {
    %c0_i32 = arith.constant 0 : i32
    %c0_i32_0 = arith.constant 0 : i32
    %c0_i32_1 = arith.constant 0 : i32
    return %c0_i32, %c0_i32_0 : i32, i32
  }
  func.func @transform_1(%arg0: i32) -> (i32, i32) {
    %c0_i32 = arith.constant 0 : i32
    %c0_i32_0 = arith.constant 0 : i32
    %c0_i32_1 = arith.constant 0 : i32
    return %c0_i32, %c0_i32_0 : i32, i32
  }
  func.func @transform_2(%arg0: i32) -> (i32, i32) {
    %c0_i32 = arith.constant 0 : i32
    %c0_i32_0 = arith.constant 0 : i32
    %c0_i32_1 = arith.constant 0 : i32
    return %c0_i32, %c0_i32_0 : i32, i32
  }
  func.func @transform_3(%arg0: i32) -> (i32, i32) {
    %c0_i32 = arith.constant 0 : i32
    %c0_i32_0 = arith.constant 0 : i32
    %c0_i32_1 = arith.constant 0 : i32
    return %c0_i32, %c0_i32_0 : i32, i32
  }
  func.func @transform_4(%arg0: i32) -> (i32, i32) {
    %c0_i32 = arith.constant 0 : i32
    %c0_i32_0 = arith.constant 0 : i32
    %c0_i32_1 = arith.constant 0 : i32
    return %c0_i32, %c0_i32_0 : i32, i32
  }
  func.func @transform_5(%arg0: i32) -> (i32, i32, i32) {
    %c0_i32 = arith.constant 0 : i32
    %c0_i32_0 = arith.constant 0 : i32
    %c0_i32_1 = arith.constant 0 : i32
    return %arg0, %c0_i32, %c0_i32_0 : i32, i32, i32
  }
  func.func @transform_6(%arg0: i32) -> (i32, i32, i32) {
    %c0_i32 = arith.constant 0 : i32
    %c0_i32_0 = arith.constant 0 : i32
    %c0_i32_1 = arith.constant 0 : i32
    return %arg0, %c0_i32, %c0_i32_0 : i32, i32, i32
  }
  func.func @transform_7(%arg0: i32) -> (i32, i32, i32) {
    %c0_i32 = arith.constant 0 : i32
    %c0_i32_0 = arith.constant 0 : i32
    %c0_i32_1 = arith.constant 0 : i32
    return %arg0, %c0_i32, %c0_i32_0 : i32, i32, i32
  }
  func.func @transform_8(%arg0: i32) -> (i32, i32, i32) {
    %c0_i32 = arith.constant 0 : i32
    %c0_i32_0 = arith.constant 0 : i32
    %c0_i32_1 = arith.constant 0 : i32
    return %arg0, %c0_i32, %c0_i32_0 : i32, i32, i32
  }
  func.func @transform_9(%arg0: i32) -> (i32, i32, i32) {
    %c0_i32 = arith.constant 0 : i32
    %c0_i32_0 = arith.constant 0 : i32
    %c0_i32_1 = arith.constant 0 : i32
    return %arg0, %c0_i32, %c0_i32_0 : i32, i32, i32
  }
  func.func @transform_10(%arg0: i32) -> (i32, i32, i32) {
    %c0_i32 = arith.constant 0 : i32
    %c0_i32_0 = arith.constant 0 : i32
    %c0_i32_1 = arith.constant 0 : i32
    return %arg0, %c0_i32, %c0_i32_0 : i32, i32, i32
  }
  func.func @transform_11(%arg0: i32) -> (i32, i32, i32) {
    %c0_i32 = arith.constant 0 : i32
    %c0_i32_0 = arith.constant 0 : i32
    %c0_i32_1 = arith.constant 0 : i32
    return %arg0, %c0_i32, %c0_i32_0 : i32, i32, i32
  }
  func.func @transform_12(%arg0: i32) -> (i32, i32, i32) {
    %c0_i32 = arith.constant 0 : i32
    %c0_i32_0 = arith.constant 0 : i32
    %c0_i32_1 = arith.constant 0 : i32
    return %arg0, %c0_i32, %c0_i32_0 : i32, i32, i32
  }
  func.func @transform_13(%arg0: i32) -> (i32, i32, i32) {
    %c0_i32 = arith.constant 0 : i32
    %c0_i32_0 = arith.constant 0 : i32
    %c0_i32_1 = arith.constant 0 : i32
    return %arg0, %c0_i32, %c0_i32_0 : i32, i32, i32
  }
  func.func @transform_14(%arg0: i32) -> (i32, i32, i32) {
    %c0_i32 = arith.constant 0 : i32
    %c0_i32_0 = arith.constant 0 : i32
    %c0_i32_1 = arith.constant 0 : i32
    return %arg0, %c0_i32, %c0_i32_0 : i32, i32, i32
  }
  func.func @transform_15(%arg0: i32) -> (i32, i32, i32) {
    %c0_i32 = arith.constant 0 : i32
    %c0_i32_0 = arith.constant 0 : i32
    %c0_i32_1 = arith.constant 0 : i32
    return %arg0, %c0_i32, %c0_i32_0 : i32, i32, i32
  }
  func.func @transform_16(%arg0: i32) -> (i32, i32, i32) {
    %c0_i32 = arith.constant 0 : i32
    %c0_i32_0 = arith.constant 0 : i32
    %c0_i32_1 = arith.constant 0 : i32
    return %arg0, %c0_i32, %c0_i32_0 : i32, i32, i32
  }
  func.func @transform_17(%arg0: i32) -> (i32, i32) {
    %c0_i32 = arith.constant 0 : i32
    %c0_i32_0 = arith.constant 0 : i32
    %c0_i32_1 = arith.constant 0 : i32
    return %c0_i32, %c0_i32_0 : i32, i32
  }
}

module attributes {stable_mosaic.version = 11 : i64} {
  func.func @_decoder_kernel(%arg0: memref<16x16xf32, #tpu.memory_space<vmem>>, %arg1: memref<32x32xf32, #tpu.memory_space<vmem>>, %arg2: memref<2x32xf32, #tpu.memory_space<vmem>>, %arg3: memref<16x128xf32, #tpu.memory_space<vmem>>, %arg4: memref<32x128xf32, #tpu.memory_space<vmem>>, %arg5: memref<32x128xf32, #tpu.memory_space<vmem>>, %arg6: memref<1x128xf32, #tpu.memory_space<vmem>>, %arg7: memref<32x16xf32, #tpu.memory_space<vmem>>, %arg8: memref<1x16xf32, #tpu.memory_space<vmem>>, %arg9: memref<16x16xf32, #tpu.memory_space<vmem>>, %arg10: memref<16x32xf32, #tpu.memory_space<vmem>>) attributes {dimension_semantics = [], scalar_prefetch = 0 : i64, scratch_operands = 1 : i64, tpu.core_type = #tpu.core_type<tc>} {
    %c0 = arith.constant 0 : index
    %c0_0 = arith.constant 0 : index
    %0 = vector.load %arg1[%c0, %c0_0] : memref<32x32xf32, #tpu.memory_space<vmem>>, vector<32x32xf32>
    %1 = tpu.transpose %0, [1, 0] : vector<32x32xf32> -> vector<32x32xf32>
    %c0_1 = arith.constant 0 : index
    %c0_2 = arith.constant 0 : index
    %2 = vector.load %arg4[%c0_1, %c0_2] : memref<32x128xf32, #tpu.memory_space<vmem>>, vector<32x128xf32>
    %c0_3 = arith.constant 0 : index
    %c0_4 = arith.constant 0 : index
    %3 = vector.load %arg5[%c0_3, %c0_4] : memref<32x128xf32, #tpu.memory_space<vmem>>, vector<32x128xf32>
    %c0_5 = arith.constant 0 : index
    %c0_6 = arith.constant 0 : index
    %4 = vector.load %arg2[%c0_5, %c0_6] : memref<2x32xf32, #tpu.memory_space<vmem>>, vector<2x32xf32>
    %c0_7 = arith.constant 0 : index
    %c0_8 = arith.constant 0 : index
    %5 = vector.load %arg0[%c0_7, %c0_8] : memref<16x16xf32, #tpu.memory_space<vmem>>, vector<16x16xf32>
    %c0_9 = arith.constant 0 : index
    %c0_10 = arith.constant 0 : index
    %6 = vector.load %arg3[%c0_9, %c0_10] : memref<16x128xf32, #tpu.memory_space<vmem>>, vector<16x128xf32>
    %cst = arith.constant dense<0.000000e+00> : vector<16x128xf32>
    %7 = tpu.matmul %5, %6, %cst {dimension_numbers = #tpu.dot_dimension_numbers<[1], [0], [0], [1], [0, 0, 1, 1], [], []>} : vector<16x16xf32>, vector<16x128xf32>, vector<16x128xf32> -> vector<16x128xf32>
    %c0_11 = arith.constant 0 : index
    %c0_12 = arith.constant 0 : index
    %8 = vector.load %arg6[%c0_11, %c0_12] : memref<1x128xf32, #tpu.memory_space<vmem>>, vector<1x128xf32>
    %9 = vector.broadcast %8 : vector<1x128xf32> to vector<16x128xf32>
    %10 = arith.addf %7, %9 : vector<16x128xf32>
    %cst_13 = arith.constant 0.000000e+00 : f32
    %11 = vector.broadcast %cst_13 : f32 to vector<2x32xf32>
    %cst_14 = arith.constant 0.000000e+00 : f32
    %12 = vector.broadcast %cst_14 : f32 to vector<2x32xf32>
    %cst_15 = arith.constant 0.000000e+00 : f32
    %13 = vector.broadcast %cst_15 : f32 to vector<2x32xf32>
    %14 = vector.extract_strided_slice %10 {offsets = [0, 0], sizes = [2, 128], strides = [1, 1]} : vector<16x128xf32> to vector<2x128xf32>
    %cst_16 = arith.constant dense<0.000000e+00> : vector<2x128xf32>
    %15 = tpu.matmul %13, %2, %cst_16 {dimension_numbers = #tpu.dot_dimension_numbers<[1], [0], [0], [1], [0, 0, 1, 1], [], []>} : vector<2x32xf32>, vector<32x128xf32>, vector<2x128xf32> -> vector<2x128xf32>
    %16 = arith.addf %14, %15 : vector<2x128xf32>
    %cst_17 = arith.constant dense<0.000000e+00> : vector<2x128xf32>
    %17 = tpu.matmul %11, %3, %cst_17 {dimension_numbers = #tpu.dot_dimension_numbers<[1], [0], [0], [1], [0, 0, 1, 1], [], []>} : vector<2x32xf32>, vector<32x128xf32>, vector<2x128xf32> -> vector<2x128xf32>
    %18 = arith.addf %16, %17 : vector<2x128xf32>
    %19 = vector.extract_strided_slice %18 {offsets = [0, 0], sizes = [2, 32], strides = [1, 1]} : vector<2x128xf32> to vector<2x32xf32>
    %20 = arith.negf %19 : vector<2x32xf32>
    %21 = math.exp %20 : vector<2x32xf32>
    %cst_18 = arith.constant 1.000000e+00 : f32
    %22 = vector.broadcast %cst_18 : f32 to vector<2x32xf32>
    %23 = arith.addf %22, %21 : vector<2x32xf32>
    %24 = arith.divf %22, %23 : vector<2x32xf32>
    %25 = vector.extract_strided_slice %18 {offsets = [0, 32], sizes = [2, 32], strides = [1, 1]} : vector<2x128xf32> to vector<2x32xf32>
    %26 = arith.negf %25 : vector<2x32xf32>
    %27 = math.exp %26 : vector<2x32xf32>
    %cst_19 = arith.constant 1.000000e+00 : f32
    %28 = vector.broadcast %cst_19 : f32 to vector<2x32xf32>
    %29 = arith.addf %28, %27 : vector<2x32xf32>
    %30 = arith.divf %28, %29 : vector<2x32xf32>
    %31 = vector.extract_strided_slice %18 {offsets = [0, 64], sizes = [2, 32], strides = [1, 1]} : vector<2x128xf32> to vector<2x32xf32>
    %32 = math.tanh %31 : vector<2x32xf32>
    %33 = vector.extract_strided_slice %18 {offsets = [0, 96], sizes = [2, 32], strides = [1, 1]} : vector<2x128xf32> to vector<2x32xf32>
    %34 = arith.negf %33 : vector<2x32xf32>
    %35 = math.exp %34 : vector<2x32xf32>
    %cst_20 = arith.constant 1.000000e+00 : f32
    %36 = vector.broadcast %cst_20 : f32 to vector<2x32xf32>
    %37 = arith.addf %36, %35 : vector<2x32xf32>
    %38 = arith.divf %36, %37 : vector<2x32xf32>
    %39 = arith.mulf %30, %12 : vector<2x32xf32>
    %40 = arith.mulf %24, %32 : vector<2x32xf32>
    %41 = arith.addf %39, %40 : vector<2x32xf32>
    %42 = math.tanh %41 : vector<2x32xf32>
    %43 = arith.mulf %38, %42 : vector<2x32xf32>
    %cst_21 = arith.constant dense<0.000000e+00> : vector<2x32xf32>
    %44 = tpu.matmul %43, %1, %cst_21 {dimension_numbers = #tpu.dot_dimension_numbers<[1], [0], [0], [1], [0, 0, 1, 1], [], []>} : vector<2x32xf32>, vector<32x32xf32>, vector<2x32xf32> -> vector<2x32xf32>
    %45 = arith.addf %44, %4 : vector<2x32xf32>
    %cst_22 = arith.constant dense<0xFF800000> : vector<2xf32>
    %46 = vector.multi_reduction <maximumf>, %45, %cst_22 [1] : vector<2x32xf32> to vector<2xf32>
    %47 = vector.shape_cast %46 : vector<2xf32> to vector<2x1xf32>
    %48 = vector.broadcast %47 : vector<2x1xf32> to vector<2x32xf32>
    %49 = arith.subf %45, %48 : vector<2x32xf32>
    %50 = math.exp %49 : vector<2x32xf32>
    %cst_23 = arith.constant dense<0.000000e+00> : vector<2xf32>
    %51 = vector.multi_reduction <add>, %50, %cst_23 [1] : vector<2x32xf32> to vector<2xf32>
    %52 = vector.shape_cast %51 : vector<2xf32> to vector<2x1xf32>
    %53 = vector.broadcast %52 : vector<2x1xf32> to vector<2x32xf32>
    %54 = arith.divf %50, %53 : vector<2x32xf32>
    %cst_24 = arith.constant dense<0.000000e+00> : vector<2x32xf32>
    %55 = tpu.matmul %54, %0, %cst_24 {dimension_numbers = #tpu.dot_dimension_numbers<[1], [0], [0], [1], [0, 0, 1, 1], [], []>} : vector<2x32xf32>, vector<32x32xf32>, vector<2x32xf32> -> vector<2x32xf32>
    %c0_25 = arith.constant 0 : index
    %c0_26 = arith.constant 0 : index
    %56 = vector.load %arg10[%c0_25, %c0_26] : memref<16x32xf32, #tpu.memory_space<vmem>>, vector<2x32xf32>
    tpu.vector_store %arg10[%c0_25, %c0_26], %43 {strides = array<i32>} : memref<16x32xf32, #tpu.memory_space<vmem>>, vector<2x32xf32>,
    %57 = vector.extract_strided_slice %10 {offsets = [2, 0], sizes = [2, 128], strides = [1, 1]} : vector<16x128xf32> to vector<2x128xf32>
    %cst_27 = arith.constant dense<0.000000e+00> : vector<2x128xf32>
    %58 = tpu.matmul %55, %2, %cst_27 {dimension_numbers = #tpu.dot_dimension_numbers<[1], [0], [0], [1], [0, 0, 1, 1], [], []>} : vector<2x32xf32>, vector<32x128xf32>, vector<2x128xf32> -> vector<2x128xf32>
    %59 = arith.addf %57, %58 : vector<2x128xf32>
    %cst_28 = arith.constant dense<0.000000e+00> : vector<2x128xf32>
    %60 = tpu.matmul %43, %3, %cst_28 {dimension_numbers = #tpu.dot_dimension_numbers<[1], [0], [0], [1], [0, 0, 1, 1], [], []>} : vector<2x32xf32>, vector<32x128xf32>, vector<2x128xf32> -> vector<2x128xf32>
    %61 = arith.addf %59, %60 : vector<2x128xf32>
    %62 = vector.extract_strided_slice %61 {offsets = [0, 0], sizes = [2, 32], strides = [1, 1]} : vector<2x128xf32> to vector<2x32xf32>
    %63 = arith.negf %62 : vector<2x32xf32>
    %64 = math.exp %63 : vector<2x32xf32>
    %cst_29 = arith.constant 1.000000e+00 : f32
    %65 = vector.broadcast %cst_29 : f32 to vector<2x32xf32>
    %66 = arith.addf %65, %64 : vector<2x32xf32>
    %67 = arith.divf %65, %66 : vector<2x32xf32>
    %68 = vector.extract_strided_slice %61 {offsets = [0, 32], sizes = [2, 32], strides = [1, 1]} : vector<2x128xf32> to vector<2x32xf32>
    %69 = arith.negf %68 : vector<2x32xf32>
    %70 = math.exp %69 : vector<2x32xf32>
    %cst_30 = arith.constant 1.000000e+00 : f32
    %71 = vector.broadcast %cst_30 : f32 to vector<2x32xf32>
    %72 = arith.addf %71, %70 : vector<2x32xf32>
    %73 = arith.divf %71, %72 : vector<2x32xf32>
    %74 = vector.extract_strided_slice %61 {offsets = [0, 64], sizes = [2, 32], strides = [1, 1]} : vector<2x128xf32> to vector<2x32xf32>
    %75 = math.tanh %74 : vector<2x32xf32>
    %76 = vector.extract_strided_slice %61 {offsets = [0, 96], sizes = [2, 32], strides = [1, 1]} : vector<2x128xf32> to vector<2x32xf32>
    %77 = arith.negf %76 : vector<2x32xf32>
    %78 = math.exp %77 : vector<2x32xf32>
    %cst_31 = arith.constant 1.000000e+00 : f32
    %79 = vector.broadcast %cst_31 : f32 to vector<2x32xf32>
    %80 = arith.addf %79, %78 : vector<2x32xf32>
    %81 = arith.divf %79, %80 : vector<2x32xf32>
    %82 = arith.mulf %73, %41 : vector<2x32xf32>
    %83 = arith.mulf %67, %75 : vector<2x32xf32>
    %84 = arith.addf %82, %83 : vector<2x32xf32>
    %85 = math.tanh %84 : vector<2x32xf32>
    %86 = arith.mulf %81, %85 : vector<2x32xf32>
    %cst_32 = arith.constant dense<0.000000e+00> : vector<2x32xf32>
    %87 = tpu.matmul %86, %1, %cst_32 {dimension_numbers = #tpu.dot_dimension_numbers<[1], [0], [0], [1], [0, 0, 1, 1], [], []>} : vector<2x32xf32>, vector<32x32xf32>, vector<2x32xf32> -> vector<2x32xf32>
    %88 = arith.addf %87, %4 : vector<2x32xf32>
    %cst_33 = arith.constant dense<0xFF800000> : vector<2xf32>
    %89 = vector.multi_reduction <maximumf>, %88, %cst_33 [1] : vector<2x32xf32> to vector<2xf32>
    %90 = vector.shape_cast %89 : vector<2xf32> to vector<2x1xf32>
    %91 = vector.broadcast %90 : vector<2x1xf32> to vector<2x32xf32>
    %92 = arith.subf %88, %91 : vector<2x32xf32>
    %93 = math.exp %92 : vector<2x32xf32>
    %cst_34 = arith.constant dense<0.000000e+00> : vector<2xf32>
    %94 = vector.multi_reduction <add>, %93, %cst_34 [1] : vector<2x32xf32> to vector<2xf32>
    %95 = vector.shape_cast %94 : vector<2xf32> to vector<2x1xf32>
    %96 = vector.broadcast %95 : vector<2x1xf32> to vector<2x32xf32>
    %97 = arith.divf %93, %96 : vector<2x32xf32>
    %cst_35 = arith.constant dense<0.000000e+00> : vector<2x32xf32>
    %98 = tpu.matmul %97, %0, %cst_35 {dimension_numbers = #tpu.dot_dimension_numbers<[1], [0], [0], [1], [0, 0, 1, 1], [], []>} : vector<2x32xf32>, vector<32x32xf32>, vector<2x32xf32> -> vector<2x32xf32>
    %c2 = arith.constant 2 : index
    %c0_36 = arith.constant 0 : index
    %99 = vector.load %arg10[%c2, %c0_36] : memref<16x32xf32, #tpu.memory_space<vmem>>, vector<2x32xf32>
    tpu.vector_store %arg10[%c2, %c0_36], %86 {strides = array<i32>} : memref<16x32xf32, #tpu.memory_space<vmem>>, vector<2x32xf32>,
    %100 = vector.extract_strided_slice %10 {offsets = [4, 0], sizes = [2, 128], strides = [1, 1]} : vector<16x128xf32> to vector<2x128xf32>
    %cst_37 = arith.constant dense<0.000000e+00> : vector<2x128xf32>
    %101 = tpu.matmul %98, %2, %cst_37 {dimension_numbers = #tpu.dot_dimension_numbers<[1], [0], [0], [1], [0, 0, 1, 1], [], []>} : vector<2x32xf32>, vector<32x128xf32>, vector<2x128xf32> -> vector<2x128xf32>
    %102 = arith.addf %100, %101 : vector<2x128xf32>
    %cst_38 = arith.constant dense<0.000000e+00> : vector<2x128xf32>
    %103 = tpu.matmul %86, %3, %cst_38 {dimension_numbers = #tpu.dot_dimension_numbers<[1], [0], [0], [1], [0, 0, 1, 1], [], []>} : vector<2x32xf32>, vector<32x128xf32>, vector<2x128xf32> -> vector<2x128xf32>
    %104 = arith.addf %102, %103 : vector<2x128xf32>
    %105 = vector.extract_strided_slice %104 {offsets = [0, 0], sizes = [2, 32], strides = [1, 1]} : vector<2x128xf32> to vector<2x32xf32>
    %106 = arith.negf %105 : vector<2x32xf32>
    %107 = math.exp %106 : vector<2x32xf32>
    %cst_39 = arith.constant 1.000000e+00 : f32
    %108 = vector.broadcast %cst_39 : f32 to vector<2x32xf32>
    %109 = arith.addf %108, %107 : vector<2x32xf32>
    %110 = arith.divf %108, %109 : vector<2x32xf32>
    %111 = vector.extract_strided_slice %104 {offsets = [0, 32], sizes = [2, 32], strides = [1, 1]} : vector<2x128xf32> to vector<2x32xf32>
    %112 = arith.negf %111 : vector<2x32xf32>
    %113 = math.exp %112 : vector<2x32xf32>
    %cst_40 = arith.constant 1.000000e+00 : f32
    %114 = vector.broadcast %cst_40 : f32 to vector<2x32xf32>
    %115 = arith.addf %114, %113 : vector<2x32xf32>
    %116 = arith.divf %114, %115 : vector<2x32xf32>
    %117 = vector.extract_strided_slice %104 {offsets = [0, 64], sizes = [2, 32], strides = [1, 1]} : vector<2x128xf32> to vector<2x32xf32>
    %118 = math.tanh %117 : vector<2x32xf32>
    %119 = vector.extract_strided_slice %104 {offsets = [0, 96], sizes = [2, 32], strides = [1, 1]} : vector<2x128xf32> to vector<2x32xf32>
    %120 = arith.negf %119 : vector<2x32xf32>
    %121 = math.exp %120 : vector<2x32xf32>
    %cst_41 = arith.constant 1.000000e+00 : f32
    %122 = vector.broadcast %cst_41 : f32 to vector<2x32xf32>
    %123 = arith.addf %122, %121 : vector<2x32xf32>
    %124 = arith.divf %122, %123 : vector<2x32xf32>
    %125 = arith.mulf %116, %84 : vector<2x32xf32>
    %126 = arith.mulf %110, %118 : vector<2x32xf32>
    %127 = arith.addf %125, %126 : vector<2x32xf32>
    %128 = math.tanh %127 : vector<2x32xf32>
    %129 = arith.mulf %124, %128 : vector<2x32xf32>
    %cst_42 = arith.constant dense<0.000000e+00> : vector<2x32xf32>
    %130 = tpu.matmul %129, %1, %cst_42 {dimension_numbers = #tpu.dot_dimension_numbers<[1], [0], [0], [1], [0, 0, 1, 1], [], []>} : vector<2x32xf32>, vector<32x32xf32>, vector<2x32xf32> -> vector<2x32xf32>
    %131 = arith.addf %130, %4 : vector<2x32xf32>
    %cst_43 = arith.constant dense<0xFF800000> : vector<2xf32>
    %132 = vector.multi_reduction <maximumf>, %131, %cst_43 [1] : vector<2x32xf32> to vector<2xf32>
    %133 = vector.shape_cast %132 : vector<2xf32> to vector<2x1xf32>
    %134 = vector.broadcast %133 : vector<2x1xf32> to vector<2x32xf32>
    %135 = arith.subf %131, %134 : vector<2x32xf32>
    %136 = math.exp %135 : vector<2x32xf32>
    %cst_44 = arith.constant dense<0.000000e+00> : vector<2xf32>
    %137 = vector.multi_reduction <add>, %136, %cst_44 [1] : vector<2x32xf32> to vector<2xf32>
    %138 = vector.shape_cast %137 : vector<2xf32> to vector<2x1xf32>
    %139 = vector.broadcast %138 : vector<2x1xf32> to vector<2x32xf32>
    %140 = arith.divf %136, %139 : vector<2x32xf32>
    %cst_45 = arith.constant dense<0.000000e+00> : vector<2x32xf32>
    %141 = tpu.matmul %140, %0, %cst_45 {dimension_numbers = #tpu.dot_dimension_numbers<[1], [0], [0], [1], [0, 0, 1, 1], [], []>} : vector<2x32xf32>, vector<32x32xf32>, vector<2x32xf32> -> vector<2x32xf32>
    %c4 = arith.constant 4 : index
    %c0_46 = arith.constant 0 : index
    %142 = vector.load %arg10[%c4, %c0_46] : memref<16x32xf32, #tpu.memory_space<vmem>>, vector<2x32xf32>
    tpu.vector_store %arg10[%c4, %c0_46], %129 {strides = array<i32>} : memref<16x32xf32, #tpu.memory_space<vmem>>, vector<2x32xf32>,
    %143 = vector.extract_strided_slice %10 {offsets = [6, 0], sizes = [2, 128], strides = [1, 1]} : vector<16x128xf32> to vector<2x128xf32>
    %cst_47 = arith.constant dense<0.000000e+00> : vector<2x128xf32>
    %144 = tpu.matmul %141, %2, %cst_47 {dimension_numbers = #tpu.dot_dimension_numbers<[1], [0], [0], [1], [0, 0, 1, 1], [], []>} : vector<2x32xf32>, vector<32x128xf32>, vector<2x128xf32> -> vector<2x128xf32>
    %145 = arith.addf %143, %144 : vector<2x128xf32>
    %cst_48 = arith.constant dense<0.000000e+00> : vector<2x128xf32>
    %146 = tpu.matmul %129, %3, %cst_48 {dimension_numbers = #tpu.dot_dimension_numbers<[1], [0], [0], [1], [0, 0, 1, 1], [], []>} : vector<2x32xf32>, vector<32x128xf32>, vector<2x128xf32> -> vector<2x128xf32>
    %147 = arith.addf %145, %146 : vector<2x128xf32>
    %148 = vector.extract_strided_slice %147 {offsets = [0, 0], sizes = [2, 32], strides = [1, 1]} : vector<2x128xf32> to vector<2x32xf32>
    %149 = arith.negf %148 : vector<2x32xf32>
    %150 = math.exp %149 : vector<2x32xf32>
    %cst_49 = arith.constant 1.000000e+00 : f32
    %151 = vector.broadcast %cst_49 : f32 to vector<2x32xf32>
    %152 = arith.addf %151, %150 : vector<2x32xf32>
    %153 = arith.divf %151, %152 : vector<2x32xf32>
    %154 = vector.extract_strided_slice %147 {offsets = [0, 32], sizes = [2, 32], strides = [1, 1]} : vector<2x128xf32> to vector<2x32xf32>
    %155 = arith.negf %154 : vector<2x32xf32>
    %156 = math.exp %155 : vector<2x32xf32>
    %cst_50 = arith.constant 1.000000e+00 : f32
    %157 = vector.broadcast %cst_50 : f32 to vector<2x32xf32>
    %158 = arith.addf %157, %156 : vector<2x32xf32>
    %159 = arith.divf %157, %158 : vector<2x32xf32>
    %160 = vector.extract_strided_slice %147 {offsets = [0, 64], sizes = [2, 32], strides = [1, 1]} : vector<2x128xf32> to vector<2x32xf32>
    %161 = math.tanh %160 : vector<2x32xf32>
    %162 = vector.extract_strided_slice %147 {offsets = [0, 96], sizes = [2, 32], strides = [1, 1]} : vector<2x128xf32> to vector<2x32xf32>
    %163 = arith.negf %162 : vector<2x32xf32>
    %164 = math.exp %163 : vector<2x32xf32>
    %cst_51 = arith.constant 1.000000e+00 : f32
    %165 = vector.broadcast %cst_51 : f32 to vector<2x32xf32>
    %166 = arith.addf %165, %164 : vector<2x32xf32>
    %167 = arith.divf %165, %166 : vector<2x32xf32>
    %168 = arith.mulf %159, %127 : vector<2x32xf32>
    %169 = arith.mulf %153, %161 : vector<2x32xf32>
    %170 = arith.addf %168, %169 : vector<2x32xf32>
    %171 = math.tanh %170 : vector<2x32xf32>
    %172 = arith.mulf %167, %171 : vector<2x32xf32>
    %cst_52 = arith.constant dense<0.000000e+00> : vector<2x32xf32>
    %173 = tpu.matmul %172, %1, %cst_52 {dimension_numbers = #tpu.dot_dimension_numbers<[1], [0], [0], [1], [0, 0, 1, 1], [], []>} : vector<2x32xf32>, vector<32x32xf32>, vector<2x32xf32> -> vector<2x32xf32>
    %174 = arith.addf %173, %4 : vector<2x32xf32>
    %cst_53 = arith.constant dense<0xFF800000> : vector<2xf32>
    %175 = vector.multi_reduction <maximumf>, %174, %cst_53 [1] : vector<2x32xf32> to vector<2xf32>
    %176 = vector.shape_cast %175 : vector<2xf32> to vector<2x1xf32>
    %177 = vector.broadcast %176 : vector<2x1xf32> to vector<2x32xf32>
    %178 = arith.subf %174, %177 : vector<2x32xf32>
    %179 = math.exp %178 : vector<2x32xf32>
    %cst_54 = arith.constant dense<0.000000e+00> : vector<2xf32>
    %180 = vector.multi_reduction <add>, %179, %cst_54 [1] : vector<2x32xf32> to vector<2xf32>
    %181 = vector.shape_cast %180 : vector<2xf32> to vector<2x1xf32>
    %182 = vector.broadcast %181 : vector<2x1xf32> to vector<2x32xf32>
    %183 = arith.divf %179, %182 : vector<2x32xf32>
    %cst_55 = arith.constant dense<0.000000e+00> : vector<2x32xf32>
    %184 = tpu.matmul %183, %0, %cst_55 {dimension_numbers = #tpu.dot_dimension_numbers<[1], [0], [0], [1], [0, 0, 1, 1], [], []>} : vector<2x32xf32>, vector<32x32xf32>, vector<2x32xf32> -> vector<2x32xf32>
    %c6 = arith.constant 6 : index
    %c0_56 = arith.constant 0 : index
    %185 = vector.load %arg10[%c6, %c0_56] : memref<16x32xf32, #tpu.memory_space<vmem>>, vector<2x32xf32>
    tpu.vector_store %arg10[%c6, %c0_56], %172 {strides = array<i32>} : memref<16x32xf32, #tpu.memory_space<vmem>>, vector<2x32xf32>,
    %186 = vector.extract_strided_slice %10 {offsets = [8, 0], sizes = [2, 128], strides = [1, 1]} : vector<16x128xf32> to vector<2x128xf32>
    %cst_57 = arith.constant dense<0.000000e+00> : vector<2x128xf32>
    %187 = tpu.matmul %184, %2, %cst_57 {dimension_numbers = #tpu.dot_dimension_numbers<[1], [0], [0], [1], [0, 0, 1, 1], [], []>} : vector<2x32xf32>, vector<32x128xf32>, vector<2x128xf32> -> vector<2x128xf32>
    %188 = arith.addf %186, %187 : vector<2x128xf32>
    %cst_58 = arith.constant dense<0.000000e+00> : vector<2x128xf32>
    %189 = tpu.matmul %172, %3, %cst_58 {dimension_numbers = #tpu.dot_dimension_numbers<[1], [0], [0], [1], [0, 0, 1, 1], [], []>} : vector<2x32xf32>, vector<32x128xf32>, vector<2x128xf32> -> vector<2x128xf32>
    %190 = arith.addf %188, %189 : vector<2x128xf32>
    %191 = vector.extract_strided_slice %190 {offsets = [0, 0], sizes = [2, 32], strides = [1, 1]} : vector<2x128xf32> to vector<2x32xf32>
    %192 = arith.negf %191 : vector<2x32xf32>
    %193 = math.exp %192 : vector<2x32xf32>
    %cst_59 = arith.constant 1.000000e+00 : f32
    %194 = vector.broadcast %cst_59 : f32 to vector<2x32xf32>
    %195 = arith.addf %194, %193 : vector<2x32xf32>
    %196 = arith.divf %194, %195 : vector<2x32xf32>
    %197 = vector.extract_strided_slice %190 {offsets = [0, 32], sizes = [2, 32], strides = [1, 1]} : vector<2x128xf32> to vector<2x32xf32>
    %198 = arith.negf %197 : vector<2x32xf32>
    %199 = math.exp %198 : vector<2x32xf32>
    %cst_60 = arith.constant 1.000000e+00 : f32
    %200 = vector.broadcast %cst_60 : f32 to vector<2x32xf32>
    %201 = arith.addf %200, %199 : vector<2x32xf32>
    %202 = arith.divf %200, %201 : vector<2x32xf32>
    %203 = vector.extract_strided_slice %190 {offsets = [0, 64], sizes = [2, 32], strides = [1, 1]} : vector<2x128xf32> to vector<2x32xf32>
    %204 = math.tanh %203 : vector<2x32xf32>
    %205 = vector.extract_strided_slice %190 {offsets = [0, 96], sizes = [2, 32], strides = [1, 1]} : vector<2x128xf32> to vector<2x32xf32>
    %206 = arith.negf %205 : vector<2x32xf32>
    %207 = math.exp %206 : vector<2x32xf32>
    %cst_61 = arith.constant 1.000000e+00 : f32
    %208 = vector.broadcast %cst_61 : f32 to vector<2x32xf32>
    %209 = arith.addf %208, %207 : vector<2x32xf32>
    %210 = arith.divf %208, %209 : vector<2x32xf32>
    %211 = arith.mulf %202, %170 : vector<2x32xf32>
    %212 = arith.mulf %196, %204 : vector<2x32xf32>
    %213 = arith.addf %211, %212 : vector<2x32xf32>
    %214 = math.tanh %213 : vector<2x32xf32>
    %215 = arith.mulf %210, %214 : vector<2x32xf32>
    %cst_62 = arith.constant dense<0.000000e+00> : vector<2x32xf32>
    %216 = tpu.matmul %215, %1, %cst_62 {dimension_numbers = #tpu.dot_dimension_numbers<[1], [0], [0], [1], [0, 0, 1, 1], [], []>} : vector<2x32xf32>, vector<32x32xf32>, vector<2x32xf32> -> vector<2x32xf32>
    %217 = arith.addf %216, %4 : vector<2x32xf32>
    %cst_63 = arith.constant dense<0xFF800000> : vector<2xf32>
    %218 = vector.multi_reduction <maximumf>, %217, %cst_63 [1] : vector<2x32xf32> to vector<2xf32>
    %219 = vector.shape_cast %218 : vector<2xf32> to vector<2x1xf32>
    %220 = vector.broadcast %219 : vector<2x1xf32> to vector<2x32xf32>
    %221 = arith.subf %217, %220 : vector<2x32xf32>
    %222 = math.exp %221 : vector<2x32xf32>
    %cst_64 = arith.constant dense<0.000000e+00> : vector<2xf32>
    %223 = vector.multi_reduction <add>, %222, %cst_64 [1] : vector<2x32xf32> to vector<2xf32>
    %224 = vector.shape_cast %223 : vector<2xf32> to vector<2x1xf32>
    %225 = vector.broadcast %224 : vector<2x1xf32> to vector<2x32xf32>
    %226 = arith.divf %222, %225 : vector<2x32xf32>
    %cst_65 = arith.constant dense<0.000000e+00> : vector<2x32xf32>
    %227 = tpu.matmul %226, %0, %cst_65 {dimension_numbers = #tpu.dot_dimension_numbers<[1], [0], [0], [1], [0, 0, 1, 1], [], []>} : vector<2x32xf32>, vector<32x32xf32>, vector<2x32xf32> -> vector<2x32xf32>
    %c8 = arith.constant 8 : index
    %c0_66 = arith.constant 0 : index
    %228 = vector.load %arg10[%c8, %c0_66] : memref<16x32xf32, #tpu.memory_space<vmem>>, vector<2x32xf32>
    tpu.vector_store %arg10[%c8, %c0_66], %215 {strides = array<i32>} : memref<16x32xf32, #tpu.memory_space<vmem>>, vector<2x32xf32>,
    %229 = vector.extract_strided_slice %10 {offsets = [10, 0], sizes = [2, 128], strides = [1, 1]} : vector<16x128xf32> to vector<2x128xf32>
    %cst_67 = arith.constant dense<0.000000e+00> : vector<2x128xf32>
    %230 = tpu.matmul %227, %2, %cst_67 {dimension_numbers = #tpu.dot_dimension_numbers<[1], [0], [0], [1], [0, 0, 1, 1], [], []>} : vector<2x32xf32>, vector<32x128xf32>, vector<2x128xf32> -> vector<2x128xf32>
    %231 = arith.addf %229, %230 : vector<2x128xf32>
    %cst_68 = arith.constant dense<0.000000e+00> : vector<2x128xf32>
    %232 = tpu.matmul %215, %3, %cst_68 {dimension_numbers = #tpu.dot_dimension_numbers<[1], [0], [0], [1], [0, 0, 1, 1], [], []>} : vector<2x32xf32>, vector<32x128xf32>, vector<2x128xf32> -> vector<2x128xf32>
    %233 = arith.addf %231, %232 : vector<2x128xf32>
    %234 = vector.extract_strided_slice %233 {offsets = [0, 0], sizes = [2, 32], strides = [1, 1]} : vector<2x128xf32> to vector<2x32xf32>
    %235 = arith.negf %234 : vector<2x32xf32>
    %236 = math.exp %235 : vector<2x32xf32>
    %cst_69 = arith.constant 1.000000e+00 : f32
    %237 = vector.broadcast %cst_69 : f32 to vector<2x32xf32>
    %238 = arith.addf %237, %236 : vector<2x32xf32>
    %239 = arith.divf %237, %238 : vector<2x32xf32>
    %240 = vector.extract_strided_slice %233 {offsets = [0, 32], sizes = [2, 32], strides = [1, 1]} : vector<2x128xf32> to vector<2x32xf32>
    %241 = arith.negf %240 : vector<2x32xf32>
    %242 = math.exp %241 : vector<2x32xf32>
    %cst_70 = arith.constant 1.000000e+00 : f32
    %243 = vector.broadcast %cst_70 : f32 to vector<2x32xf32>
    %244 = arith.addf %243, %242 : vector<2x32xf32>
    %245 = arith.divf %243, %244 : vector<2x32xf32>
    %246 = vector.extract_strided_slice %233 {offsets = [0, 64], sizes = [2, 32], strides = [1, 1]} : vector<2x128xf32> to vector<2x32xf32>
    %247 = math.tanh %246 : vector<2x32xf32>
    %248 = vector.extract_strided_slice %233 {offsets = [0, 96], sizes = [2, 32], strides = [1, 1]} : vector<2x128xf32> to vector<2x32xf32>
    %249 = arith.negf %248 : vector<2x32xf32>
    %250 = math.exp %249 : vector<2x32xf32>
    %cst_71 = arith.constant 1.000000e+00 : f32
    %251 = vector.broadcast %cst_71 : f32 to vector<2x32xf32>
    %252 = arith.addf %251, %250 : vector<2x32xf32>
    %253 = arith.divf %251, %252 : vector<2x32xf32>
    %254 = arith.mulf %245, %213 : vector<2x32xf32>
    %255 = arith.mulf %239, %247 : vector<2x32xf32>
    %256 = arith.addf %254, %255 : vector<2x32xf32>
    %257 = math.tanh %256 : vector<2x32xf32>
    %258 = arith.mulf %253, %257 : vector<2x32xf32>
    %cst_72 = arith.constant dense<0.000000e+00> : vector<2x32xf32>
    %259 = tpu.matmul %258, %1, %cst_72 {dimension_numbers = #tpu.dot_dimension_numbers<[1], [0], [0], [1], [0, 0, 1, 1], [], []>} : vector<2x32xf32>, vector<32x32xf32>, vector<2x32xf32> -> vector<2x32xf32>
    %260 = arith.addf %259, %4 : vector<2x32xf32>
    %cst_73 = arith.constant dense<0xFF800000> : vector<2xf32>
    %261 = vector.multi_reduction <maximumf>, %260, %cst_73 [1] : vector<2x32xf32> to vector<2xf32>
    %262 = vector.shape_cast %261 : vector<2xf32> to vector<2x1xf32>
    %263 = vector.broadcast %262 : vector<2x1xf32> to vector<2x32xf32>
    %264 = arith.subf %260, %263 : vector<2x32xf32>
    %265 = math.exp %264 : vector<2x32xf32>
    %cst_74 = arith.constant dense<0.000000e+00> : vector<2xf32>
    %266 = vector.multi_reduction <add>, %265, %cst_74 [1] : vector<2x32xf32> to vector<2xf32>
    %267 = vector.shape_cast %266 : vector<2xf32> to vector<2x1xf32>
    %268 = vector.broadcast %267 : vector<2x1xf32> to vector<2x32xf32>
    %269 = arith.divf %265, %268 : vector<2x32xf32>
    %cst_75 = arith.constant dense<0.000000e+00> : vector<2x32xf32>
    %270 = tpu.matmul %269, %0, %cst_75 {dimension_numbers = #tpu.dot_dimension_numbers<[1], [0], [0], [1], [0, 0, 1, 1], [], []>} : vector<2x32xf32>, vector<32x32xf32>, vector<2x32xf32> -> vector<2x32xf32>
    %c10 = arith.constant 10 : index
    %c0_76 = arith.constant 0 : index
    %271 = vector.load %arg10[%c10, %c0_76] : memref<16x32xf32, #tpu.memory_space<vmem>>, vector<2x32xf32>
    tpu.vector_store %arg10[%c10, %c0_76], %258 {strides = array<i32>} : memref<16x32xf32, #tpu.memory_space<vmem>>, vector<2x32xf32>,
    %272 = vector.extract_strided_slice %10 {offsets = [12, 0], sizes = [2, 128], strides = [1, 1]} : vector<16x128xf32> to vector<2x128xf32>
    %cst_77 = arith.constant dense<0.000000e+00> : vector<2x128xf32>
    %273 = tpu.matmul %270, %2, %cst_77 {dimension_numbers = #tpu.dot_dimension_numbers<[1], [0], [0], [1], [0, 0, 1, 1], [], []>} : vector<2x32xf32>, vector<32x128xf32>, vector<2x128xf32> -> vector<2x128xf32>
    %274 = arith.addf %272, %273 : vector<2x128xf32>
    %cst_78 = arith.constant dense<0.000000e+00> : vector<2x128xf32>
    %275 = tpu.matmul %258, %3, %cst_78 {dimension_numbers = #tpu.dot_dimension_numbers<[1], [0], [0], [1], [0, 0, 1, 1], [], []>} : vector<2x32xf32>, vector<32x128xf32>, vector<2x128xf32> -> vector<2x128xf32>
    %276 = arith.addf %274, %275 : vector<2x128xf32>
    %277 = vector.extract_strided_slice %276 {offsets = [0, 0], sizes = [2, 32], strides = [1, 1]} : vector<2x128xf32> to vector<2x32xf32>
    %278 = arith.negf %277 : vector<2x32xf32>
    %279 = math.exp %278 : vector<2x32xf32>
    %cst_79 = arith.constant 1.000000e+00 : f32
    %280 = vector.broadcast %cst_79 : f32 to vector<2x32xf32>
    %281 = arith.addf %280, %279 : vector<2x32xf32>
    %282 = arith.divf %280, %281 : vector<2x32xf32>
    %283 = vector.extract_strided_slice %276 {offsets = [0, 32], sizes = [2, 32], strides = [1, 1]} : vector<2x128xf32> to vector<2x32xf32>
    %284 = arith.negf %283 : vector<2x32xf32>
    %285 = math.exp %284 : vector<2x32xf32>
    %cst_80 = arith.constant 1.000000e+00 : f32
    %286 = vector.broadcast %cst_80 : f32 to vector<2x32xf32>
    %287 = arith.addf %286, %285 : vector<2x32xf32>
    %288 = arith.divf %286, %287 : vector<2x32xf32>
    %289 = vector.extract_strided_slice %276 {offsets = [0, 64], sizes = [2, 32], strides = [1, 1]} : vector<2x128xf32> to vector<2x32xf32>
    %290 = math.tanh %289 : vector<2x32xf32>
    %291 = vector.extract_strided_slice %276 {offsets = [0, 96], sizes = [2, 32], strides = [1, 1]} : vector<2x128xf32> to vector<2x32xf32>
    %292 = arith.negf %291 : vector<2x32xf32>
    %293 = math.exp %292 : vector<2x32xf32>
    %cst_81 = arith.constant 1.000000e+00 : f32
    %294 = vector.broadcast %cst_81 : f32 to vector<2x32xf32>
    %295 = arith.addf %294, %293 : vector<2x32xf32>
    %296 = arith.divf %294, %295 : vector<2x32xf32>
    %297 = arith.mulf %288, %256 : vector<2x32xf32>
    %298 = arith.mulf %282, %290 : vector<2x32xf32>
    %299 = arith.addf %297, %298 : vector<2x32xf32>
    %300 = math.tanh %299 : vector<2x32xf32>
    %301 = arith.mulf %296, %300 : vector<2x32xf32>
    %cst_82 = arith.constant dense<0.000000e+00> : vector<2x32xf32>
    %302 = tpu.matmul %301, %1, %cst_82 {dimension_numbers = #tpu.dot_dimension_numbers<[1], [0], [0], [1], [0, 0, 1, 1], [], []>} : vector<2x32xf32>, vector<32x32xf32>, vector<2x32xf32> -> vector<2x32xf32>
    %303 = arith.addf %302, %4 : vector<2x32xf32>
    %cst_83 = arith.constant dense<0xFF800000> : vector<2xf32>
    %304 = vector.multi_reduction <maximumf>, %303, %cst_83 [1] : vector<2x32xf32> to vector<2xf32>
    %305 = vector.shape_cast %304 : vector<2xf32> to vector<2x1xf32>
    %306 = vector.broadcast %305 : vector<2x1xf32> to vector<2x32xf32>
    %307 = arith.subf %303, %306 : vector<2x32xf32>
    %308 = math.exp %307 : vector<2x32xf32>
    %cst_84 = arith.constant dense<0.000000e+00> : vector<2xf32>
    %309 = vector.multi_reduction <add>, %308, %cst_84 [1] : vector<2x32xf32> to vector<2xf32>
    %310 = vector.shape_cast %309 : vector<2xf32> to vector<2x1xf32>
    %311 = vector.broadcast %310 : vector<2x1xf32> to vector<2x32xf32>
    %312 = arith.divf %308, %311 : vector<2x32xf32>
    %cst_85 = arith.constant dense<0.000000e+00> : vector<2x32xf32>
    %313 = tpu.matmul %312, %0, %cst_85 {dimension_numbers = #tpu.dot_dimension_numbers<[1], [0], [0], [1], [0, 0, 1, 1], [], []>} : vector<2x32xf32>, vector<32x32xf32>, vector<2x32xf32> -> vector<2x32xf32>
    %c12 = arith.constant 12 : index
    %c0_86 = arith.constant 0 : index
    %314 = vector.load %arg10[%c12, %c0_86] : memref<16x32xf32, #tpu.memory_space<vmem>>, vector<2x32xf32>
    tpu.vector_store %arg10[%c12, %c0_86], %301 {strides = array<i32>} : memref<16x32xf32, #tpu.memory_space<vmem>>, vector<2x32xf32>,
    %315 = vector.extract_strided_slice %10 {offsets = [14, 0], sizes = [2, 128], strides = [1, 1]} : vector<16x128xf32> to vector<2x128xf32>
    %cst_87 = arith.constant dense<0.000000e+00> : vector<2x128xf32>
    %316 = tpu.matmul %313, %2, %cst_87 {dimension_numbers = #tpu.dot_dimension_numbers<[1], [0], [0], [1], [0, 0, 1, 1], [], []>} : vector<2x32xf32>, vector<32x128xf32>, vector<2x128xf32> -> vector<2x128xf32>
    %317 = arith.addf %315, %316 : vector<2x128xf32>
    %cst_88 = arith.constant dense<0.000000e+00> : vector<2x128xf32>
    %318 = tpu.matmul %301, %3, %cst_88 {dimension_numbers = #tpu.dot_dimension_numbers<[1], [0], [0], [1], [0, 0, 1, 1], [], []>} : vector<2x32xf32>, vector<32x128xf32>, vector<2x128xf32> -> vector<2x128xf32>
    %319 = arith.addf %317, %318 : vector<2x128xf32>
    %320 = vector.extract_strided_slice %319 {offsets = [0, 0], sizes = [2, 32], strides = [1, 1]} : vector<2x128xf32> to vector<2x32xf32>
    %321 = arith.negf %320 : vector<2x32xf32>
    %322 = math.exp %321 : vector<2x32xf32>
    %cst_89 = arith.constant 1.000000e+00 : f32
    %323 = vector.broadcast %cst_89 : f32 to vector<2x32xf32>
    %324 = arith.addf %323, %322 : vector<2x32xf32>
    %325 = arith.divf %323, %324 : vector<2x32xf32>
    %326 = vector.extract_strided_slice %319 {offsets = [0, 32], sizes = [2, 32], strides = [1, 1]} : vector<2x128xf32> to vector<2x32xf32>
    %327 = arith.negf %326 : vector<2x32xf32>
    %328 = math.exp %327 : vector<2x32xf32>
    %cst_90 = arith.constant 1.000000e+00 : f32
    %329 = vector.broadcast %cst_90 : f32 to vector<2x32xf32>
    %330 = arith.addf %329, %328 : vector<2x32xf32>
    %331 = arith.divf %329, %330 : vector<2x32xf32>
    %332 = vector.extract_strided_slice %319 {offsets = [0, 64], sizes = [2, 32], strides = [1, 1]} : vector<2x128xf32> to vector<2x32xf32>
    %333 = math.tanh %332 : vector<2x32xf32>
    %334 = vector.extract_strided_slice %319 {offsets = [0, 96], sizes = [2, 32], strides = [1, 1]} : vector<2x128xf32> to vector<2x32xf32>
    %335 = arith.negf %334 : vector<2x32xf32>
    %336 = math.exp %335 : vector<2x32xf32>
    %cst_91 = arith.constant 1.000000e+00 : f32
    %337 = vector.broadcast %cst_91 : f32 to vector<2x32xf32>
    %338 = arith.addf %337, %336 : vector<2x32xf32>
    %339 = arith.divf %337, %338 : vector<2x32xf32>
    %340 = arith.mulf %331, %299 : vector<2x32xf32>
    %341 = arith.mulf %325, %333 : vector<2x32xf32>
    %342 = arith.addf %340, %341 : vector<2x32xf32>
    %343 = math.tanh %342 : vector<2x32xf32>
    %344 = arith.mulf %339, %343 : vector<2x32xf32>
    %c14 = arith.constant 14 : index
    %c0_92 = arith.constant 0 : index
    %345 = vector.load %arg10[%c14, %c0_92] : memref<16x32xf32, #tpu.memory_space<vmem>>, vector<2x32xf32>
    tpu.vector_store %arg10[%c14, %c0_92], %344 {strides = array<i32>} : memref<16x32xf32, #tpu.memory_space<vmem>>, vector<2x32xf32>,
    %c0_93 = arith.constant 0 : index
    %c0_94 = arith.constant 0 : index
    %346 = vector.load %arg10[%c0_93, %c0_94] : memref<16x32xf32, #tpu.memory_space<vmem>>, vector<16x32xf32>
    %c0_95 = arith.constant 0 : index
    %c0_96 = arith.constant 0 : index
    %347 = vector.load %arg7[%c0_95, %c0_96] : memref<32x16xf32, #tpu.memory_space<vmem>>, vector<32x16xf32>
    %cst_97 = arith.constant dense<0.000000e+00> : vector<16x16xf32>
    %348 = tpu.matmul %346, %347, %cst_97 {dimension_numbers = #tpu.dot_dimension_numbers<[1], [0], [0], [1], [0, 0, 1, 1], [], []>} : vector<16x32xf32>, vector<32x16xf32>, vector<16x16xf32> -> vector<16x16xf32>
    %c0_98 = arith.constant 0 : index
    %c0_99 = arith.constant 0 : index
    %349 = vector.load %arg8[%c0_98, %c0_99] : memref<1x16xf32, #tpu.memory_space<vmem>>, vector<1x16xf32>
    %350 = vector.broadcast %349 : vector<1x16xf32> to vector<16x16xf32>
    %351 = arith.addf %348, %350 : vector<16x16xf32>
    %c0_100 = arith.constant 0 : index
    %c0_101 = arith.constant 0 : index
    %352 = vector.load %arg9[%c0_100, %c0_101] : memref<16x16xf32, #tpu.memory_space<vmem>>, vector<16x16xf32>
    tpu.vector_store %arg9[%c0_100, %c0_101], %351 {strides = array<i32>} : memref<16x16xf32, #tpu.memory_space<vmem>>, vector<16x16xf32>,
    return
  }
}

</mosaic_0001>

<bundles_post_ra>
// kernel: attention_transcriber_forward.3
= control target key start
LH: loop header
LB: loop body
LE: loop exit
PB: predicated region body
PF: predicated region fallthrough
CT: control target
= control target key end

     0   :  { %v3698_v0 = vmov 0.0|0.0   ;;  %vm3699_vm0 = vmmov 0   ;;  %v3700_v4 = vmov 0.0   ;;  %vm56_vm1 = vcmask 130048   ;;  %s3701_s10 = smov 64   ;;  %s4214_s4 = inlined_call_operand.vmem [shape: f32[32,128], index: 4, kind: input, shape index: {}]   ;;  %s4215_s3 = inlined_call_operand.vmem [shape: f32[16,128], index: 3, kind: input, shape index: {}]   ;;  %s4216_s0 = inlined_call_operand.vmem [shape: f32[16,16], index: 0, kind: input, shape index: {}]   ;;  %s4217_s5 = inlined_call_operand.vmem [shape: f32[32,128], index: 5, kind: input, shape index: {}]   ;;  %s4218_s6 = inlined_call_operand.vmem [shape: f32[1,128], index: 6, kind: input, shape index: {}]   ;;  %s4219_s1 = inlined_call_operand.vmem [shape: f32[32,32], index: 1, kind: input, shape index: {}]   ;;  %s4220_s2 = inlined_call_operand.vmem [shape: f32[2,32], index: 2, kind: input, shape index: {}]   ;;  %s4221_s7 = inlined_call_operand.vmem [shape: f32[32,16], index: 7, kind: input, shape index: {}]   ;;  %s4222_s8 = inlined_call_operand.vmem [shape: f32[1,16], index: 8, kind: input, shape index: {}]   ;;  %s4223_s9 = inlined_call_operand.vmem [shape: f32[16,16], index: 9, kind: output, shape index: {}]  }
   0x1   :  { %3393 = vmatprep.subr.bf16.mxu1 %v3698_v0  ;;  %v36_v1 = vld [vmem:[%s4214_s4] sm:$0xff]  ;;  %v37_v2 = vld [vmem:[%s4214_s4 + $0x8] sm:$0xff]  ;;  %v38_v3 = vld [vmem:[%s4214_s4 + $0x10] sm:$0xff]  ;;  %3056 = vmatprep.mubr.msk.f32.mxu1 %vm3699_vm0, %v3700_v4  ;;  %vm138_vm2 = vcmask 261120   ;;  %vm395_vm4 = vcmask 254976   ;;  %vm823_vm5 = vcmask 257026  }
   0x2   :  { %v3765_v5 = vpack.c.bf16 %v37_v2, %v36_v1  ;;  %v39_v6 = vld [vmem:[%s4214_s4 + $0x18] sm:$0xff]  ;;  %v47_v7 = vld [vmem:[%s4215_s3] sm:$0xff]  ;;  %v48_v8 = vld [vmem:[%s4215_s3 + $0x8] sm:$0xff]  ;;  %vm1509_vm6 = vcmask 261126   ;;  %vm1166_vm7 = vcmask 259076  }
   0x3   :  { %v3389_v9 = vpack.c.bf16 %v48_v8, %v47_v7  ;;  %v45_v10 = vld [vmem:[%s4216_s0] sm:$0xff]  ;;  %v3780_v11 = vpack.c.bf16 %v39_v6, %v38_v3  ;;  %v41_v13 = vld [vmem:[%s4217_s5 + $0x8] sm:$0xff]  ;;  %v42_v16 = vld [vmem:[%s4217_s5 + $0x10] sm:$0xff] }
   0x4   :  { %3395 = vmatpush3.bf16.msra.mxu1 %v3765_v5  ;;  %3045 = vmatprep.mubr.msk.f32.mxu0 %vm56_vm1, %v45_v10  ;;  %v40_v12 = vld [vmem:[%s4217_s5] sm:$0xff]  ;;  %v46_v14 = vld [vmem:[%s4216_s0 + $0x8] sm:$0xff]  ;;  %v43_v17 = vld [vmem:[%s4217_s5 + $0x18] sm:$0xff] }
   0x5   :  { %3396 = vmatprep.subr.bf16.mxu1 %v3698_v0  ;;  %3390 = vmatprep.subr.bf16.mxu0 %v3389_v9  ;;  %v3795_v15 = vpack.c.bf16 %v41_v13, %v40_v12  ;;  %v3809_v18 = vpack.c.bf16 %v43_v17, %v42_v16  ;;  %v2811_v19 = vld [vmem:[%s4218_s6] ss:$0 sm:$0xff]  ;;  %s3702_s6 = smov 32   ;;  %v33_v38 = vld [vmem:[%s4219_s1 + $0x8] sm:$0xff]  ;;  %vm3840_vm3 = vmpackc.low %vm138_vm2, %vm138_vm2 }
   0x6   :  { %3392 = vmatpush3.bf16.msra.mxu0 %v3389_v9  ;;  %v32_v37 = vld [vmem:[%s4219_s1] sm:$0xff]  ;;  %v34_v41 = vld [vmem:[%s4219_s1 + $0x10] sm:$0xff]  ;;  %v35_v42 = vld [vmem:[%s4219_s1 + $0x18] sm:$0xff] }
   0x7   :  { %3405 = vmatprep.subr.bf16.mxu0 %v3698_v0  ;;  %v3844_v40 = vpack.c.bf16 %v33_v38, %v32_v37  ;;  %v3858_v43 = vpack.c.bf16 %v35_v42, %v34_v41  ;;  %v3879_v48 = vld [vmem:[%s4220_s2] sm:$0x3] }
   0x8   :  { %3398 = vmatpush3.bf16.msra.mxu1 %v3780_v11 }
   0x9   :  { %3399 = vmatprep.subr.bf16.mxu1 %v3698_v0  ;;  %3046 = vmatmul.mubr.msk.f32.vlgmr.msra.gmra.mrb[0].mxu0 %vm56_vm1, %v46_v14 }
   0xa   :  { %3078 = vmatprep.mubr.msk.f32.mxu0 %vm3699_vm0, %v3700_v4 }
   0xb   :  { %3057 = vmatmul.mubr.f32.vlgmr.msra.gmra.mrb[0].mxu1 %v3700_v4 }
   0xc   :  { %3401 = vmatpush3.bf16.msra.mxu1 %v3795_v15  ;;  %3067 = vmatprep.mubr.msk.f32.mxu1 %vm3699_vm0, %v3700_v4 }
   0xd   :  { %3402 = vmatprep.subr.bf16.mxu1 %v3698_v0 }
   0xf   :  { %3408 = vmatpush3.bf16.xpose.msk.msra.mxu0 %vm3840_vm3, %v3844_v40 }
  0x10   :  { %3404 = vmatpush3.bf16.msra.mxu1 %v3809_v18  ;;  %3409 = vmatprep.subr.bf16.mxu0 %v3698_v0 }
  0x11   :  { %3413 = vmatprep.subr.bf16.mxu1 %v3698_v0 }
  0x13   :  { %3068 = vmatmul.mubr.f32.vlgmr.msra.gmra.mrb[0].mxu1 %v3700_v4 }
  0x14   :  { %3089 = vmatprep.mubr.msk.f32.mxu1 %vm3699_vm0, %v3700_v4  ;;  %3415 = vmatpush3.bf16.msra.mxu1 %v3844_v40 }
  0x15   :  { %3416 = vmatprep.subr.bf16.mxu1 %v3698_v0 }
  0x17   :  { %3412 = vmatpush3.bf16.xpose.msk.msra.mxu0 %vm3840_vm3, %v3858_v43 }
  0x18   :  { %3418 = vmatpush3.bf16.msra.mxu1 %v3858_v43  ;;  %3419 = vmatprep.subr.bf16.mxu0 %v3698_v0 }
  0x19   :  { %3425 = vmatprep.subr.bf16.mxu1 %v3698_v0 }
  0xdc   :  { %v3047_v20 = vpop.f32.mrb[0].mxu0 }
  0xdd   :  { %v3822_v21 = vadd.f32 %v3047_v20, %v2811_v19  ;;  %v129_v22 = vpop.f32.mrb[1].mxu0 }
  0xde   :  { %v3824_v23 = vadd.f32 %v2811_v19, %v129_v22 }
  0xe6   :  { %v279_v24 = vpop.f32.mrb[0].mxu1 }
  0xe7   :  { %v3595_v25 = vadd.f32 %v279_v24, %v3824_v23  ;;  %v3069_v26 = vpop.f32.mrb[1].mxu1 }
  0xe9   :  { %3606 = vtanh.f32 %v3595_v25  ;;  %v2814_v28 = vmul.f32 -1.442695, %v3595_v25 }
  0xeb   :  { %3608 = vpow2.f32 %v2814_v28 }
  0xf3   :  { %v3607_v27 = vpop.eup %3606 }
  0xf4   :  { %293 = vrot.lane.b32.xlu0 %v3607_v27, %s3701_s10 }
  0xf5   :  { %v3609_v29 = vpop.eup %3608 }
  0xf6   :  { %v287_v30 = vadd.f32 1.0, %v3609_v29 }
  0xf8   :  { %3610 = vrcp.f32 %v287_v30 }
 0x102   :  { %v3611_v31 = vpop.eup %3610 }
 0x103   :  { %v291_v34 = vmul.f32 0.0, %v3611_v31 }
 0x166   :  { %v294_v32 = vpop.permute.xlu0 %293 }
 0x167   :  { %v296_v33 = vmul.f32 %v3611_v31, %v294_v32 }
 0x169   :  { %298 = vrot.lane.b32.xlu0 %v296_v33, %s3702_s6 }
 0x1db   :  { %v299_v35 = vpop.permute.xlu0 %298 }
 0x1dc   :  { %v3829_v36 = vadd.f32 %v299_v35, %v291_v34 }
 0x1de   :  { %3612 = vtanh.f32 %v3829_v36  ;;  %v641_v20 = vrot.slane %v3829_v36, 6 }
 0x1e8   :  { %v3613_v44 = vpop.eup %3612 }
 0x1e9   :  { %304 = vrot.lane.b32.xlu1 %v3613_v44, %s3701_s10 }
 0x25b   :  { %v305_v45 = vpop.permute.xlu1 %304 }
 0x25c   :  { %v307_v46 = vmul.f32 %v3611_v31, %v305_v45 }
 0x25e   :  { %309 = vrot.lane.b32.xlu1 %v307_v46, %s3702_s6 }
 0x2d0   :  { %v310_v47 = vpop.permute.xlu1 %309 }
 0x2d1   :  { %481 = vst.msk [vmem:[#allocation2] sm:$0x3] %vm395_vm4, %v310_v47  ;;  %3079 = vmatmul.mubr.msk.f32.vlgmr.msra.gmra.mrb[2].mxu0 %vm138_vm2, %v310_v47 }
 0x2d2   :  { %3421 = vmatpush3.bf16.msra.mxu0 %v3765_v5  ;;  %3100 = vmatprep.mubr.msk.f32.mxu0 %vm3699_vm0, %v3700_v4 }
 0x2d3   :  { %3422 = vmatprep.subr.bf16.mxu0 %v3698_v0 }
 0x2d6   :  { %3424 = vmatpush3.bf16.msra.mxu0 %v3780_v11 }
 0x2d7   :  { %3431 = vmatprep.subr.bf16.mxu0 %v3698_v0 }
 0x3a4   :  { %v391_v49 = vpop.f32.mrb[2].mxu0 }
 0x3a5   :  { %v392_v50 = vadd.f32 %v391_v49, %v3879_v48  ;;  %v3080_v51 = vpop.f32.mrb[3].mxu0 }
 0x3a7   :  { %v396_v52 = vsel %vm395_vm4, %v392_v50, -inf }
 0x3a8   :  { %397 = vmax.xlane.f32.xlu0 %v396_v52 }
 0x435   :  { %v398_v53 = vpop.xlane.xlu0 %397 }
 0x436   :  { %v399_v54 = vsub.f32 %v392_v50, %v398_v53 }
 0x438   :  { %v400_v55 = vmul.f32 1.442695, %v399_v54 }
 0x43a   :  { %3614 = vpow2.f32 %v400_v55 }
 0x444   :  { %v3615_v56 = vpop.eup %3614 }
 0x445   :  { %v402_v57 = vsel %vm395_vm4, %v3615_v56, 0.0 }
 0x446   :  { %403 = vadd.xlane.f32.xlu1 %v402_v57 }
 0x4d3   :  { %v404_v58 = vpop.xlane.xlu1 %403 }
 0x4d4   :  { %3616 = vrcp.f32 %v404_v58 }
 0x4de   :  { %v3617_v59 = vpop.eup %3616 }
 0x4df   :  { %v406_v60 = vmul.f32 %v3617_v59, %v3615_v56 }
 0x4e1   :  { %3090 = vmatmul.mubr.msk.f32.vlgmr.msra.gmra.mrb[2].mxu1 %vm138_vm2, %v406_v60 }
 0x4e2   :  { %3427 = vmatpush3.bf16.msra.mxu1 %v3795_v15  ;;  %3111 = vmatprep.mubr.msk.f32.mxu1 %vm3699_vm0, %v3700_v4 }
 0x4e3   :  { %3428 = vmatprep.subr.bf16.mxu1 %v3698_v0 }
 0x4e6   :  { %3430 = vmatpush3.bf16.msra.mxu1 %v3809_v18 }
 0x4e7   :  { %3439 = vmatprep.subr.bf16.mxu1 %v3698_v0 }
 0x4e9   :  { %3112 = vmatmul.mubr.msk.f32.vlgmr.msra.gmra.mrb[4].mxu1 %vm138_vm2, %v310_v47 }
 0x4ea   :  { %3441 = vmatpush3.bf16.msra.mxu1 %v3844_v40  ;;  %3133 = vmatprep.mubr.msk.f32.mxu1 %vm3699_vm0, %v3700_v4 }
 0x4eb   :  { %3442 = vmatprep.subr.bf16.mxu1 %v3698_v0 }
 0x4ee   :  { %3444 = vmatpush3.bf16.msra.mxu1 %v3858_v43 }
 0x4ef   :  { %3445 = vmatprep.subr.bf16.mxu1 %v3698_v0 }
 0x5b4   :  { %v476_v61 = vpop.f32.mrb[2].mxu1 }
 0x5b5   :  { %v3091_v62 = vpop.f32.mrb[3].mxu1  ;;  %3101 = vmatmul.mubr.msk.f32.vlgmr.msra.gmra.mrb[4].mxu0 %vm138_vm2, %v476_v61 }
 0x5b6   :  { %3434 = vmatpush3.bf16.xpose.msk.msra.mxu0 %vm3840_vm3, %v3844_v40  ;;  %3122 = vmatprep.mubr.msk.f32.mxu0 %vm3699_vm0, %v3700_v4 }
 0x5b7   :  { %3435 = vmatprep.subr.bf16.mxu0 %v3698_v0 }
 0x5bc   :  { %v625_v63 = vpop.f32.mrb[4].mxu1 }
 0x5bd   :  { %v3113_v1 = vpop.f32.mrb[5].mxu1  ;;  %v630_v7 = vrot.slane %v625_v63, 6 }
 0x5be   :  { %3438 = vmatpush3.bf16.xpose.msk.msra.mxu0 %vm3840_vm3, %v3858_v43 }
 0x5bf   :  { %3451 = vmatprep.subr.bf16.mxu0 %v3698_v0 }
 0x688   :  { %v551_v2 = vpop.f32.mrb[4].mxu0 }
 0x689   :  { %v556_v3 = vrot.slane %v551_v2, 6  ;;  %v3102_v6 = vpop.f32.mrb[5].mxu0 }
 0x68b   :  { %v558_v8 = vadd.f32 %v556_v3, %v3824_v23 }
 0x68d   :  { %v632_v9 = vadd.f32 %v630_v7, %v558_v8 }
 0x68f   :  { %3618 = vtanh.f32 %v632_v9  ;;  %v2823_v12 = vmul.f32 -1.442695, %v632_v9 }
 0x691   :  { %3620 = vpow2.f32 %v2823_v12 }
 0x699   :  { %v3619_v10 = vpop.eup %3618 }
 0x69a   :  { %645 = vrot.lane.b32.xlu0 %v3619_v10, %s3701_s10 }
 0x69b   :  { %v3621_v13 = vpop.eup %3620 }
 0x69c   :  { %v636_v14 = vadd.f32 1.0, %v3621_v13 }
 0x69e   :  { %3622 = vrcp.f32 %v636_v14 }
 0x6a8   :  { %v3623_v16 = vpop.eup %3622 }
 0x6a9   :  { %v643_v22 = vmul.f32 %v3623_v16, %v641_v20 }
 0x70c   :  { %v646_v17 = vpop.permute.xlu0 %645 }
 0x70d   :  { %v648_v19 = vmul.f32 %v3623_v16, %v646_v17 }
 0x70f   :  { %650 = vrot.lane.b32.xlu1 %v648_v19, %s3702_s6 }
 0x781   :  { %v651_v24 = vpop.permute.xlu1 %650 }
 0x782   :  { %v3913_v25 = vadd.f32 %v651_v24, %v643_v22 }
 0x784   :  { %3624 = vtanh.f32 %v3913_v25  ;;  %v984_v1 = vrot.slane %v3913_v25, 6 }
 0x78e   :  { %v3625_v26 = vpop.eup %3624 }
 0x78f   :  { %656 = vrot.lane.b32.xlu0 %v3625_v26, %s3701_s10 }
 0x801   :  { %v657_v27 = vpop.permute.xlu0 %656 }
 0x802   :  { %v3917_v28 = vmul.f32 %v3623_v16, %v657_v27 }
 0x804   :  { %v661_v29 = vrot.slane %v3917_v28, 2 }
 0x806   :  { %662 = vrot.lane.b32.xlu1 %v661_v29, %s3702_s6 }
 0x878   :  { %v663_v30 = vpop.permute.xlu1 %662 }
 0x879   :  { %3123 = vmatmul.mubr.msk.f32.vlgmr.msra.gmra.mrb[6].mxu0 %vm138_vm2, %v663_v30 }
 0x87a   :  { %3453 = vmatpush3.bf16.msra.mxu0 %v3795_v15  ;;  %3155 = vmatprep.mubr.msk.f32.mxu0 %vm3699_vm0, %v3700_v4 }
 0x87b   :  { %3454 = vmatprep.subr.bf16.mxu0 %v3698_v0 }
 0x87e   :  { %3456 = vmatpush3.bf16.msra.mxu0 %v3809_v18 }
 0x87f   :  { %3465 = vmatprep.subr.bf16.mxu0 %v3698_v0 }
 0x881   :  { %3156 = vmatmul.mubr.msk.f32.vlgmr.msra.gmra.mrb[8].mxu0 %vm138_vm2, %v663_v30 }
 0x882   :  { %3467 = vmatpush3.bf16.msra.mxu0 %v3844_v40  ;;  %3177 = vmatprep.mubr.msk.f32.mxu0 %vm3699_vm0, %v3700_v4 }
 0x883   :  { %3468 = vmatprep.subr.bf16.mxu0 %v3698_v0 }
 0x886   :  { %3470 = vmatpush3.bf16.msra.mxu0 %v3858_v43 }
 0x887   :  { %3471 = vmatprep.subr.bf16.mxu0 %v3698_v0 }
 0x94c   :  { %v732_v31 = vpop.f32.mrb[6].mxu0 }
 0x94d   :  { %v733_v32 = vadd.f32 %v732_v31, %v3879_v48  ;;  %v3124_v33 = vpop.f32.mrb[7].mxu0 }
 0x94f   :  { %v736_v34 = vsel %vm395_vm4, %v733_v32, -inf }
 0x950   :  { %737 = vmax.xlane.f32.xlu0 %v736_v34 }
 0x954   :  { %v968_v35 = vpop.f32.mrb[8].mxu0 }
 0x955   :  { %v3157_v36 = vpop.f32.mrb[9].mxu0  ;;  %v973_v54 = vrot.slane %v968_v35, 4 }
 0x9dd   :  { %v738_v37 = vpop.xlane.xlu0 %737 }
 0x9de   :  { %v739_v38 = vsub.f32 %v733_v32, %v738_v37 }
 0x9e0   :  { %v740_v41 = vmul.f32 1.442695, %v739_v38 }
 0x9e2   :  { %3626 = vpow2.f32 %v740_v41 }
 0x9ec   :  { %v3627_v42 = vpop.eup %3626 }
 0x9ed   :  { %v742_v44 = vsel %vm395_vm4, %v3627_v42, 0.0 }
 0x9ee   :  { %743 = vadd.xlane.f32.xlu1 %v742_v44 }
 0xa7b   :  { %v744_v45 = vpop.xlane.xlu1 %743 }
 0xa7c   :  { %3628 = vrcp.f32 %v744_v45 }
 0xa86   :  { %v3629_v46 = vpop.eup %3628 }
 0xa87   :  { %v746_v47 = vmul.f32 %v3629_v46, %v3627_v42 }
 0xa89   :  { %3134 = vmatmul.mubr.msk.f32.vlgmr.msra.gmra.mrb[6].mxu1 %vm138_vm2, %v746_v47 }
 0xa8a   :  { %3447 = vmatpush3.bf16.msra.mxu1 %v3765_v5  ;;  %3144 = vmatprep.mubr.msk.f32.mxu1 %vm3699_vm0, %v3700_v4 }
 0xa8b   :  { %3448 = vmatprep.subr.bf16.mxu1 %v3698_v0 }
 0xa8e   :  { %3450 = vmatpush3.bf16.msra.mxu1 %v3780_v11 }
 0xa8f   :  { %3457 = vmatprep.subr.bf16.mxu1 %v3698_v0 }
 0xb5c   :  { %v816_v49 = vpop.f32.mrb[6].mxu1 }
 0xb5d   :  { %v3135_v50 = vpop.f32.mrb[7].mxu1  ;;  %3145 = vmatmul.mubr.msk.f32.vlgmr.msra.gmra.mrb[8].mxu1 %vm138_vm2, %v816_v49 }
 0xb5e   :  { %3460 = vmatpush3.bf16.xpose.msk.msra.mxu1 %vm3840_vm3, %v3844_v40  ;;  %3166 = vmatprep.mubr.msk.f32.mxu1 %vm3699_vm0, %v3700_v4 }
 0xb5f   :  { %3461 = vmatprep.subr.bf16.mxu1 %v3698_v0 }
 0xb66   :  { %3464 = vmatpush3.bf16.xpose.msk.msra.mxu1 %vm3840_vm3, %v3858_v43 }
 0xb67   :  { %3477 = vmatprep.subr.bf16.mxu1 %v3698_v0 }
 0xc30   :  { %v894_v51 = vpop.f32.mrb[8].mxu1 }
 0xc31   :  { %v899_v52 = vrot.slane %v894_v51, 4  ;;  %v3146_v53 = vpop.f32.mrb[9].mxu1 }
 0xc33   :  { %v901_v55 = vadd.f32 %v899_v52, %v3824_v23 }
 0xc35   :  { %v975_v56 = vadd.f32 %v973_v54, %v901_v55 }
 0xc37   :  { %3630 = vtanh.f32 %v975_v56  ;;  %v2832_v58 = vmul.f32 -1.442695, %v975_v56 }
 0xc39   :  { %3632 = vpow2.f32 %v2832_v58 }
 0xc41   :  { %v3631_v57 = vpop.eup %3630 }
 0xc42   :  { %988 = vrot.lane.b32.xlu0 %v3631_v57, %s3701_s10 }
 0xc43   :  { %v3633_v59 = vpop.eup %3632 }
 0xc44   :  { %v979_v60 = vadd.f32 1.0, %v3633_v59 }
 0xc46   :  { %3634 = vrcp.f32 %v979_v60 }
 0xc50   :  { %v3635_v61 = vpop.eup %3634 }
 0xc51   :  { %v986_v2 = vmul.f32 %v3635_v61, %v984_v1 }
 0xcb4   :  { %v989_v62 = vpop.permute.xlu0 %988 }
 0xcb5   :  { %v991_v63 = vmul.f32 %v3635_v61, %v989_v62 }
 0xcb7   :  { %993 = vrot.lane.b32.xlu1 %v991_v63, %s3702_s6 }
 0xd29   :  { %v994_v3 = vpop.permute.xlu1 %993 }
 0xd2a   :  { %v3960_v6 = vadd.f32 %v994_v3, %v986_v2 }
 0xd2c   :  { %3636 = vtanh.f32 %v3960_v6  ;;  %v1327_v51 = vrot.slane %v3960_v6, 6 }
 0xd36   :  { %v3637_v7 = vpop.eup %3636 }
 0xd37   :  { %999 = vrot.lane.b32.xlu0 %v3637_v7, %s3701_s10 }
 0xda9   :  { %v1000_v8 = vpop.permute.xlu0 %999 }
 0xdaa   :  { %v3964_v9 = vmul.f32 %v3635_v61, %v1000_v8 }
 0xdac   :  { %v1004_v10 = vrot.slane %v3964_v9, 4 }
 0xdae   :  { %1005 = vrot.lane.b32.xlu1 %v1004_v10, %s3702_s6 }
 0xe20   :  { %v1006_v12 = vpop.permute.xlu1 %1005 }
 0xe21   :  { %3167 = vmatmul.mubr.msk.f32.vlgmr.msra.gmra.mrb[10].mxu1 %vm138_vm2, %v1006_v12 }
 0xe22   :  { %3479 = vmatpush3.bf16.msra.mxu1 %v3795_v15  ;;  %3199 = vmatprep.mubr.msk.f32.mxu1 %vm3699_vm0, %v3700_v4 }
 0xe23   :  { %3480 = vmatprep.subr.bf16.mxu1 %v3698_v0 }
 0xe26   :  { %3482 = vmatpush3.bf16.msra.mxu1 %v3809_v18 }
 0xe27   :  { %3491 = vmatprep.subr.bf16.mxu1 %v3698_v0 }
 0xe29   :  { %3200 = vmatmul.mubr.msk.f32.vlgmr.msra.gmra.mrb[12].mxu1 %vm138_vm2, %v1006_v12 }
 0xe2a   :  { %3493 = vmatpush3.bf16.msra.mxu1 %v3844_v40  ;;  %3221 = vmatprep.mubr.msk.f32.mxu1 %vm3699_vm0, %v3700_v4 }
 0xe2b   :  { %3494 = vmatprep.subr.bf16.mxu1 %v3698_v0 }
 0xe2e   :  { %3496 = vmatpush3.bf16.msra.mxu1 %v3858_v43 }
 0xe2f   :  { %3497 = vmatprep.subr.bf16.mxu1 %v3698_v0 }
 0xef4   :  { %v1075_v13 = vpop.f32.mrb[10].mxu1 }
 0xef5   :  { %v1076_v14 = vadd.f32 %v1075_v13, %v3879_v48  ;;  %v3168_v16 = vpop.f32.mrb[11].mxu1 }
 0xef7   :  { %v1079_v17 = vsel %vm395_vm4, %v1076_v14, -inf }
 0xef8   :  { %1080 = vmax.xlane.f32.xlu0 %v1079_v17 }
 0xefc   :  { %v1311_v19 = vpop.f32.mrb[12].mxu1 }
 0xefd   :  { %v3201_v20 = vpop.f32.mrb[13].mxu1  ;;  %v1316_v37 = vrot.slane %v1311_v19, 2 }
 0xf85   :  { %v1081_v22 = vpop.xlane.xlu0 %1080 }
 0xf86   :  { %v1082_v24 = vsub.f32 %v1076_v14, %v1081_v22 }
 0xf88   :  { %v1083_v25 = vmul.f32 1.442695, %v1082_v24 }
 0xf8a   :  { %3638 = vpow2.f32 %v1083_v25 }
 0xf94   :  { %v3639_v26 = vpop.eup %3638 }
 0xf95   :  { %v1085_v27 = vsel %vm395_vm4, %v3639_v26, 0.0 }
 0xf96   :  { %1086 = vadd.xlane.f32.xlu1 %v1085_v27 }
0x1023   :  { %v1087_v29 = vpop.xlane.xlu1 %1086 }
0x1024   :  { %3640 = vrcp.f32 %v1087_v29 }
0x102e   :  { %v3641_v30 = vpop.eup %3640 }
0x102f   :  { %v1089_v31 = vmul.f32 %v3641_v30, %v3639_v26 }
0x1031   :  { %3178 = vmatmul.mubr.msk.f32.vlgmr.msra.gmra.mrb[10].mxu0 %vm138_vm2, %v1089_v31 }
0x1032   :  { %3473 = vmatpush3.bf16.msra.mxu0 %v3765_v5  ;;  %3188 = vmatprep.mubr.msk.f32.mxu0 %vm3699_vm0, %v3700_v4 }
0x1033   :  { %3474 = vmatprep.subr.bf16.mxu0 %v3698_v0 }
0x1036   :  { %3476 = vmatpush3.bf16.msra.mxu0 %v3780_v11 }
0x1037   :  { %3483 = vmatprep.subr.bf16.mxu0 %v3698_v0 }
0x1104   :  { %v1159_v32 = vpop.f32.mrb[10].mxu0 }
0x1105   :  { %v3179_v33 = vpop.f32.mrb[11].mxu0  ;;  %3189 = vmatmul.mubr.msk.f32.vlgmr.msra.gmra.mrb[12].mxu0 %vm138_vm2, %v1159_v32 }
0x1106   :  { %3486 = vmatpush3.bf16.xpose.msk.msra.mxu0 %vm3840_vm3, %v3844_v40  ;;  %3210 = vmatprep.mubr.msk.f32.mxu0 %vm3699_vm0, %v3700_v4 }
0x1107   :  { %3487 = vmatprep.subr.bf16.mxu0 %v3698_v0 }
0x110e   :  { %3490 = vmatpush3.bf16.xpose.msk.msra.mxu0 %vm3840_vm3, %v3858_v43 }
0x110f   :  { %3509 = vmatprep.subr.bf16.mxu0 %v3698_v0 }
0x11d8   :  { %v1237_v34 = vpop.f32.mrb[12].mxu0 }
0x11d9   :  { %v1242_v35 = vrot.slane %v1237_v34, 2  ;;  %v3190_v36 = vpop.f32.mrb[13].mxu0 }
0x11db   :  { %v1244_v38 = vadd.f32 %v1242_v35, %v3824_v23 }
0x11dd   :  { %v1318_v41 = vadd.f32 %v1316_v37, %v1244_v38 }
0x11df   :  { %3642 = vtanh.f32 %v1318_v41  ;;  %v2841_v44 = vmul.f32 -1.442695, %v1318_v41 }
0x11e1   :  { %3644 = vpow2.f32 %v2841_v44 }
0x11e9   :  { %v3643_v42 = vpop.eup %3642 }
0x11ea   :  { %1331 = vrot.lane.b32.xlu0 %v3643_v42, %s3701_s10 }
0x11eb   :  { %v3645_v45 = vpop.eup %3644 }
0x11ec   :  { %v1322_v46 = vadd.f32 1.0, %v3645_v45 }
0x11ee   :  { %3646 = vrcp.f32 %v1322_v46 }
0x11f8   :  { %v3647_v47 = vpop.eup %3646 }
0x11f9   :  { %v1329_v52 = vmul.f32 %v3647_v47, %v1327_v51 }
0x125c   :  { %v1332_v49 = vpop.permute.xlu0 %1331 }
0x125d   :  { %v1334_v50 = vmul.f32 %v3647_v47, %v1332_v49 }
0x125f   :  { %1336 = vrot.lane.b32.xlu1 %v1334_v50, %s3702_s6 }
0x12d1   :  { %v1337_v53 = vpop.permute.xlu1 %1336 }
0x12d2   :  { %v4007_v23 = vadd.f32 %v1337_v53, %v1329_v52 }
0x12d4   :  { %3648 = vtanh.f32 %v4007_v23  ;;  %v1664_v29 = vrot.slane %v4007_v23, 6 }
0x12de   :  { %v3649_v54 = vpop.eup %3648 }
0x12df   :  { %1342 = vrot.lane.b32.xlu0 %v3649_v54, %s3701_s10 }
0x1351   :  { %v1343_v55 = vpop.permute.xlu0 %1342 }
0x1352   :  { %v4011_v56 = vmul.f32 %v3647_v47, %v1343_v55 }
0x1354   :  { %v1347_v57 = vrot.slane %v4011_v56, 6 }
0x1356   :  { %1348 = vrot.lane.b32.xlu1 %v1347_v57, %s3702_s6 }
0x13c8   :  { %v1349_v58 = vpop.permute.xlu1 %1348 }
0x13c9   :  { %3211 = vmatmul.mubr.msk.f32.vlgmr.msra.gmra.mrb[14].mxu0 %vm138_vm2, %v1349_v58 }
0x13ca   :  { %3512 = vmatpush3.bf16.xpose.msk.msra.mxu0 %vm3840_vm3, %v3844_v40  ;;  %3254 = vmatprep.mubr.msk.f32.mxu0 %vm3699_vm0, %v3700_v4 }
0x13cb   :  { %3513 = vmatprep.subr.bf16.mxu0 %v3698_v0 }
0x13d2   :  { %3516 = vmatpush3.bf16.xpose.msk.msra.mxu0 %vm3840_vm3, %v3858_v43 }
0x13d3   :  { %3523 = vmatprep.subr.bf16.mxu0 %v3698_v0 }
0x149c   :  { %v1418_v59 = vpop.f32.mrb[14].mxu0 }
0x149d   :  { %v1419_v60 = vadd.f32 %v1418_v59, %v3879_v48  ;;  %v3212_v61 = vpop.f32.mrb[15].mxu0 }
0x149f   :  { %v1422_v62 = vsel %vm395_vm4, %v1419_v60, -inf }
0x14a0   :  { %1423 = vmax.xlane.f32.xlu0 %v1422_v62 }
0x152d   :  { %v1424_v63 = vpop.xlane.xlu0 %1423 }
0x152e   :  { %v1425_v1 = vsub.f32 %v1419_v60, %v1424_v63 }
0x1530   :  { %v1426_v2 = vmul.f32 1.442695, %v1425_v1 }
0x1532   :  { %3650 = vpow2.f32 %v1426_v2 }
0x153c   :  { %v3651_v3 = vpop.eup %3650 }
0x153d   :  { %v1428_v6 = vsel %vm395_vm4, %v3651_v3, 0.0 }
0x153e   :  { %1429 = vadd.xlane.f32.xlu1 %v1428_v6 }
0x15cb   :  { %v1430_v7 = vpop.xlane.xlu1 %1429 }
0x15cc   :  { %3652 = vrcp.f32 %v1430_v7 }
0x15d6   :  { %v3653_v8 = vpop.eup %3652 }
0x15d7   :  { %v1432_v10 = vmul.f32 %v3653_v8, %v3651_v3 }
0x15d9   :  { %3222 = vmatmul.mubr.msk.f32.vlgmr.msra.gmra.mrb[14].mxu1 %vm138_vm2, %v1432_v10 }
0x15da   :  { %3499 = vmatpush3.bf16.msra.mxu1 %v3765_v5  ;;  %3232 = vmatprep.mubr.msk.f32.mxu1 %vm3699_vm0, %v3700_v4 }
0x15db   :  { %3500 = vmatprep.subr.bf16.mxu1 %v3698_v0 }
0x15de   :  { %3502 = vmatpush3.bf16.msra.mxu1 %v3780_v11 }
0x15df   :  { %3503 = vmatprep.subr.bf16.mxu1 %v3698_v0 }
0x16ac   :  { %v1502_v12 = vpop.f32.mrb[14].mxu1 }
0x16ad   :  { %v3223_v13 = vpop.f32.mrb[15].mxu1  ;;  %3233 = vmatmul.mubr.msk.f32.vlgmr.msra.gmra.mrb[16].mxu1 %vm138_vm2, %v1502_v12 }
0x16ae   :  { %3505 = vmatpush3.bf16.msra.mxu1 %v3795_v15  ;;  %3243 = vmatprep.mubr.msk.f32.mxu1 %vm3699_vm0, %v3700_v4 }
0x16af   :  { %3506 = vmatprep.subr.bf16.mxu1 %v3698_v0 }
0x16b2   :  { %3508 = vmatpush3.bf16.msra.mxu1 %v3809_v18 }
0x16b3   :  { %3517 = vmatprep.subr.bf16.mxu1 %v3698_v0 }
0x16b5   :  { %3244 = vmatmul.mubr.msk.f32.vlgmr.msra.gmra.mrb[16].mxu1 %vm138_vm2, %v1349_v58 }
0x16b6   :  { %3519 = vmatpush3.bf16.msra.mxu1 %v3844_v40  ;;  %3265 = vmatprep.mubr.msk.f32.mxu1 %vm3699_vm0, %v3700_v4 }
0x16b7   :  { %3520 = vmatprep.subr.bf16.mxu1 %v3698_v0 }
0x16ba   :  { %3522 = vmatpush3.bf16.msra.mxu1 %v3858_v43 }
0x16bb   :  { %3529 = vmatprep.subr.bf16.mxu1 %v3698_v0 }
0x1788   :  { %v1651_v14 = vpop.f32.mrb[16].mxu1 }
0x1789   :  { %v3596_v16 = vadd.f32 %v1651_v14, %v3822_v21  ;;  %v3245_v17 = vpop.f32.mrb[17].mxu1 }
0x178b   :  { %3654 = vtanh.f32 %v3596_v16  ;;  %v2850_v20 = vmul.f32 -1.442695, %v3596_v16 }
0x178d   :  { %3656 = vpow2.f32 %v2850_v20 }
0x1795   :  { %v3655_v19 = vpop.eup %3654 }
0x1796   :  { %1668 = vrot.lane.b32.xlu0 %v3655_v19, %s3701_s10 }
0x1797   :  { %v3657_v22 = vpop.eup %3656 }
0x1798   :  { %v1659_v24 = vadd.f32 1.0, %v3657_v22 }
0x179a   :  { %3658 = vrcp.f32 %v1659_v24 }
0x17a4   :  { %v3659_v25 = vpop.eup %3658 }
0x17a5   :  { %v1666_v30 = vmul.f32 %v3659_v25, %v1664_v29 }
0x1808   :  { %v1669_v26 = vpop.permute.xlu0 %1668 }
0x1809   :  { %v1671_v27 = vmul.f32 %v3659_v25, %v1669_v26 }
0x180b   :  { %1673 = vrot.lane.b32.xlu1 %v1671_v27, %s3702_s6 }
0x187d   :  { %v1674_v31 = vpop.permute.xlu1 %1673 }
0x187e   :  { %v4054_v32 = vadd.f32 %v1674_v31, %v1666_v30 }
0x1880   :  { %3660 = vtanh.f32 %v4054_v32  ;;  %v2003_v10 = vrot.slane %v4054_v32, 6 }
0x188a   :  { %v3661_v33 = vpop.eup %3660 }
0x188b   :  { %1679 = vrot.lane.b32.xlu0 %v3661_v33, %s3701_s10 }
0x18fd   :  { %v1680_v34 = vpop.permute.xlu0 %1679 }
0x18fe   :  { %v1682_v35 = vmul.f32 %v3659_v25, %v1680_v34 }
0x1900   :  { %1684 = vrot.lane.b32.xlu1 %v1682_v35, %s3702_s6 }
0x1972   :  { %v1685_v36 = vpop.permute.xlu1 %1684 }
0x1973   :  { %1843 = vst.msk [vmem:[#allocation2 + $0x8] sm:$0x3] %vm395_vm4, %v1685_v36  ;;  %3255 = vmatmul.mubr.msk.f32.vlgmr.msra.gmra.mrb[16].mxu0 %vm138_vm2, %v1685_v36 }
0x1974   :  { %3525 = vmatpush3.bf16.msra.mxu0 %v3765_v5  ;;  %3276 = vmatprep.mubr.msk.f32.mxu0 %vm3699_vm0, %v3700_v4 }
0x1975   :  { %3526 = vmatprep.subr.bf16.mxu0 %v3698_v0 }
0x1978   :  { %3528 = vmatpush3.bf16.msra.mxu0 %v3780_v11 }
0x1979   :  { %3535 = vmatprep.subr.bf16.mxu0 %v3698_v0 }
0x1a46   :  { %v1754_v37 = vpop.f32.mrb[16].mxu0 }
0x1a47   :  { %v1755_v38 = vadd.f32 %v1754_v37, %v3879_v48  ;;  %v3256_v41 = vpop.f32.mrb[17].mxu0 }
0x1a49   :  { %v1758_v42 = vsel %vm395_vm4, %v1755_v38, -inf }
0x1a4a   :  { %1759 = vmax.xlane.f32.xlu0 %v1758_v42 }
0x1ad7   :  { %v1760_v44 = vpop.xlane.xlu0 %1759 }
0x1ad8   :  { %v1761_v45 = vsub.f32 %v1755_v38, %v1760_v44 }
0x1ada   :  { %v1762_v46 = vmul.f32 1.442695, %v1761_v45 }
0x1adc   :  { %3662 = vpow2.f32 %v1762_v46 }
0x1ae6   :  { %v3663_v47 = vpop.eup %3662 }
0x1ae7   :  { %v1764_v49 = vsel %vm395_vm4, %v3663_v47, 0.0 }
0x1ae8   :  { %1765 = vadd.xlane.f32.xlu1 %v1764_v49 }
0x1b75   :  { %v1766_v50 = vpop.xlane.xlu1 %1765 }
0x1b76   :  { %3664 = vrcp.f32 %v1766_v50 }
0x1b80   :  { %v3665_v51 = vpop.eup %3664 }
0x1b81   :  { %v1768_v52 = vmul.f32 %v3665_v51, %v3663_v47 }
0x1b83   :  { %3266 = vmatmul.mubr.msk.f32.vlgmr.msra.gmra.mrb[18].mxu1 %vm138_vm2, %v1768_v52 }
0x1b84   :  { %3531 = vmatpush3.bf16.msra.mxu1 %v3795_v15  ;;  %3287 = vmatprep.mubr.msk.f32.mxu1 %vm3699_vm0, %v3700_v4 }
0x1b85   :  { %3532 = vmatprep.subr.bf16.mxu1 %v3698_v0 }
0x1b88   :  { %3534 = vmatpush3.bf16.msra.mxu1 %v3809_v18 }
0x1b89   :  { %3543 = vmatprep.subr.bf16.mxu1 %v3698_v0 }
0x1b8b   :  { %3288 = vmatmul.mubr.msk.f32.vlgmr.msra.gmra.mrb[20].mxu1 %vm138_vm2, %v1685_v36 }
0x1b8c   :  { %3545 = vmatpush3.bf16.msra.mxu1 %v3844_v40  ;;  %3309 = vmatprep.mubr.msk.f32.mxu1 %vm3699_vm0, %v3700_v4 }
0x1b8d   :  { %3546 = vmatprep.subr.bf16.mxu1 %v3698_v0 }
0x1b90   :  { %3548 = vmatpush3.bf16.msra.mxu1 %v3858_v43 }
0x1b91   :  { %3549 = vmatprep.subr.bf16.mxu1 %v3698_v0 }
0x1c56   :  { %v1838_v53 = vpop.f32.mrb[18].mxu1 }
0x1c57   :  { %v3267_v23 = vpop.f32.mrb[19].mxu1  ;;  %3277 = vmatmul.mubr.msk.f32.vlgmr.msra.gmra.mrb[18].mxu0 %vm138_vm2, %v1838_v53 }
0x1c58   :  { %3538 = vmatpush3.bf16.xpose.msk.msra.mxu0 %vm3840_vm3, %v3844_v40  ;;  %3298 = vmatprep.mubr.msk.f32.mxu0 %vm3699_vm0, %v3700_v4 }
0x1c59   :  { %3539 = vmatprep.subr.bf16.mxu0 %v3698_v0 }
0x1c5e   :  { %v1987_v54 = vpop.f32.mrb[20].mxu1 }
0x1c5f   :  { %v3289_v55 = vpop.f32.mrb[21].mxu1  ;;  %v1992_v60 = vrot.slane %v1987_v54, 6 }
0x1c60   :  { %3542 = vmatpush3.bf16.xpose.msk.msra.mxu0 %vm3840_vm3, %v3858_v43 }
0x1c61   :  { %3555 = vmatprep.subr.bf16.mxu0 %v3698_v0 }
0x1d2a   :  { %v1913_v57 = vpop.f32.mrb[18].mxu0 }
0x1d2b   :  { %v1918_v58 = vrot.slane %v1913_v57, 6  ;;  %v3278_v59 = vpop.f32.mrb[19].mxu0 }
0x1d2d   :  { %v1920_v61 = vadd.f32 %v1918_v58, %v3822_v21 }
0x1d2f   :  { %v1994_v62 = vadd.f32 %v1992_v60, %v1920_v61 }
0x1d31   :  { %3666 = vtanh.f32 %v1994_v62  ;;  %v2859_v1 = vmul.f32 -1.442695, %v1994_v62 }
0x1d33   :  { %3668 = vpow2.f32 %v2859_v1 }
0x1d3b   :  { %v3667_v63 = vpop.eup %3666 }
0x1d3c   :  { %2007 = vrot.lane.b32.xlu0 %v3667_v63, %s3701_s10 }
0x1d3d   :  { %v3669_v2 = vpop.eup %3668 }
0x1d3e   :  { %v1998_v3 = vadd.f32 1.0, %v3669_v2 }
0x1d40   :  { %3670 = vrcp.f32 %v1998_v3 }
0x1d4a   :  { %v3671_v6 = vpop.eup %3670 }
0x1d4b   :  { %v2005_v12 = vmul.f32 %v3671_v6, %v2003_v10 }
0x1dae   :  { %v2008_v7 = vpop.permute.xlu0 %2007 }
0x1daf   :  { %v2010_v8 = vmul.f32 %v3671_v6, %v2008_v7 }
0x1db1   :  { %2012 = vrot.lane.b32.xlu1 %v2010_v8, %s3702_s6 }
0x1e23   :  { %v2013_v13 = vpop.permute.xlu1 %2012 }
0x1e24   :  { %v4099_v14 = vadd.f32 %v2013_v13, %v2005_v12 }
0x1e26   :  { %3672 = vtanh.f32 %v4099_v14  ;;  %v2345_v54 = vrot.slane %v4099_v14, 6 }
0x1e30   :  { %v3673_v16 = vpop.eup %3672 }
0x1e31   :  { %2018 = vrot.lane.b32.xlu0 %v3673_v16, %s3701_s10 }
0x1ea3   :  { %v2019_v17 = vpop.permute.xlu0 %2018 }
0x1ea4   :  { %v4103_v19 = vmul.f32 %v3671_v6, %v2019_v17 }
0x1ea6   :  { %v2023_v20 = vrot.slane %v4103_v19, 2 }
0x1ea8   :  { %2024 = vrot.lane.b32.xlu1 %v2023_v20, %s3702_s6 }
0x1f1a   :  { %v2025_v22 = vpop.permute.xlu1 %2024 }
0x1f1b   :  { %3299 = vmatmul.mubr.msk.f32.vlgmr.msra.gmra.mrb[20].mxu0 %vm138_vm2, %v2025_v22 }
0x1f1c   :  { %3557 = vmatpush3.bf16.msra.mxu0 %v3795_v15  ;;  %3331 = vmatprep.mubr.msk.f32.mxu0 %vm3699_vm0, %v3700_v4 }
0x1f1d   :  { %3558 = vmatprep.subr.bf16.mxu0 %v3698_v0 }
0x1f20   :  { %3560 = vmatpush3.bf16.msra.mxu0 %v3809_v18 }
0x1f21   :  { %3569 = vmatprep.subr.bf16.mxu0 %v3698_v0 }
0x1f23   :  { %3332 = vmatmul.mubr.msk.f32.vlgmr.msra.gmra.mrb[22].mxu0 %vm138_vm2, %v2025_v22 }
0x1f24   :  { %3571 = vmatpush3.bf16.msra.mxu0 %v3844_v40  ;;  %3353 = vmatprep.mubr.msk.f32.mxu0 %vm3699_vm0, %v3700_v4 }
0x1f25   :  { %3572 = vmatprep.subr.bf16.mxu0 %v3698_v0 }
0x1f28   :  { %3574 = vmatpush3.bf16.msra.mxu0 %v3858_v43 }
0x1f29   :  { %3575 = vmatprep.subr.bf16.mxu0 %v3698_v0 }
0x1fee   :  { %v2094_v24 = vpop.f32.mrb[20].mxu0 }
0x1fef   :  { %v2095_v25 = vadd.f32 %v2094_v24, %v3879_v48  ;;  %v3300_v26 = vpop.f32.mrb[21].mxu0 }
0x1ff1   :  { %v2098_v27 = vsel %vm395_vm4, %v2095_v25, -inf }
0x1ff2   :  { %2099 = vmax.xlane.f32.xlu0 %v2098_v27 }
0x1ff6   :  { %v2329_v29 = vpop.f32.mrb[22].mxu0 }
0x1ff7   :  { %v3333_v30 = vpop.f32.mrb[23].mxu0  ;;  %v2334_v47 = vrot.slane %v2329_v29, 4 }
0x207f   :  { %v2100_v31 = vpop.xlane.xlu0 %2099 }
0x2080   :  { %v2101_v32 = vsub.f32 %v2095_v25, %v2100_v31 }
0x2082   :  { %v2102_v33 = vmul.f32 1.442695, %v2101_v32 }
0x2084   :  { %3674 = vpow2.f32 %v2102_v33 }
0x208e   :  { %v3675_v34 = vpop.eup %3674 }
0x208f   :  { %v2104_v35 = vsel %vm395_vm4, %v3675_v34, 0.0 }
0x2090   :  { %2105 = vadd.xlane.f32.xlu1 %v2104_v35 }
0x211d   :  { %v2106_v36 = vpop.xlane.xlu1 %2105 }
0x211e   :  { %3676 = vrcp.f32 %v2106_v36 }
0x2128   :  { %v3677_v37 = vpop.eup %3676 }
0x2129   :  { %v2108_v38 = vmul.f32 %v3677_v37, %v3675_v34 }
0x212b   :  { %3310 = vmatmul.mubr.msk.f32.vlgmr.msra.gmra.mrb[22].mxu1 %vm138_vm2, %v2108_v38 }
0x212c   :  { %3551 = vmatpush3.bf16.msra.mxu1 %v3765_v5  ;;  %3320 = vmatprep.mubr.msk.f32.mxu1 %vm3699_vm0, %v3700_v4 }
0x212d   :  { %3552 = vmatprep.subr.bf16.mxu1 %v3698_v0 }
0x2130   :  { %3554 = vmatpush3.bf16.msra.mxu1 %v3780_v11 }
0x2131   :  { %3561 = vmatprep.subr.bf16.mxu1 %v3698_v0 }
0x21fe   :  { %v2178_v41 = vpop.f32.mrb[22].mxu1 }
0x21ff   :  { %v3311_v42 = vpop.f32.mrb[23].mxu1  ;;  %3321 = vmatmul.mubr.msk.f32.vlgmr.msra.gmra.mrb[24].mxu1 %vm138_vm2, %v2178_v41  ;;  %v2714_v41 = vld [vmem:[%s4221_s7 + $0x8] sm:$0xff] }
0x2200   :  { %3564 = vmatpush3.bf16.xpose.msk.msra.mxu1 %vm3840_vm3, %v3844_v40  ;;  %3342 = vmatprep.mubr.msk.f32.mxu1 %vm3699_vm0, %v3700_v4 }
0x2201   :  { %3565 = vmatprep.subr.bf16.mxu1 %v3698_v0 }
0x2208   :  { %3568 = vmatpush3.bf16.xpose.msk.msra.mxu1 %vm3840_vm3, %v3858_v43 }
0x2209   :  { %3581 = vmatprep.subr.bf16.mxu1 %v3698_v0 }
0x22d2   :  { %v2255_v44 = vpop.f32.mrb[24].mxu1 }
0x22d3   :  { %v2260_v45 = vrot.slane %v2255_v44, 4  ;;  %v3322_v46 = vpop.f32.mrb[25].mxu1  ;;  %v2715_v44 = vld [vmem:[%s4221_s7 + $0x10] sm:$0xff] }
0x22d5   :  { %v2262_v49 = vadd.f32 %v2260_v45, %v3822_v21 }
0x22d7   :  { %v2336_v50 = vadd.f32 %v2334_v47, %v2262_v49 }
0x22d9   :  { %3678 = vtanh.f32 %v2336_v50  ;;  %v2868_v51 = vmul.f32 -1.442695, %v2336_v50 }
0x22db   :  { %3680 = vpow2.f32 %v2868_v51 }
0x22e3   :  { %v3679_v40 = vpop.eup %3678 }
0x22e4   :  { %2349 = vrot.lane.b32.xlu0 %v3679_v40, %s3701_s10 }
0x22e5   :  { %v3681_v52 = vpop.eup %3680 }
0x22e6   :  { %v2340_v53 = vadd.f32 1.0, %v3681_v52  ;;  %v2878_v52 = vld [vmem:[%s4222_s8] ss:$0 sm:$0xff] }
0x22e8   :  { %3682 = vrcp.f32 %v2340_v53 }
0x22f2   :  { %v3683_v39 = vpop.eup %3682 }
0x22f3   :  { %v2347_v55 = vmul.f32 %v3683_v39, %v2345_v54 }
0x2356   :  { %v2350_v43 = vpop.permute.xlu0 %2349 }
0x2357   :  { %v2352_v23 = vmul.f32 %v3683_v39, %v2350_v43 }
0x2359   :  { %2354 = vrot.lane.b32.xlu1 %v2352_v23, %s3702_s6 }
0x23cb   :  { %v2355_v57 = vpop.permute.xlu1 %2354 }
0x23cc   :  { %v4146_v58 = vadd.f32 %v2355_v57, %v2347_v55 }
0x23ce   :  { %3684 = vtanh.f32 %v4146_v58 }
0x23d8   :  { %v3685_v59 = vpop.eup %3684 }
0x23d9   :  { %2360 = vrot.lane.b32.xlu0 %v3685_v59, %s3701_s10 }
0x244b   :  { %v2361_v60 = vpop.permute.xlu0 %2360 }
0x244c   :  { %v2363_v61 = vmul.f32 %v3683_v39, %v2361_v60 }
0x244e   :  { %v2365_v62 = vrot.slane %v2363_v61, 4 }
0x2450   :  { %2366 = vrot.lane.b32.xlu1 %v2365_v62, %s3702_s6 }
0x24c2   :  { %v2367_v63 = vpop.permute.xlu1 %2366 }
0x24c3   :  { %3343 = vmatmul.mubr.msk.f32.vlgmr.msra.gmra.mrb[26].mxu1 %vm138_vm2, %v2367_v63 }
0x24c4   :  { %3583 = vmatpush3.bf16.msra.mxu1 %v3795_v15  ;;  %3375 = vmatprep.mubr.msk.f32.mxu1 %vm3699_vm0, %v3700_v4 }
0x24c5   :  { %3584 = vmatprep.subr.bf16.mxu1 %v3698_v0 }
0x24c8   :  { %3586 = vmatpush3.bf16.msra.mxu1 %v3809_v18 }
0x24cb   :  { %3376 = vmatmul.mubr.msk.f32.vlgmr.msra.gmra.mrb[28].mxu1 %vm138_vm2, %v2367_v63 }
0x2596   :  { %v2436_v1 = vpop.f32.mrb[26].mxu1 }
0x2597   :  { %v2437_v2 = vadd.f32 %v2436_v1, %v3879_v48  ;;  %v3344_v3 = vpop.f32.mrb[27].mxu1 }
0x2599   :  { %v2440_v6 = vsel %vm395_vm4, %v2437_v2, -inf }
0x259a   :  { %2441 = vmax.xlane.f32.xlu0 %v2440_v6 }
0x259e   :  { %v2671_v7 = vpop.f32.mrb[28].mxu1 }
0x259f   :  { %v3377_v8 = vpop.f32.mrb[29].mxu1  ;;  %v2676_v26 = vrot.slane %v2671_v7, 2 }
0x2627   :  { %v2442_v10 = vpop.xlane.xlu0 %2441 }
0x2628   :  { %v2443_v15 = vsub.f32 %v2437_v2, %v2442_v10 }
0x262a   :  { %v2444_v12 = vmul.f32 1.442695, %v2443_v15 }
0x262c   :  { %3686 = vpow2.f32 %v2444_v12 }
0x2636   :  { %v3687_v13 = vpop.eup %3686 }
0x2637   :  { %v2446_v14 = vsel %vm395_vm4, %v3687_v13, 0.0 }
0x2638   :  { %2447 = vadd.xlane.f32.xlu1 %v2446_v14 }
0x26c5   :  { %v2448_v18 = vpop.xlane.xlu1 %2447 }
0x26c6   :  { %3688 = vrcp.f32 %v2448_v18 }
0x26d0   :  { %v3689_v16 = vpop.eup %3688 }
0x26d1   :  { %v2450_v17 = vmul.f32 %v3689_v16, %v3687_v13 }
0x26d3   :  { %3354 = vmatmul.mubr.msk.f32.vlgmr.msra.gmra.mrb[24].mxu0 %vm138_vm2, %v2450_v17 }
0x26d4   :  { %3577 = vmatpush3.bf16.msra.mxu0 %v3765_v5  ;;  %3364 = vmatprep.mubr.msk.f32.mxu0 %vm3699_vm0, %v3700_v4 }
0x26d5   :  { %3578 = vmatprep.subr.bf16.mxu0 %v3698_v0 }
0x26d8   :  { %3580 = vmatpush3.bf16.msra.mxu0 %v3780_v11 }
0x27a6   :  { %v2520_v48 = vpop.f32.mrb[24].mxu0 }
0x27a7   :  { %v3355_v20 = vpop.f32.mrb[25].mxu0  ;;  %3365 = vmatmul.mubr.msk.f32.vlgmr.msra.gmra.mrb[26].mxu0 %vm138_vm2, %v2520_v48 }
0x287a   :  { %v2597_v22 = vpop.f32.mrb[26].mxu0 }
0x287b   :  { %v2602_v24 = vrot.slane %v2597_v22, 2  ;;  %v3366_v25 = vpop.f32.mrb[27].mxu0 }
0x287d   :  { %v2604_v27 = vadd.f32 %v2602_v24, %v3822_v21  ;;  %v2687_v21 = vrot.slane %v4146_v58, 6 }
0x287f   :  { %v2678_v29 = vadd.f32 %v2676_v26, %v2604_v27 }
0x2881   :  { %3690 = vtanh.f32 %v2678_v29  ;;  %v2877_v4 = vmul.f32 -1.442695, %v2678_v29 }
0x2883   :  { %3692 = vpow2.f32 %v2877_v4 }
0x288b   :  { %v3691_v5 = vpop.eup %3690 }
0x288c   :  { %2691 = vrot.lane.b32.xlu0 %v3691_v5, %s3701_s10 }
0x288d   :  { %v3693_v0 = vpop.eup %3692 }
0x288e   :  { %v2682_v30 = vadd.f32 1.0, %v3693_v0 }
0x2890   :  { %3694 = vrcp.f32 %v2682_v30 }
0x289a   :  { %v3695_v11 = vpop.eup %3694 }
0x289b   :  { %v2689_v33 = vmul.f32 %v3695_v11, %v2687_v21 }
0x28fe   :  { %v2692_v31 = vpop.permute.xlu0 %2691 }
0x28ff   :  { %v2694_v32 = vmul.f32 %v3695_v11, %v2692_v31 }
0x2901   :  { %2696 = vrot.lane.b32.xlu1 %v2694_v32, %s3702_s6 }
0x2905   :  { %820 = vrot.lane.b32.xlu1 %v3917_v28, %s3702_s6 }
0x2909   :  { %1506 = vrot.lane.b32.xlu1 %v4011_v56, %s3702_s6  ;;  %v2713_v56 = vld [vmem:[%s4221_s7] sm:$0xff] }
0x290a   :  { %v3587_v42 = vpack.c.bf16 %v2714_v41, %v2713_v56 }
0x290c   :  { %3588 = vmatprep.subr.bf16.mxu0 %v3587_v42 }
0x290d   :  { %2524 = vrot.lane.b32.xlu1 %v2363_v61, %s3702_s6  ;;  %3590 = vmatpush3.bf16.msra.mxu0 %v3587_v42 }
0x2973   :  { %v2697_v34 = vpop.permute.xlu1 %2696 }
0x2974   :  { %v2699_v35 = vadd.f32 %v2697_v34, %v2689_v33 }
0x2976   :  { %3696 = vtanh.f32 %v2699_v35 }
0x2977   :  { %v821_v36 = vpop.permute.xlu1 %820 }
0x2978   :  { %824 = vst.msk [vmem:[#allocation2] sm:$0xc] %vm823_vm5, %v821_v36 }
0x297b   :  { %v1507_v37 = vpop.permute.xlu1 %1506 }
0x297c   :  { %1510 = vst.msk [vmem:[#allocation2] sm:$0xc0] %vm1509_vm6, %v1507_v37 }
0x297f   :  { %v2525_v28 = vpop.permute.xlu1 %2524 }
0x2980   :  { %v3697_v38 = vpop.eup %3696  ;;  %2527 = vst.msk [vmem:[#allocation2 + $0x8] sm:$0x30] %vm1166_vm7, %v2525_v28 }
0x2981   :  { %2702 = vrot.lane.b32.xlu0 %v3697_v38, %s3701_s10 }
0x2985   :  { %1163 = vrot.lane.b32.xlu0 %v3964_v9, %s3702_s6  ;;  %v2716_v9 = vld [vmem:[%s4221_s7 + $0x18] sm:$0xff] }
0x2986   :  { %v3591_v45 = vpack.c.bf16 %v2716_v9, %v2715_v44 }
0x2988   :  { %3592 = vmatprep.subr.bf16.mxu0 %v3591_v45 }
0x2989   :  { %2182 = vrot.lane.b32.xlu0 %v4103_v19, %s3702_s6  ;;  %3594 = vmatpush3.bf16.msra.mxu0 %v3591_v45 }
0x29f3   :  { %v2703_v19 = vpop.permute.xlu0 %2702 }
0x29f4   :  { %v2705_v46 = vmul.f32 %v3695_v11, %v2703_v19 }
0x29f6   :  { %2707 = vrot.lane.b32.xlu0 %v2705_v46, %s3702_s6 }
0x29f7   :  { %v1164_v47 = vpop.permute.xlu0 %1163 }
0x29f8   :  { %1167 = vst.msk [vmem:[#allocation2] sm:$0x30] %vm1166_vm7, %v1164_v47 }
0x29fb   :  { %v2183_v49 = vpop.permute.xlu0 %2182 }
0x29fc   :  { %2185 = vst.msk [vmem:[#allocation2 + $0x8] sm:$0xc] %vm823_vm5, %v2183_v49 }
0x29ff   :  { %v2711_v50 = vld [vmem:[#allocation2] sm:$0xff] }
0x2a00   :  { %3386 = vmatprep.mubr.msk.f32.mxu0 %vm138_vm2, %v2711_v50 }
0x2a68   :  { %v2708_v40 = vpop.permute.xlu0 %2707 }
0x2a69   :  { %2710 = vst.msk [vmem:[#allocation2 + $0x8] sm:$0xc0] %vm1509_vm6, %v2708_v40 }
0x2a70   :  { %v2712_v51 = vld [vmem:[#allocation2 + $0x8] sm:$0xff] }
0x2a71   :  { %3387 = vmatmul.mubr.msk.f32.vlgmr.msra.gmra.mrb[28].mxu0 %vm138_vm2, %v2712_v51 }
0x2b44   :  { %v3388_v53 = vpop.f32.mrb[28].mxu0 }
0x2b45   :  { %v2802_v39 = vadd.f32 %v3388_v53, %v2878_v52  ;;  %v2796_v43 = vpop.f32.mrb[29].mxu0 }
0x2b46   :  { %v2797_v23 = vadd.f32 %v2878_v52, %v2796_v43 }
0x2b47   :  { %2806 = vst.msk [vmem:[%s4223_s9 + $0x8] sm:$0xff] %vm56_vm1, %v2802_v39 }
0x2b48   :  { %2805 = vst.msk [vmem:[%s4223_s9] sm:$0xff] %vm56_vm1, %v2797_v23 }

// kernel: attention_transcriber_forward.2
= control target key start
LH: loop header
LB: loop body
LE: loop exit
PB: predicated region body
PF: predicated region fallthrough
CT: control target
= control target key end

     0   :  { %s5530_s24 = smov 0   ;;  %s6704_s0 = inlined_call_operand.vmem [shape: f32[32,8], index: 0, kind: input, shape index: {}]   ;;  %s6705_s1 = inlined_call_operand.vmem [shape: f32[256,32], index: 1, kind: input, shape index: {}]   ;;  %s6706_s2 = inlined_call_operand.vmem [shape: f32[8,32], index: 2, kind: input, shape index: {}]   ;;  %s6707_s3 = inlined_call_operand.vmem [shape: f32[8,32], index: 3, kind: input, shape index: {}]   ;;  %s6708_s4 = inlined_call_operand.vmem [shape: f32[1,32], index: 4, kind: input, shape index: {}]   ;;  %s6709_s5 = inlined_call_operand.vmem [shape: bf16[2,32,96], index: 5, kind: input, shape index: {}]   ;;  %s6710_s6 = inlined_call_operand.vmem [shape: f32[2,1,96], index: 6, kind: input, shape index: {}]   ;;  %s6711_s7 = inlined_call_operand.vmem [shape: bf16[2,32,32], index: 7, kind: input, shape index: {}]   ;;  %s6712_s8 = inlined_call_operand.vmem [shape: f32[2,1,32], index: 8, kind: input, shape index: {}]   ;;  %s6713_s9 = inlined_call_operand.vmem [shape: f32[2,1,32], index: 9, kind: input, shape index: {}]   ;;  %s6714_s10 = inlined_call_operand.vmem [shape: f32[2,1,32], index: 10, kind: input, shape index: {}]   ;;  %s6715_s11 = inlined_call_operand.vmem [shape: bf16[2,32,2048], index: 11, kind: input, shape index: {}]   ;;  %s6716_s12 = inlined_call_operand.vmem [shape: f32[2,1,2048], index: 12, kind: input, shape index: {}]   ;;  %s6717_s13 = inlined_call_operand.vmem [shape: bf16[2,2048,32], index: 13, kind: input, shape index: {}]   ;;  %s6718_s14 = inlined_call_operand.vmem [shape: f32[2,1,32], index: 14, kind: input, shape index: {}]   ;;  %s6719_s15 = inlined_call_operand.vmem [shape: f32[2,1,32], index: 15, kind: input, shape index: {}]   ;;  %s6720_s16 = inlined_call_operand.vmem [shape: f32[2,1,32], index: 16, kind: input, shape index: {}]   ;;  %s6721_s17 = inlined_call_operand.vmem [shape: f32[32,32], index: 17, kind: output, shape index: {}]  }
   0x1   :  { %6728 = sst [smem:[#allocation5_spill]] %s6704_s0 }
   0x2   :  { %6729 = sst [smem:[#allocation6_spill]] %s6705_s1 }
   0x3   :  { %6730 = sst [smem:[#allocation7_spill]] %s6706_s2 }
   0x4   :  { %6731 = sst [smem:[#allocation8_spill]] %s6708_s4 }
   0x5   :  { %6732 = sst [smem:[#allocation9_spill]] %s6709_s5 }
   0x6   :  { %6733 = sst [smem:[#allocation10_spill]] %s6710_s6 }
   0x7   :  { %6734 = sst [smem:[#allocation11_spill]] %s6711_s7 }
   0x8   :  { %6735 = sst [smem:[#allocation12_spill]] %s6721_s17 }
   0x9 LB: > { %6736 = sst [smem:[#allocation3_spill]] %s5435_s24  ;;  %s5536_s25 = sadd.s32 4294967295, %s5435_s24   ;;  %s5435_s24 = sphi %s5530_s24, %s27_s24  }
   0xa   : > { %p4519_p0 = scmp.ge.s32.totalorder %s5435_s24, 1  ;;  %p577_p1 = scmp.lt.s32.totalorder %s5435_s24, 3 }
   0xc   : > { %p578_p2 = pnand %p4519_p0, %p577_p1 }
   0xe   : > { %581 = sbr.rel (%p578_p2) target bundleno = 2870 (0xb36), region = 88 }
  0x15   : > { %p664_p3 = scmp.lt.s32.totalorder %s5536_s25, 1  ;;  %s6738_s5 = sld [smem:[#allocation9_spill]] }
  0x16   : > { %s6739_s7 = sld [smem:[#allocation11_spill]]  ;;  %p4529_p4 = scmp.ne.s32.totalorder %s5536_s25, 0 }
  0x17   : > { %s5542_s26 = scalar_select %p664_p3, %s5536_s25, 1 }
  0x18   : > { %713 = sbr.rel (%p4529_p4) target bundleno = 248 (0xf8), region = 92  ;;  %v718_v0 = vld [vmem:[%s6707_s3] sm:$0xff] (!%p4529_p4)  ;;  %s6740_s4 = sld [smem:[#allocation5_spill]] (!%p4529_p4)  ;;  %vm726_vm0 = vcmask (!%p4529_p4), 64512   ;;  %vm824_vm1 = vcmask (!%p4529_p4), 261120  }
  0x19   : > { %s4761_s27 = sshll.u32 %s5542_s26, 4  ;;  %s4763_s30 = sshll.u32 %s5542_s26, 8  ;;  %5038 = vmatprep.subr.mxu0 (!%p4529_p4), %v718_v0  ;;  %5134 = vmatprep.subr.mxu1 (!%p4529_p4), %v718_v0 }
  0x1a   : > { %s5575_s6 = scalar_lea.vmem %s6715_s11, %s4763_s30  ;;  %s4764_s22 = sshll.u32 %s5542_s26, 10  ;;  %5039 = vmatpush3.msra.mxu0 (!%p4529_p4), %v718_v0  ;;  %5135 = vmatpush3.msra.mxu1 (!%p4529_p4), %v718_v0 }
  0x1b   : > { %s5552_s19 = scalar_lea.vmem %s6738_s5, %s4761_s27  ;;  %s702_s2 = scalar_lea.vmem %s6718_s14, %s5542_s26 }
  0x1c   : > { %s5557_s21 = scalar_lea.vmem %s6739_s7, %s4761_s27  ;;  %s5580_s7 = scalar_lea.vmem %s6716_s12, %s4761_s27 }
  0x1d   : > { %s5590_s28 = scalar_lea.vmem %s6717_s13, %s4764_s22  ;;  %s705_s5 = scalar_lea.vmem %s6719_s15, %s5542_s26 }
  0x1e   : > { %s708_s1 = scalar_lea.vmem %s6720_s16, %s5542_s26  ;;  %v714_v1 = vld [vmem:[%s6740_s4] sm:$0xff] (!%p4529_p4)  ;;  %v716_v2 = vld [vmem:[%s6740_s4 + $0x10] sm:$0xff] (!%p4529_p4)  ;;  %v715_v3 = vld [vmem:[%s6740_s4 + $0x8] sm:$0xff] (!%p4529_p4)  ;;  %s6741_s24 = sld [smem:[#allocation8_spill]] (!%p4529_p4) }
  0x1f   : > { %v717_v4 = vld [vmem:[%s6740_s4 + $0x18] sm:$0xff]  ;;  %5040 = vmatprep.mubr.msk.f32.mxu0 %vm726_vm0, %v714_v1  ;;  %5043 = vmatprep.mubr.msk.f32.mxu1 %vm726_vm0, %v716_v2 }
  0x20   : > { %5041 = vmatmul.mubr.msk.f32.vlgmr.msra.gmra.mrb[0].mxu0 %vm726_vm0, %v715_v3  ;;  %5044 = vmatmul.mubr.msk.f32.vlgmr.msra.gmra.mrb[0].mxu1 %vm726_vm0, %v717_v4 }
  0x24   : > { %v4530_v5 = vld [vmem:[%s6741_s24] ss:$0 sm:$0xff] }
  0xf3   : > { %v5042_v6 = vpop.f32.mrb[0].mxu0  ;;  %v5045_v7 = vpop.f32.mrb[0].mxu1 }
  0xf4   : > { %v811_v8 = vadd.f32 %v5042_v6, %v4530_v5  ;;  %v821_v9 = vadd.f32 %v5045_v7, %v4530_v5  ;;  %v805_v10 = vpop.f32.mrb[1].mxu0  ;;  %v815_v11 = vpop.f32.mrb[1].mxu1 }
  0xf5   : > { %v806_v12 = vadd.f32 %v4530_v5, %v805_v10  ;;  %v816_v13 = vadd.f32 %v4530_v5, %v815_v11 }
  0xf6   : > { %826 = vst.msk [vmem:[#allocation2 + $0x8] sm:$0xff] %vm824_vm1, %v811_v8  ;;  %828 = vst.msk [vmem:[#allocation2 + $0x18] sm:$0xff] %vm824_vm1, %v821_v9 }
  0xf7   : > { %825 = vst.msk [vmem:[#allocation2] sm:$0xff] %vm824_vm1, %v806_v12  ;;  %827 = vst.msk [vmem:[#allocation2 + $0x10] sm:$0xff] %vm824_vm1, %v816_v13 }
  0xf8 PF: > { %v5149_v14 = vld [vmem:[%s5552_s19] sm:$0xff]   ;;  %v5150_v15 = vld [vmem:[%s5552_s19 + $0x8] sm:$0xff]   ;;  %vm859_vm2 = vcmask 261120   ;;  %v921_v22 = vlaneseq  ;;  %s6742_s22 = sld [smem:[#allocation10_spill]]  ;;  %s6744_s30 = sld [smem:[#allocation7_spill]] }
  0xf9   : > { %5046 = vmatprep.subr.bf16.mxu0 %v5149_v14  ;;  %s5437_s18 = smov 96   ;;  %s6746_s24 = sld [smem:[#allocation6_spill]] }
  0xfa   : > { %5047 = vmatpush3.bf16.msra.mxu0 %v5149_v14  ;;  %v922_v23 = vshrl.u32 %v921_v22, 7  ;;  %s6748_s29 = scalar_lea.vmem %s6712_s8, %s5542_s26  ;;  %s6749_s27 = scalar_lea.vmem %s6713_s9, %s5542_s26 }
  0xfb   : > { %5048 = vmatprep.subr.bf16.mxu0 %v5150_v15  ;;  %s6750_s23 = scalar_lea.vmem %s6714_s10, %s5542_s26  ;;  %p4758_p5 = scmp.ne.s32.totalorder %s5536_s25, 1 }
  0xfc   : > { %v5623_v24 = vsub.s32 0, %v922_v23  ;;  %v5625_v25 = vsub.s32 1, %v922_v23  ;;  %v5635_v28 = vsub.s32 2, %v922_v23  ;;  %v5637_v29 = vsub.s32 3, %v922_v23 }
  0xfd   : > { %v830_v17 = vld [vmem:[#allocation2 + $0x8] sm:$0xff]  ;;  %v832_v20 = vld [vmem:[#allocation2 + $0x18] sm:$0xff]  ;;  %v5639_v30 = vsub.s32 4, %v922_v23  ;;  %v5641_v31 = vsub.s32 5, %v922_v23  ;;  %v5643_v33 = vsub.s32 6, %v922_v23  ;;  %v5645_v34 = vsub.s32 7, %v922_v23 }
  0xfe   : > { %v829_v16 = vld [vmem:[#allocation2] sm:$0xff]  ;;  %v831_v18 = vld [vmem:[#allocation2 + $0x10] sm:$0xff]  ;;  %5049 = vmatpush3.bf16.msra.mxu0 %v5150_v15  ;;  %s6743_s17 = scalar_lea.vmem %s6742_s22, %s5542_s26 }
  0xff   : > { %v834_v19 = vpack.c.bf16 %v830_v17, %v829_v16  ;;  %v835_v21 = vpack.c.bf16 %v832_v20, %v831_v18  ;;  %v4535_v26 = vld [vmem:[%s6743_s17] ss:$0 sm:$0xff]  ;;  %6745 = vst [vmem:[#allocation4_spill] sm:$0xff] %v5645_v34  ;;  %s6747_s19 = smov %s6746_s24  ;;  %s5438_s17 = smov 64  }
 0x100   : > { %v833_v27 = vld [vmem:[%s6744_s30] sm:$0xff] }
 0x101   : > { %5050 = vmatprep.mubr.msk.bf16.mxu0 %vm859_vm2, %v834_v19  ;;  %v5648_v37 = vrot.slane %v833_v27, %v5623_v24  ;;  %v5651_v38 = vrot.slane %v833_v27, %v5625_v25  ;;  %v5654_v41 = vrot.slane %v833_v27, %v5635_v28  ;;  %v5657_v42 = vrot.slane %v833_v27, %v5637_v29 }
 0x102   : > { %5051 = vmatmul.mubr.msk.bf16.vlgmr.msra.gmra.mrb[0].mxu0 %vm859_vm2, %v835_v21  ;;  %v5660_v46 = vrot.slane %v833_v27, %v5639_v30  ;;  %v5663_v47 = vrot.slane %v833_v27, %v5641_v31  ;;  %v5666_v50 = vrot.slane %v833_v27, %v5643_v33  ;;  %v5669_v51 = vrot.slane %v833_v27, %v5645_v34 }
 0x1d5   : > { %v5052_v32 = vpop.f32.mrb[0].mxu0 }
 0x1d6   : > { %v909_v35 = vadd.f32 %v5052_v32, %v4535_v26  ;;  %v900_v36 = vpop.f32.mrb[1].mxu0 }
 0x1d7   : > { %v901_v39 = vadd.f32 %v4535_v26, %v900_v36  ;;  %v5053_v40 = vpop.f32.mrb[2].mxu0 }
 0x1d8   : > { %v917_v43 = vmul.f32 0.5, %v909_v35  ;;  %v912_v44 = vadd.f32 %v5053_v40, %v4535_v26  ;;  %v903_v45 = vpop.f32.mrb[3].mxu0 }
 0x1d9   : > { %v915_v48 = vmul.f32 0.5, %v901_v39  ;;  %v904_v49 = vadd.f32 %v4535_v26, %v903_v45 }
 0x1da   : > { %v918_v52 = vmul.f32 0.5, %v912_v44  ;;  %v5671_v53 = vpack.c.bf16 %v912_v44, %v909_v35  ;;  %v5674_v54 = vmul.f32 %v5648_v37, %v917_v43  ;;  %v5677_v55 = vmul.f32 %v5651_v38, %v917_v43 }
 0x1db   : > { %v916_v56 = vmul.f32 0.5, %v904_v49  ;;  %v5679_v57 = vpack.c.bf16 %v904_v49, %v901_v39  ;;  %v925_v58 = vmul.f32 %v5648_v37, %v915_v48  ;;  %v933_v59 = vmul.f32 %v5651_v38, %v915_v48 }
 0x1dc   : > { %v928_v60 = vmul.f32 %v5648_v37, %v918_v52  ;;  %v936_v61 = vmul.f32 %v5651_v38, %v918_v52  ;;  %v941_v62 = vmul.f32 %v5654_v41, %v915_v48  ;;  %v943_v63 = vmul.f32 %v5654_v41, %v917_v43 }
 0x1dd   : > { %1035 = vrot.lane.b32.xlu0 %v5679_v57, %s5437_s18  ;;  %v926_v0 = vmul.f32 %v5648_v37, %v916_v56  ;;  %v934_v1 = vmul.f32 %v5651_v38, %v916_v56  ;;  %v942_v2 = vmul.f32 %v5654_v41, %v916_v56  ;;  %v944_v3 = vmul.f32 %v5654_v41, %v918_v52 }
 0x1de   : > { %v986_v4 = vpack.c.bf16 %v928_v60, %v5674_v54  ;;  %v988_v5 = vpack.c.bf16 %v936_v61, %v5677_v55  ;;  %v949_v6 = vmul.f32 %v5657_v42, %v915_v48  ;;  %v950_v7 = vmul.f32 %v5657_v42, %v916_v56 }
 0x1df   : > { %v985_v8 = vpack.c.bf16 %v926_v0, %v925_v58  ;;  %v987_v9 = vpack.c.bf16 %v934_v1, %v933_v59  ;;  %v989_v10 = vpack.c.bf16 %v942_v2, %v941_v62  ;;  %v990_v11 = vpack.c.bf16 %v944_v3, %v943_v63  ;;  %v1004_v3 = vld [vmem:[%s6747_s19 + $0x18] sm:$0xff] }
 0x1e0   : > { %v991_v12 = vpack.c.bf16 %v950_v7, %v949_v6  ;;  %v951_v13 = vmul.f32 %v5657_v42, %v917_v43  ;;  %v952_v14 = vmul.f32 %v5657_v42, %v918_v52  ;;  %v957_v15 = vmul.f32 %v5660_v46, %v915_v48 }
 0x1e1   : > { %1037 = vrot.lane.b32.xlu0 %v5671_v53, %s5437_s18  ;;  %5058 = vmatprep.mubr.msk.bf16.mxu1 %vm859_vm2, %v985_v8  ;;  %v958_v16 = vmul.f32 %v5660_v46, %v916_v56  ;;  %v959_v17 = vmul.f32 %v5660_v46, %v917_v43  ;;  %v960_v18 = vmul.f32 %v5660_v46, %v918_v52 }
 0x1e2   : > { %v992_v19 = vpack.c.bf16 %v952_v14, %v951_v13  ;;  %v965_v20 = vmul.f32 %v5663_v47, %v915_v48  ;;  %v966_v21 = vmul.f32 %v5663_v47, %v916_v56  ;;  %v967_v22 = vmul.f32 %v5663_v47, %v917_v43  ;;  %v1007_v14 = vld [vmem:[%s6747_s19 + $0x30] sm:$0xff] }
 0x1e3   : > { %v993_v23 = vpack.c.bf16 %v958_v16, %v957_v15  ;;  %v994_v26 = vpack.c.bf16 %v960_v18, %v959_v17  ;;  %v968_v27 = vmul.f32 %v5663_v47, %v918_v52  ;;  %v973_v32 = vmul.f32 %v5666_v50, %v915_v48 }
 0x1e4   : > { %v995_v35 = vpack.c.bf16 %v966_v21, %v965_v20  ;;  %v974_v36 = vmul.f32 %v5666_v50, %v916_v56  ;;  %v975_v39 = vmul.f32 %v5666_v50, %v917_v43  ;;  %v976_v40 = vmul.f32 %v5666_v50, %v918_v52  ;;  %v1005_v20 = vld [vmem:[%s6747_s19 + $0x20] sm:$0xff] }
 0x1e5   : > { %v996_v44 = vpack.c.bf16 %v968_v27, %v967_v22  ;;  %v981_v45 = vmul.f32 %v5669_v51, %v915_v48  ;;  %v982_v49 = vmul.f32 %v5669_v51, %v916_v56  ;;  %v983_v58 = vmul.f32 %v5669_v51, %v917_v43  ;;  %v1003_v43 = vld [vmem:[%s6746_s24 + $0x10] sm:$0xff]  ;;  %v1008_v27 = vld [vmem:[%s6747_s19 + $0x38] sm:$0xff] }
 0x1e6   : > { %v997_v54 = vpack.c.bf16 %v974_v36, %v973_v32  ;;  %v998_v55 = vpack.c.bf16 %v976_v40, %v975_v39  ;;  %v984_v59 = vmul.f32 %v5669_v51, %v918_v52  ;;  %v1001_v52 = vld [vmem:[%s6747_s19] sm:$0xff] }
 0x1e7   : > { %v999_v60 = vpack.c.bf16 %v982_v49, %v981_v45  ;;  %v1006_v45 = vld [vmem:[%s6747_s19 + $0x28] sm:$0xff] }
 0x1e8   : > { %v1000_v61 = vpack.c.bf16 %v984_v59, %v983_v58  ;;  %v1011_v59 = vld [vmem:[%s6747_s19 + $0x50] sm:$0xff] }
 0x24f   : > { %v1036_v62 = vpop.permute.xlu0 %1035 }
 0x250   : > { %5136 = vmatprep.subr.msk.bf16.mxu1 %vm859_vm2, %v1036_v62  ;;  %v1088_v63 = vsel %vm859_vm2, %v1036_v62, 0 }
 0x251   : > { %5055 = vmatpush3.bf16.xpose.msra.mxu1 %v1088_v63  ;;  %v1016_v63 = vld [vmem:[%s6747_s19 + $0x78] sm:$0xff] }
 0x253   : > { %v1038_v0 = vpop.permute.xlu0 %1037 }
 0x254   : > { %5137 = vmatprep.subr.msk.bf16.mxu1 %vm859_vm2, %v1038_v0  ;;  %v1091_v48 = vsel %vm859_vm2, %v1038_v0, 0 }
 0x259   : > { %5057 = vmatpush3.bf16.xpose.msra.mxu1 %v1091_v48 }
 0x260   : > { %5059 = vmatmul.mubr.msk.bf16.vlgmr.msra.gmra.mrb[0].mxu1 %vm859_vm2, %v986_v4 }
 0x261   : > { %5062 = vmatprep.mubr.msk.bf16.mxu1 %vm859_vm2, %v987_v9 }
 0x268   : > { %5063 = vmatmul.mubr.msk.bf16.gmra.mrb[4].mxu1 %vm859_vm2, %v988_v5 }
 0x269   : > { %5066 = vmatprep.mubr.msk.bf16.mxu1 %vm859_vm2, %v989_v10  ;;  %v1002_v10 = vld [vmem:[%s6747_s19 + $0x8] sm:$0xff] }
 0x270   : > { %5067 = vmatmul.mubr.msk.bf16.gmra.mrb[8].mxu1 %vm859_vm2, %v990_v11 }
 0x271   : > { %5070 = vmatprep.mubr.msk.bf16.mxu1 %vm859_vm2, %v991_v12 }
 0x278   : > { %5071 = vmatmul.mubr.msk.bf16.gmra.mrb[12].mxu1 %vm859_vm2, %v992_v19 }
 0x279   : > { %5074 = vmatprep.mubr.msk.bf16.mxu1 %vm859_vm2, %v993_v23 }
 0x280   : > { %5075 = vmatmul.mubr.msk.bf16.gmra.mrb[16].mxu1 %vm859_vm2, %v994_v26  ;;  %v1012_v26 = vld [vmem:[%s6747_s19 + $0x58] sm:$0xff] }
 0x281   : > { %5078 = vmatprep.mubr.msk.bf16.mxu1 %vm859_vm2, %v995_v35 }
 0x288   : > { %5079 = vmatmul.mubr.msk.bf16.gmra.mrb[20].mxu1 %vm859_vm2, %v996_v44 }
 0x289   : > { %5082 = vmatprep.mubr.msk.bf16.mxu1 %vm859_vm2, %v997_v54 }
 0x290   : > { %5083 = vmatmul.mubr.msk.bf16.gmra.mrb[24].mxu1 %vm859_vm2, %v998_v55 }
 0x291   : > { %5086 = vmatprep.mubr.msk.bf16.mxu1 %vm859_vm2, %v999_v60 }
 0x298   : > { %5087 = vmatmul.mubr.msk.bf16.gmra.mrb[28].mxu1 %vm859_vm2, %v1000_v61  ;;  %v1014_v61 = vld [vmem:[%s6747_s19 + $0x68] sm:$0xff] }
 0x333   : > { %v5060_v56 = vpop.f32.mrb[0].mxu1 }
 0x334   : > { %v5741_v1 = vadd.f32 %v5060_v56, %v1003_v43  ;;  %v1127_v2 = vpop.f32.mrb[1].mxu1  ;;  %v1009_v56 = vld [vmem:[%s6747_s19 + $0x40] sm:$0xff] }
 0x335   : > { %v5746_v4 = vadd.f32 %v1127_v2, %v1001_v52  ;;  %v5061_v5 = vpop.f32.mrb[2].mxu1 }
 0x336   : > { %v1130_v6 = vpop.f32.mrb[3].mxu1  ;;  %v1260_v7 = vsel %vm859_vm2, %v5741_v1, -inf  ;;  %v5750_v8 = vadd.f32 %v5061_v5, %v1004_v3 }
 0x337   : > { %1261 = vmax.xlane.f32.xlu0 %v1260_v7  ;;  %v1254_v9 = vsel %vm859_vm2, %v5746_v4, -inf  ;;  %v5757_v11 = vadd.f32 %v1130_v6, %v1002_v10 }
 0x338   : > { %1255 = vmax.xlane.f32.xlu1 %v1254_v9  ;;  %v1263_v13 = vsel %vm859_vm2, %v5750_v8, -inf  ;;  %v1010_v9 = vld [vmem:[%s6747_s19 + $0x48] sm:$0xff] }
 0x339   : > { %v1257_v19 = vsel %vm859_vm2, %v5757_v11, -inf }
 0x33b   : > { %v5064_v12 = vpop.f32.mrb[4].mxu1 }
 0x33c   : > { %v1143_v15 = vpop.f32.mrb[5].mxu1  ;;  %1264 = vmax.xlane.f32.xlu1 %v1263_v13  ;;  %v5764_v18 = vadd.f32 %v5064_v12, %v1007_v14  ;;  %v1018_v12 = vld [vmem:[%s6747_s19 + $0x88] sm:$0xff] }
 0x33d   : > { %v5065_v16 = vpop.f32.mrb[6].mxu1  ;;  %v5771_v21 = vadd.f32 %v1143_v15, %v1005_v20  ;;  %v1020_v15 = vld [vmem:[%s6747_s19 + $0x98] sm:$0xff] }
 0x33e   : > { %v1146_v17 = vpop.f32.mrb[7].mxu1  ;;  %v1272_v23 = vsel %vm859_vm2, %v5764_v18, -inf  ;;  %v5783_v40 = vadd.f32 %v5065_v16, %v1008_v27 }
 0x33f   : > { %v1266_v44 = vsel %vm859_vm2, %v5771_v21, -inf  ;;  %v5792_v54 = vadd.f32 %v1146_v17, %v1006_v45  ;;  %v1022_v45 = vld [vmem:[%s6747_s19 + $0xa8] sm:$0xff] }
 0x340   : > { %1258 = vmax.xlane.f32.xlu1 %v1257_v19  ;;  %v1275_v58 = vsel %vm859_vm2, %v5783_v40, -inf }
 0x341   : > { %v1269_v52 = vsel %vm859_vm2, %v5792_v54, -inf }
 0x343   : > { %v5068_v22 = vpop.f32.mrb[8].mxu1 }
 0x344   : > { %v1159_v32 = vpop.f32.mrb[9].mxu1  ;;  %1273 = vmax.xlane.f32.xlu1 %v1272_v23  ;;  %v5805_v48 = vadd.f32 %v5068_v22, %v1011_v59  ;;  %v1015_v22 = vld [vmem:[%s6747_s19 + $0x70] sm:$0xff] }
 0x345   : > { %v5069_v35 = vpop.f32.mrb[10].mxu1  ;;  %v5818_v5 = vadd.f32 %v1159_v32, %v1009_v56 }
 0x346   : > { %v5781_v36 = vadd.f32 %v5069_v35, %v1012_v26  ;;  %v1162_v39 = vpop.f32.mrb[11].mxu1  ;;  %v1284_v7 = vsel %vm859_vm2, %v5805_v48, -inf }
 0x347   : > { %v5833_v17 = vadd.f32 %v1162_v39, %v1010_v9  ;;  %v1278_v20 = vsel %vm859_vm2, %v5818_v5, -inf  ;;  %v1013_v39 = vld [vmem:[%s6747_s19 + $0x60] sm:$0xff] }
 0x348   : > { %1267 = vmax.xlane.f32.xlu1 %v1266_v44  ;;  %v1287_v49 = vsel %vm859_vm2, %v5781_v36, -inf  ;;  %v1017_v9 = vld [vmem:[%s6747_s19 + $0x80] sm:$0xff] }
 0x349   : > { %1288 = vmax.xlane.f32.xlu0 %v1287_v49  ;;  %v1281_v35 = vsel %vm859_vm2, %v5833_v17, -inf }
 0x34b   : > { %v5072_v55 = vpop.f32.mrb[12].mxu1 }
 0x34c   : > { %v1175_v60 = vpop.f32.mrb[13].mxu1  ;;  %1276 = vmax.xlane.f32.xlu1 %v1275_v58  ;;  %v5846_v27 = vadd.f32 %v5072_v55, %v1015_v22  ;;  %v1024_v55 = vld [vmem:[%s6747_s19 + $0xb8] sm:$0xff] }
 0x34d   : > { %v5073_v62 = vpop.f32.mrb[14].mxu1 }
 0x34e   : > { %v1178_v0 = vpop.f32.mrb[15].mxu1  ;;  %v5814_v2 = vadd.f32 %v5073_v62, %v1016_v63  ;;  %v1296_v63 = vsel %vm859_vm2, %v5846_v27, -inf }
 0x34f   : > { %v5807_v43 = vadd.f32 %v1178_v0, %v1014_v61  ;;  %v5861_v61 = vadd.f32 %v1175_v60, %v1013_v39  ;;  %v1019_v0 = vld [vmem:[%s6747_s19 + $0x90] sm:$0xff] }
 0x350   : > { %1270 = vmax.xlane.f32.xlu1 %v1269_v52  ;;  %v1299_v14 = vsel %vm859_vm2, %v5814_v2, -inf }
 0x351   : > { %v1293_v3 = vsel %vm859_vm2, %v5807_v43, -inf }
 0x352   : > { %1294 = vmax.xlane.f32.xlu0 %v1293_v3 }
 0x353   : > { %v5076_v6 = vpop.f32.mrb[16].mxu1 }
 0x354   : > { %v1191_v10 = vpop.f32.mrb[17].mxu1  ;;  %1285 = vmax.xlane.f32.xlu1 %v1284_v7  ;;  %v5874_v3 = vadd.f32 %v5076_v6, %v1019_v0  ;;  %v1290_v7 = vsel %vm859_vm2, %v5861_v61, -inf  ;;  %v1028_v6 = vld [vmem:[%s6747_s19 + $0xd8] sm:$0xff] }
 0x355   : > { %v5077_v13 = vpop.f32.mrb[18].mxu1 }
 0x356   : > { %v1194_v16 = vpop.f32.mrb[19].mxu1  ;;  %1300 = vmax.xlane.f32.xlu0 %v1299_v14  ;;  %v5842_v23 = vadd.f32 %v5077_v13, %v1020_v15  ;;  %v1026_v13 = vld [vmem:[%s6747_s19 + $0xc8] sm:$0xff] }
 0x357   : > { %v5835_v19 = vadd.f32 %v1194_v16, %v1018_v12 }
 0x358   : > { %1279 = vmax.xlane.f32.xlu1 %v1278_v20  ;;  %v1311_v58 = vsel %vm859_vm2, %v5842_v23, -inf  ;;  %v5889_v20 = vadd.f32 %v1191_v10, %v1017_v9 }
 0x359   : > { %v1305_v26 = vsel %vm859_vm2, %v5835_v19, -inf }
 0x35a   : > { %1306 = vmax.xlane.f32.xlu0 %v1305_v26  ;;  %v1308_v26 = vsel %vm859_vm2, %v5874_v3, -inf }
 0x35b   : > { %v5080_v32 = vpop.f32.mrb[20].mxu1 }
 0x35c   : > { %v1207_v44 = vpop.f32.mrb[21].mxu1  ;;  %1282 = vmax.xlane.f32.xlu1 %v1281_v35  ;;  %v1023_v35 = vld [vmem:[%s6747_s19 + $0xb0] sm:$0xff] }
 0x35d   : > { %v5081_v49 = vpop.f32.mrb[22].mxu1 }
 0x35e   : > { %v1210_v59 = vpop.f32.mrb[23].mxu1  ;;  %1312 = vmax.xlane.f32.xlu0 %v1311_v58  ;;  %v5870_v52 = vadd.f32 %v5081_v49, %v1024_v55  ;;  %v5902_v49 = vadd.f32 %v5080_v32, %v1023_v35  ;;  %v1302_v58 = vsel %vm859_vm2, %v5889_v20, -inf  ;;  %v1021_v55 = vld [vmem:[%s6747_s19 + $0xa0] sm:$0xff]  ;;  %v1032_v32 = vld [vmem:[%s6747_s19 + $0xf8] sm:$0xff] }
 0x35f   : > { %v5863_v62 = vadd.f32 %v1210_v59, %v1022_v45  ;;  %v5917_v9 = vadd.f32 %v1207_v44, %v1021_v55  ;;  %v1025_v35 = vld [vmem:[%s6747_s19 + $0xc0] sm:$0xff] }
 0x360   : > { %1297 = vmax.xlane.f32.xlu1 %v1296_v63  ;;  %v1323_v15 = vsel %vm859_vm2, %v5870_v52, -inf  ;;  %v1030_v63 = vld [vmem:[%s6747_s19 + $0xe8] sm:$0xff] }
 0x361   : > { %v1317_v56 = vsel %vm859_vm2, %v5863_v62, -inf  ;;  %v1314_v44 = vsel %vm859_vm2, %v5917_v9, -inf }
 0x362   : > { %1318 = vmax.xlane.f32.xlu0 %v1317_v56 }
 0x363   : > { %v5084_v60 = vpop.f32.mrb[24].mxu1 }
 0x364   : > { %v1223_v12 = vpop.f32.mrb[25].mxu1  ;;  %1291 = vmax.xlane.f32.xlu1 %v1290_v7 }
 0x365   : > { %v5085_v14 = vpop.f32.mrb[26].mxu1 }
 0x366   : > { %v1226_v16 = vpop.f32.mrb[27].mxu1  ;;  %1324 = vmax.xlane.f32.xlu0 %v1323_v15  ;;  %v5898_v39 = vadd.f32 %v5085_v14, %v1028_v6  ;;  %v1320_v14 = vsel %vm859_vm2, %v5902_v49, -inf  ;;  %v1027_v15 = vld [vmem:[%s6747_s19 + $0xd0] sm:$0xff] }
 0x367   : > { %v5891_v22 = vadd.f32 %v1226_v16, %v1026_v13 }
 0x368   : > { %1309 = vmax.xlane.f32.xlu1 %v1308_v26  ;;  %v1335_v56 = vsel %vm859_vm2, %v5898_v39, -inf  ;;  %v5930_v26 = vadd.f32 %v5084_v60, %v1027_v15  ;;  %v1031_v60 = vld [vmem:[%s6747_s19 + $0xf0] sm:$0xff] }
 0x369   : > { %v1329_v45 = vsel %vm859_vm2, %v5891_v22, -inf }
 0x36a   : > { %1330 = vmax.xlane.f32.xlu0 %v1329_v45  ;;  %v1332_v55 = vsel %vm859_vm2, %v5930_v26, -inf }
 0x36b   : > { %v5088_v10 = vpop.f32.mrb[28].mxu1 }
 0x36c   : > { %v1239_v59 = vpop.f32.mrb[29].mxu1  ;;  %1303 = vmax.xlane.f32.xlu1 %v1302_v58  ;;  %v5939_v58 = vadd.f32 %v1223_v12, %v1025_v35 }
 0x36d   : > { %v5089_v0 = vpop.f32.mrb[30].mxu1 }
 0x36e   : > { %v1242_v7 = vpop.f32.mrb[31].mxu1  ;;  %1336 = vmax.xlane.f32.xlu0 %v1335_v56  ;;  %v5926_v6 = vadd.f32 %v5089_v0, %v1032_v32  ;;  %v1326_v0 = vsel %vm859_vm2, %v5939_v58, -inf  ;;  %v1029_v56 = vld [vmem:[%s6747_s19 + $0xe0] sm:$0xff] }
 0x36f   : > { %v5919_v13 = vadd.f32 %v1242_v7, %v1030_v63  ;;  %v5946_v63 = vadd.f32 %v5088_v10, %v1031_v60  ;;  %v5953_v12 = vadd.f32 %v1239_v59, %v1029_v56 }
 0x370   : > { %1321 = vmax.xlane.f32.xlu1 %v1320_v14  ;;  %v1347_v45 = vsel %vm859_vm2, %v5926_v6, -inf }
 0x371   : > { %v1341_v16 = vsel %vm859_vm2, %v5919_v13, -inf  ;;  %v1344_v32 = vsel %vm859_vm2, %v5946_v63, -inf  ;;  %v1338_v7 = vsel %vm859_vm2, %v5953_v12, -inf }
 0x372   : > { %1342 = vmax.xlane.f32.xlu0 %v1341_v16 }
 0x374   : > { %1315 = vmax.xlane.f32.xlu1 %v1314_v44 }
 0x376   : > { %1348 = vmax.xlane.f32.xlu0 %v1347_v45 }
 0x378   : > { %1333 = vmax.xlane.f32.xlu1 %v1332_v55 }
 0x37c   : > { %1327 = vmax.xlane.f32.xlu1 %v1326_v0 }
 0x380   : > { %1345 = vmax.xlane.f32.xlu1 %v1344_v32 }
 0x384   : > { %1339 = vmax.xlane.f32.xlu1 %v1338_v7 }
 0x395   : > { %1622 = vrot.lane.b32.xlu1 %v5679_v57, %s5438_s17 }
 0x3c4   : > { %v1262_v10 = vpop.xlane.xlu0 %1261 }
 0x3c5   : > { %v1352_v14 = vsub.f32 %v5741_v1, %v1262_v10  ;;  %v1256_v15 = vpop.xlane.xlu1 %1255 }
 0x3c6   : > { %v1350_v16 = vsub.f32 %v5746_v4, %v1256_v15 }
 0x3c7   : > { %v1386_v59 = vmul.f32 1.442695, %v1352_v14 }
 0x3c8   : > { %v1382_v44 = vmul.f32 1.442695, %v1350_v16 }
 0x3c9   : > { %5281 = vpow2.f32 %v1386_v59  ;;  %v1265_v35 = vpop.xlane.xlu1 %1264 }
 0x3ca   : > { %v1353_v45 = vsub.f32 %v5750_v8, %v1265_v35  ;;  %5283 = vpow2.f32 %v1382_v44 }
 0x3cc   : > { %v1388_v55 = vmul.f32 1.442695, %v1353_v45 }
 0x3cd   : > { %v1259_v60 = vpop.xlane.xlu1 %1258 }
 0x3ce   : > { %5285 = vpow2.f32 %v1388_v55  ;;  %v1351_v0 = vsub.f32 %v5757_v11, %v1259_v60 }
 0x3d0   : > { %v1384_v56 = vmul.f32 1.442695, %v1351_v0 }
 0x3d1   : > { %v1274_v57 = vpop.xlane.xlu1 %1273 }
 0x3d2   : > { %5287 = vpow2.f32 %v1384_v56  ;;  %v1356_v1 = vsub.f32 %v5764_v18, %v1274_v57 }
 0x3d3   : > { %v5966_v32 = vpop.eup %5281 }
 0x3d4   : > { %v1394_v4 = vmul.f32 1.442695, %v1356_v1  ;;  %v1452_v7 = vsel %vm859_vm2, %v5966_v32, 0.0  ;;  %v5970_v10 = vpop.eup %5283 }
 0x3d5   : > { %1453 = vadd.xlane.f32.xlu1 %v1452_v7  ;;  %v1268_v8 = vpop.xlane.xlu1 %1267  ;;  %v1446_v16 = vsel %vm859_vm2, %v5970_v10, 0.0 }
 0x3d6   : > { %5289 = vpow2.f32 %v1394_v4  ;;  %v1354_v14 = vsub.f32 %v5771_v21, %v1268_v8  ;;  %v1289_v18 = vpop.xlane.xlu0 %1288 }
 0x3d7   : > { %v1361_v21 = vsub.f32 %v5781_v36, %v1289_v18 }
 0x3d8   : > { %v5973_v15 = vpop.eup %5285  ;;  %v1390_v11 = vmul.f32 1.442695, %v1354_v14 }
 0x3d9   : > { %1447 = vadd.xlane.f32.xlu1 %v1446_v16  ;;  %v1277_v59 = vpop.xlane.xlu1 %1276  ;;  %v1455_v44 = vsel %vm859_vm2, %v5973_v15, 0.0  ;;  %v1404_v1 = vmul.f32 1.442695, %v1361_v21 }
 0x3da   : > { %5291 = vpow2.f32 %v1390_v11  ;;  %v1357_v35 = vsub.f32 %v5783_v40, %v1277_v59  ;;  %1456 = vadd.xlane.f32.xlu0 %v1455_v44 }
 0x3dc   : > { %v5980_v45 = vpop.eup %5287  ;;  %v1396_v55 = vmul.f32 1.442695, %v1357_v35 }
 0x3dd   : > { %v1271_v60 = vpop.xlane.xlu1 %1270  ;;  %v1449_v0 = vsel %vm859_vm2, %v5980_v45, 0.0 }
 0x3de   : > { %5293 = vpow2.f32 %v1396_v55  ;;  %v1355_v56 = vsub.f32 %v5792_v54, %v1271_v60  ;;  %1450 = vadd.xlane.f32.xlu0 %v1449_v0 }
 0x3df   : > { %v1295_v18 = vpop.xlane.xlu0 %1294 }
 0x3e0   : > { %v5986_v57 = vpop.eup %5289  ;;  %v1392_v4 = vmul.f32 1.442695, %v1355_v56 }
 0x3e1   : > { %v1286_v7 = vpop.xlane.xlu1 %1285  ;;  %v1464_v40 = vsel %vm859_vm2, %v5986_v57, 0.0 }
 0x3e2   : > { %5295 = vpow2.f32 %v1392_v4  ;;  %v1360_v36 = vsub.f32 %v5805_v48, %v1286_v7  ;;  %1465 = vadd.xlane.f32.xlu1 %v1464_v40 }
 0x3e3   : > { %5297 = vpow2.f32 %v1404_v1  ;;  %v1301_v0 = vpop.xlane.xlu0 %1300 }
 0x3e4   : > { %v5991_v8 = vpop.eup %5291  ;;  %v1402_v14 = vmul.f32 1.442695, %v1360_v36  ;;  %v1365_v40 = vsub.f32 %v5814_v2, %v1301_v0 }
 0x3e5   : > { %v1280_v11 = vpop.xlane.xlu1 %1279  ;;  %v1458_v54 = vsel %vm859_vm2, %v5991_v8, 0.0 }
 0x3e6   : > { %5299 = vpow2.f32 %v1402_v14  ;;  %v1358_v16 = vsub.f32 %v5818_v5, %v1280_v11  ;;  %1459 = vadd.xlane.f32.xlu1 %v1458_v54 }
 0x3e8   : > { %v5996_v59 = vpop.eup %5293  ;;  %v1398_v44 = vmul.f32 1.442695, %v1358_v16 }
 0x3e9   : > { %v1283_v35 = vpop.xlane.xlu1 %1282  ;;  %v1467_v48 = vsel %vm859_vm2, %v5996_v59, 0.0 }
 0x3ea   : > { %5301 = vpow2.f32 %v1398_v44  ;;  %v1359_v21 = vsub.f32 %v5833_v17, %v1283_v35  ;;  %1468 = vadd.xlane.f32.xlu0 %v1467_v48  ;;  %v1412_v44 = vmul.f32 1.442695, %v1365_v40  ;;  %v6019_v35 = vpop.xlane.xlu0 %1306 }
 0x3ec   : > { %v6001_v55 = vpop.eup %5295  ;;  %v1400_v60 = vmul.f32 1.442695, %v1359_v21 }
 0x3ed   : > { %v1298_v56 = vpop.xlane.xlu1 %1297  ;;  %v1461_v5 = vsel %vm859_vm2, %v6001_v55, 0.0  ;;  %v6005_v1 = vpop.eup %5297 }
 0x3ee   : > { %5303 = vpow2.f32 %v1400_v60  ;;  %v1364_v4 = vsub.f32 %v5846_v27, %v1298_v56  ;;  %1462 = vadd.xlane.f32.xlu0 %v1461_v5  ;;  %v1479_v14 = vsel %vm859_vm2, %v6005_v1, 0.0  ;;  %v1363_v27 = vsub.f32 %v5807_v43, %v1295_v18  ;;  %v1313_v5 = vpop.xlane.xlu0 %1312 }
 0x3f0   : > { %v6008_v7 = vpop.eup %5299  ;;  %v1410_v17 = vmul.f32 1.442695, %v1364_v4  ;;  %v1408_v0 = vmul.f32 1.442695, %v1363_v27 }
 0x3f1   : > { %v1292_v36 = vpop.xlane.xlu1 %1291  ;;  %v1476_v11 = vsel %vm859_vm2, %v6008_v7, 0.0 }
 0x3f2   : > { %5305 = vpow2.f32 %v1410_v17  ;;  %v1362_v54 = vsub.f32 %v5861_v61, %v1292_v36  ;;  %1480 = vadd.xlane.f32.xlu0 %v1479_v14  ;;  %1477 = vadd.xlane.f32.xlu1 %v1476_v11  ;;  %v1369_v11 = vsub.f32 %v5842_v23, %v1313_v5 }
 0x3f4   : > { %v6016_v16 = vpop.eup %5301  ;;  %v1406_v2 = vmul.f32 1.442695, %v1362_v54  ;;  %v1319_v54 = vpop.xlane.xlu0 %1318 }
 0x3f5   : > { %v1310_v48 = vpop.xlane.xlu1 %1309  ;;  %v1470_v21 = vsel %vm859_vm2, %v6016_v16, 0.0 }
 0x3f6   : > { %5307 = vpow2.f32 %v1406_v2  ;;  %1471 = vadd.xlane.f32.xlu1 %v1470_v21  ;;  %v1368_v4 = vsub.f32 %v5874_v3, %v1310_v48  ;;  %v1420_v3 = vmul.f32 1.442695, %v1369_v11 }
 0x3f7   : > { %5309 = vpow2.f32 %v1412_v44 }
 0x3f8   : > { %v6023_v60 = vpop.eup %5303  ;;  %5311 = vpow2.f32 %v1408_v0  ;;  %v1418_v27 = vmul.f32 1.442695, %v1368_v4  ;;  %v1325_v23 = vpop.xlane.xlu0 %1324 }
 0x3f9   : > { %v1304_v61 = vpop.xlane.xlu1 %1303  ;;  %v1473_v56 = vsel %vm859_vm2, %v6023_v60, 0.0 }
 0x3fa   : > { %v1366_v43 = vsub.f32 %v5889_v20, %v1304_v61  ;;  %1474 = vadd.xlane.f32.xlu0 %v1473_v56 }
 0x3fc   : > { %v6028_v18 = vpop.eup %5305  ;;  %v1414_v40 = vmul.f32 1.442695, %v1366_v43 }
 0x3fd   : > { %v1322_v17 = vpop.xlane.xlu1 %1321  ;;  %v1488_v36 = vsel %vm859_vm2, %v6028_v18, 0.0 }
 0x3fe   : > { %1489 = vadd.xlane.f32.xlu0 %v1488_v36  ;;  %5313 = vpow2.f32 %v1414_v40  ;;  %v1372_v48 = vsub.f32 %v5902_v49, %v1322_v17  ;;  %v1373_v40 = vsub.f32 %v5870_v52, %v1325_v23  ;;  %v1331_v17 = vpop.xlane.xlu0 %1330 }
 0x3ff   : > { %5315 = vpow2.f32 %v1418_v27 }
 0x400   : > { %v6033_v14 = vpop.eup %5307  ;;  %5317 = vpow2.f32 %v1420_v3  ;;  %v1426_v56 = vmul.f32 1.442695, %v1372_v48 }
 0x401   : > { %v1316_v20 = vpop.xlane.xlu1 %1315  ;;  %v1482_v44 = vsel %vm859_vm2, %v6033_v14, 0.0  ;;  %v6038_v2 = vpop.eup %5309 }
 0x402   : > { %1483 = vadd.xlane.f32.xlu0 %v1482_v44  ;;  %v1491_v0 = vsel %vm859_vm2, %v6038_v2, 0.0  ;;  %v6043_v61 = vpop.eup %5311  ;;  %v1370_v5 = vsub.f32 %v5917_v9, %v1316_v20  ;;  %5319 = vpow2.f32 %v1426_v56  ;;  %v1371_v9 = vsub.f32 %v5863_v62, %v1319_v54  ;;  %v1337_v52 = vpop.xlane.xlu0 %1336 }
 0x403   : > { %v1485_v4 = vsel %vm859_vm2, %v6043_v61, 0.0  ;;  %v1428_v20 = vmul.f32 1.442695, %v1373_v40  ;;  %v1367_v56 = vsub.f32 %v5835_v19, %v6019_v35 }
 0x404   : > { %v1422_v36 = vmul.f32 1.442695, %v1370_v5 }
 0x405   : > { %v1334_v21 = vpop.xlane.xlu1 %1333 }
 0x406   : > { %1492 = vadd.xlane.f32.xlu0 %v1491_v0  ;;  %5321 = vpow2.f32 %v1422_v36  ;;  %v1424_v0 = vmul.f32 1.442695, %v1371_v9  ;;  %v1343_v40 = vpop.xlane.xlu0 %1342  ;;  %v1376_v9 = vsub.f32 %v5930_v26, %v1334_v21 }
 0x407   : > { %1624 = vrot.lane.b32.xlu1 %v5671_v53, %s5438_s17  ;;  %5323 = vpow2.f32 %v1428_v20 }
 0x408   : > { %v6050_v49 = vpop.eup %5313  ;;  %5325 = vpow2.f32 %v1424_v0 }
 0x409   : > { %v1328_v43 = vpop.xlane.xlu1 %1327  ;;  %v1494_v53 = vsel %vm859_vm2, %v6050_v49, 0.0  ;;  %v6055_v27 = vpop.eup %5315 }
 0x40a   : > { %1486 = vadd.xlane.f32.xlu0 %v1485_v4  ;;  %v1500_v3 = vsel %vm859_vm2, %v6055_v27, 0.0  ;;  %v6060_v48 = vpop.eup %5317  ;;  %v1374_v23 = vsub.f32 %v5939_v58, %v1328_v43  ;;  %v1375_v4 = vsub.f32 %v5891_v22, %v1331_v17  ;;  %v1377_v58 = vsub.f32 %v5898_v39, %v1337_v52  ;;  %v1349_v39 = vpop.xlane.xlu0 %1348 }
 0x40b   : > { %v1503_v62 = vsel %vm859_vm2, %v6060_v48, 0.0  ;;  %v1434_v52 = vmul.f32 1.442695, %v1376_v9  ;;  %v1381_v26 = vsub.f32 %v5926_v6, %v1349_v39 }
 0x40c   : > { %v6067_v54 = vpop.eup %5319  ;;  %v1430_v36 = vmul.f32 1.442695, %v1374_v23  ;;  %v1432_v43 = vmul.f32 1.442695, %v1375_v4  ;;  %v1436_v20 = vmul.f32 1.442695, %v1377_v58 }
 0x40d   : > { %v1346_v11 = vpop.xlane.xlu1 %1345  ;;  %v1512_v19 = vsel %vm859_vm2, %v6067_v54, 0.0 }
 0x40e   : > { %1495 = vadd.xlane.f32.xlu0 %v1494_v53  ;;  %v1416_v53 = vmul.f32 1.442695, %v1367_v56  ;;  %5327 = vpow2.f32 %v1430_v36 }
 0x410   : > { %v6073_v35 = vpop.eup %5321  ;;  %5329 = vpow2.f32 %v1416_v53 }
 0x411   : > { %v1340_v44 = vpop.xlane.xlu1 %1339  ;;  %v1506_v22 = vsel %vm859_vm2, %v6073_v35, 0.0  ;;  %v6079_v17 = vpop.eup %5323  ;;  %5331 = vpow2.f32 %v1432_v43 }
 0x412   : > { %1501 = vadd.xlane.f32.xlu0 %v1500_v3  ;;  %v1379_v3 = vsub.f32 %v5919_v13, %v1343_v40  ;;  %v1378_v0 = vsub.f32 %v5953_v12, %v1340_v44  ;;  %5333 = vpow2.f32 %v1436_v20  ;;  %v1515_v21 = vsel %vm859_vm2, %v6079_v17, 0.0  ;;  %v6085_v56 = vpop.eup %5325 }
 0x413   : > { %5335 = vpow2.f32 %v1434_v52  ;;  %v1380_v13 = vsub.f32 %v5946_v63, %v1346_v11  ;;  %v1509_v4 = vsel %vm859_vm2, %v6085_v56, 0.0 }
 0x414   : > { %v1440_v23 = vmul.f32 1.442695, %v1379_v3 }
 0x415   : > { %v1623_v5 = vpop.permute.xlu1 %1622  ;;  %v1442_v6 = vmul.f32 1.442695, %v1380_v13 }
 0x416   : > { %1504 = vadd.xlane.f32.xlu0 %v1503_v62  ;;  %5090 = vmatprep.subr.bf16.mxu0 %v1623_v5  ;;  %5337 = vpow2.f32 %v1440_v23  ;;  %v1444_v62 = vmul.f32 1.442695, %v1381_v26 }
 0x417   : > { %5091 = vmatpush3.bf16.msra.mxu0 %v1623_v5  ;;  %v1438_v5 = vmul.f32 1.442695, %v1378_v0 }
 0x418   : > { %v6090_v12 = vpop.eup %5327 }
 0x419   : > { %5339 = vpow2.f32 %v1438_v5  ;;  %v1518_v40 = vsel %vm859_vm2, %v6090_v12, 0.0 }
 0x41a   : > { %1513 = vadd.xlane.f32.xlu0 %v1512_v19  ;;  %v6092_v44 = vpop.eup %5329  ;;  %5341 = vpow2.f32 %v1444_v62 }
 0x41b   : > { %v6096_v36 = vpop.eup %5331  ;;  %v1497_v63 = vsel %vm859_vm2, %v6092_v44, 0.0  ;;  %5343 = vpow2.f32 %v1442_v6 }
 0x41c   : > { %v6100_v11 = vpop.eup %5333  ;;  %v1521_v53 = vsel %vm859_vm2, %v6096_v36, 0.0 }
 0x41d   : > { %v6104_v58 = vpop.eup %5335  ;;  %v1527_v19 = vsel %vm859_vm2, %v6100_v11, 0.0 }
 0x41e   : > { %1507 = vadd.xlane.f32.xlu0 %v1506_v22  ;;  %v1524_v9 = vsel %vm859_vm2, %v6104_v58, 0.0 }
 0x420   : > { %v6108_v43 = vpop.eup %5337 }
 0x421   : > { %v1533_v3 = vsel %vm859_vm2, %v6108_v43, 0.0 }
 0x422   : > { %1516 = vadd.xlane.f32.xlu0 %v1515_v21 }
 0x423   : > { %v6112_v20 = vpop.eup %5339 }
 0x424   : > { %v6116_v22 = vpop.eup %5341  ;;  %v1530_v39 = vsel %vm859_vm2, %v6112_v20, 0.0 }
 0x425   : > { %v6120_v52 = vpop.eup %5343  ;;  %v1539_v0 = vsel %vm859_vm2, %v6116_v22, 0.0 }
 0x426   : > { %1510 = vadd.xlane.f32.xlu0 %v1509_v4  ;;  %v1536_v23 = vsel %vm859_vm2, %v6120_v52, 0.0 }
 0x42a   : > { %1519 = vadd.xlane.f32.xlu0 %v1518_v40 }
 0x42b   : > { %1498 = vadd.xlane.f32.xlu1 %v1497_v63 }
 0x42e   : > { %1522 = vadd.xlane.f32.xlu0 %v1521_v53 }
 0x42f   : > { %1528 = vadd.xlane.f32.xlu1 %v1527_v19 }
 0x432   : > { %1525 = vadd.xlane.f32.xlu0 %v1524_v9 }
 0x433   : > { %1534 = vadd.xlane.f32.xlu1 %v1533_v3 }
 0x436   : > { %1531 = vadd.xlane.f32.xlu0 %v1530_v39 }
 0x437   : > { %1540 = vadd.xlane.f32.xlu1 %v1539_v0 }
 0x43a   : > { %1537 = vadd.xlane.f32.xlu0 %v1536_v23 }
 0x462   : > { %v1454_v26 = vpop.xlane.xlu1 %1453 }
 0x466   : > { %v1448_v21 = vpop.xlane.xlu1 %1447 }
 0x467   : > { %v1457_v13 = vpop.xlane.xlu0 %1456  ;;  %5345 = vrcp.f32 %v1448_v21 }
 0x46b   : > { %v1451_v5 = vpop.xlane.xlu0 %1450 }
 0x46c   : > { %5347 = vrcp.f32 %v1451_v5 }
 0x46d   : > { %5349 = vrcp.f32 %v1457_v13 }
 0x46e   : > { %5351 = vrcp.f32 %v1454_v26 }
 0x46f   : > { %v1466_v62 = vpop.xlane.xlu1 %1465 }
 0x471   : > { %v5346_v4 = vpop.eup %5345 }
 0x472   : > { %v1543_v63 = vmul.f32 %v5346_v4, %v5970_v10 }
 0x473   : > { %v1460_v19 = vpop.xlane.xlu1 %1459 }
 0x474   : > { %5353 = vrcp.f32 %v1460_v19 }
 0x476   : > { %v5348_v6 = vpop.eup %5347 }
 0x477   : > { %v1469_v40 = vpop.xlane.xlu0 %1468  ;;  %v1545_v53 = vmul.f32 %v5348_v6, %v5980_v45  ;;  %v5350_v0 = vpop.eup %5349 }
 0x478   : > { %v5352_v5 = vpop.eup %5351  ;;  %v1549_v45 = vmul.f32 %v5350_v0, %v5973_v15 }
 0x479   : > { %v1606_v9 = vpack.c.bf16 %v1545_v53, %v1543_v63  ;;  %v1547_v6 = vmul.f32 %v5352_v5, %v5966_v32 }
 0x47b   : > { %v1463_v3 = vpop.xlane.xlu0 %1462  ;;  %5094 = vmatprep.mubr.msk.bf16.mxu0 %vm859_vm2, %v1606_v9 }
 0x47c   : > { %5355 = vrcp.f32 %v1463_v3 }
 0x47d   : > { %5357 = vrcp.f32 %v1469_v40  ;;  %v1607_v40 = vpack.c.bf16 %v1549_v45, %v1547_v6 }
 0x47e   : > { %5359 = vrcp.f32 %v1466_v62  ;;  %v5354_v34 = vpop.eup %5353 }
 0x47f   : > { %v1478_v39 = vpop.xlane.xlu1 %1477  ;;  %v1481_v23 = vpop.xlane.xlu0 %1480  ;;  %v1551_v62 = vmul.f32 %v5354_v34, %v5991_v8 }
 0x483   : > { %v1472_v21 = vpop.xlane.xlu1 %1471 }
 0x484   : > { %5361 = vrcp.f32 %v1472_v21 }
 0x485   : > { %5363 = vrcp.f32 %v1481_v23 }
 0x486   : > { %v5356_v10 = vpop.eup %5355 }
 0x487   : > { %v1475_v13 = vpop.xlane.xlu0 %1474  ;;  %v1625_v26 = vpop.permute.xlu1 %1624  ;;  %v1553_v4 = vmul.f32 %v5356_v10, %v6001_v55 }
 0x488   : > { %5365 = vrcp.f32 %v1475_v13  ;;  %5092 = vmatprep.subr.bf16.mxu0 %v1625_v26  ;;  %v5358_v63 = vpop.eup %5357 }
 0x489   : > { %5367 = vrcp.f32 %v1478_v39  ;;  %5093 = vmatpush3.bf16.msra.mxu0 %v1625_v26  ;;  %v1608_v19 = vpack.c.bf16 %v1553_v4, %v1551_v62  ;;  %v5360_v15 = vpop.eup %5359  ;;  %v1557_v9 = vmul.f32 %v5358_v63, %v5996_v59 }
 0x48a   : > { %v1555_v32 = vmul.f32 %v5360_v15, %v5986_v57 }
 0x48b   : > { %v1490_v53 = vpop.xlane.xlu0 %1489 }
 0x48c   : > { %5095 = vmatmul.mubr.msk.bf16.vlgmr.msra.gmra.mrb[4].mxu0 %vm859_vm2, %v1607_v40  ;;  %v1609_v23 = vpack.c.bf16 %v1557_v9, %v1555_v32 }
 0x48d   : > { %5098 = vmatprep.mubr.msk.bf16.mxu0 %vm859_vm2, %v1608_v19 }
 0x48e   : > { %v5362_v3 = vpop.eup %5361 }
 0x48f   : > { %v1484_v55 = vpop.xlane.xlu0 %1483  ;;  %v5364_v0 = vpop.eup %5363  ;;  %v1559_v8 = vmul.f32 %v5362_v3, %v6016_v16 }
 0x490   : > { %v1565_v45 = vmul.f32 %v5364_v0, %v6005_v1 }
 0x492   : > { %v5366_v39 = vpop.eup %5365 }
 0x493   : > { %v5368_v21 = vpop.eup %5367  ;;  %v1493_v34 = vpop.xlane.xlu0 %1492  ;;  %v1561_v5 = vmul.f32 %v5366_v39, %v6023_v60 }
 0x494   : > { %5099 = vmatmul.mubr.msk.bf16.gmra.mrb[8].mxu0 %vm859_vm2, %v1609_v23  ;;  %5369 = vrcp.f32 %v1493_v34  ;;  %v1563_v59 = vmul.f32 %v5368_v21, %v6008_v7 }
 0x495   : > { %v1610_v10 = vpack.c.bf16 %v1561_v5, %v1559_v8  ;;  %5371 = vrcp.f32 %v1484_v55 }
 0x496   : > { %5373 = vrcp.f32 %v1490_v53  ;;  %v1611_v13 = vpack.c.bf16 %v1565_v45, %v1563_v59 }
 0x497   : > { %v1487_v57 = vpop.xlane.xlu0 %1486  ;;  %5102 = vmatprep.mubr.msk.bf16.mxu0 %vm859_vm2, %v1610_v10 }
 0x498   : > { %5375 = vrcp.f32 %v1487_v57 }
 0x49b   : > { %v1496_v26 = vpop.xlane.xlu0 %1495 }
 0x49c   : > { %5103 = vmatmul.mubr.msk.bf16.gmra.mrb[12].mxu0 %vm859_vm2, %v1611_v13  ;;  %5377 = vrcp.f32 %v1496_v26 }
 0x49e   : > { %v5370_v16 = vpop.eup %5369 }
 0x49f   : > { %v1502_v60 = vpop.xlane.xlu0 %1501  ;;  %v5372_v4 = vpop.eup %5371  ;;  %v1573_v40 = vmul.f32 %v5370_v16, %v6038_v2 }
 0x4a0   : > { %v5374_v6 = vpop.eup %5373  ;;  %v1567_v7 = vmul.f32 %v5372_v4, %v6033_v14  ;;  %5379 = vrcp.f32 %v1502_v60 }
 0x4a1   : > { %v1571_v53 = vmul.f32 %v5374_v6, %v6028_v18 }
 0x4a2   : > { %v5376_v62 = vpop.eup %5375 }
 0x4a3   : > { %v1505_v63 = vpop.xlane.xlu0 %1504  ;;  %v1569_v1 = vmul.f32 %v5376_v62, %v6043_v61  ;;  %v1613_v15 = vpack.c.bf16 %v1573_v40, %v1571_v53 }
 0x4a4   : > { %5381 = vrcp.f32 %v1505_v63 }
 0x4a5   : > { %v1612_v19 = vpack.c.bf16 %v1569_v1, %v1567_v7 }
 0x4a6   : > { %v5378_v18 = vpop.eup %5377 }
 0x4a7   : > { %v1514_v9 = vpop.xlane.xlu0 %1513  ;;  %5106 = vmatprep.mubr.msk.bf16.mxu0 %vm859_vm2, %v1612_v19  ;;  %v1575_v45 = vmul.f32 %v5378_v18, %v6050_v49 }
 0x4a8   : > { %5107 = vmatmul.mubr.msk.bf16.gmra.mrb[16].mxu0 %vm859_vm2, %v1613_v15 }
 0x4aa   : > { %v5380_v0 = vpop.eup %5379 }
 0x4ab   : > { %v1508_v55 = vpop.xlane.xlu0 %1507  ;;  %v1579_v26 = vmul.f32 %v5380_v0, %v6055_v27 }
 0x4ae   : > { %v5382_v23 = vpop.eup %5381 }
 0x4af   : > { %v1517_v3 = vpop.xlane.xlu0 %1516  ;;  %v1581_v10 = vmul.f32 %v5382_v23, %v6060_v48 }
 0x4b1   : > { %v1615_v6 = vpack.c.bf16 %v1581_v10, %v1579_v26 }
 0x4b3   : > { %v1511_v32 = vpop.xlane.xlu0 %1510 }
 0x4b4   : > { %5383 = vrcp.f32 %v1511_v32 }
 0x4b5   : > { %5385 = vrcp.f32 %v1508_v55 }
 0x4b7   : > { %v1520_v2 = vpop.xlane.xlu0 %1519 }
 0x4b8   : > { %v1499_v14 = vpop.xlane.xlu1 %1498 }
 0x4b9   : > { %5387 = vrcp.f32 %v1499_v14 }
 0x4ba   : > { %5389 = vrcp.f32 %v1517_v3 }
 0x4bb   : > { %v1523_v61 = vpop.xlane.xlu0 %1522 }
 0x4bc   : > { %5391 = vrcp.f32 %v1523_v61  ;;  %v1529_v21 = vpop.xlane.xlu1 %1528 }
 0x4bd   : > { %5393 = vrcp.f32 %v1514_v9 }
 0x4be   : > { %v5384_v34 = vpop.eup %5383  ;;  %5395 = vrcp.f32 %v1520_v2 }
 0x4bf   : > { %v1526_v39 = vpop.xlane.xlu0 %1525  ;;  %v5386_v8 = vpop.eup %5385  ;;  %v1585_v13 = vmul.f32 %v5384_v34, %v6085_v56 }
 0x4c0   : > { %5397 = vrcp.f32 %v1526_v39  ;;  %v1535_v16 = vpop.xlane.xlu1 %1534  ;;  %v1583_v4 = vmul.f32 %v5386_v8, %v6073_v35 }
 0x4c2   : > { %v1616_v48 = vpack.c.bf16 %v1585_v13, %v1583_v4 }
 0x4c3   : > { %v5388_v5 = vpop.eup %5387  ;;  %v1532_v59 = vpop.xlane.xlu0 %1531 }
 0x4c4   : > { %v1577_v57 = vmul.f32 %v5388_v5, %v6092_v44  ;;  %5399 = vrcp.f32 %v1532_v59  ;;  %v5390_v62 = vpop.eup %5389  ;;  %v1541_v63 = vpop.xlane.xlu1 %1540 }
 0x4c5   : > { %5401 = vrcp.f32 %v1529_v21  ;;  %v1589_v44 = vmul.f32 %v5390_v62, %v6079_v17 }
 0x4c6   : > { %v1614_v60 = vpack.c.bf16 %v1577_v57, %v1575_v45  ;;  %v5392_v40 = vpop.eup %5391  ;;  %5403 = vrcp.f32 %v1535_v16 }
 0x4c7   : > { %v5394_v49 = vpop.eup %5393  ;;  %v1538_v56 = vpop.xlane.xlu0 %1537  ;;  %v1593_v35 = vmul.f32 %v5392_v40, %v6096_v36 }
 0x4c8   : > { %5110 = vmatprep.mubr.msk.bf16.mxu0 %vm859_vm2, %v1614_v60  ;;  %v5396_v27 = vpop.eup %5395  ;;  %v1587_v7 = vmul.f32 %v5394_v49, %v6067_v54  ;;  %5405 = vrcp.f32 %v1538_v56 }
 0x4c9   : > { %5111 = vmatmul.mubr.msk.bf16.gmra.mrb[20].mxu0 %vm859_vm2, %v1615_v6  ;;  %v1591_v1 = vmul.f32 %v5396_v27, %v6090_v12  ;;  %5407 = vrcp.f32 %v1541_v63 }
 0x4ca   : > { %5114 = vmatprep.mubr.msk.bf16.mxu0 %vm859_vm2, %v1616_v48  ;;  %v1617_v53 = vpack.c.bf16 %v1589_v44, %v1587_v7  ;;  %v5398_v19 = vpop.eup %5397 }
 0x4cb   : > { %v1618_v15 = vpack.c.bf16 %v1593_v35, %v1591_v1  ;;  %v1595_v36 = vmul.f32 %v5398_v19, %v6104_v58 }
 0x4ce   : > { %v5400_v9 = vpop.eup %5399 }
 0x4cf   : > { %v5402_v55 = vpop.eup %5401  ;;  %v1599_v3 = vmul.f32 %v5400_v9, %v6112_v20  ;;  %v5151_v20 = vld [vmem:[%s5557_s21] sm:$0xff]  }
 0x4d0   : > { %v5404_v17 = vpop.eup %5403  ;;  %v1597_v54 = vmul.f32 %v5402_v55, %v6100_v11  ;;  %5126 = vmatprep.subr.bf16.mxu0 %v5151_v20  ;;  %v5152_v11 = vld [vmem:[%s5557_s21 + $0x8] sm:$0xff]  }
 0x4d1   : > { %5115 = vmatmul.mubr.msk.bf16.gmra.mrb[24].mxu0 %vm859_vm2, %v1617_v53  ;;  %v1601_v12 = vmul.f32 %v5404_v17, %v6108_v43 }
 0x4d2   : > { %5118 = vmatprep.mubr.msk.bf16.mxu0 %vm859_vm2, %v1618_v15  ;;  %v1619_v32 = vpack.c.bf16 %v1597_v54, %v1595_v36  ;;  %v5406_v2 = vpop.eup %5405  ;;  %5127 = vmatpush3.bf16.msra.mxu0 %v5151_v20 }
 0x4d3   : > { %v1620_v14 = vpack.c.bf16 %v1601_v12, %v1599_v3  ;;  %v5408_v61 = vpop.eup %5407  ;;  %v1603_v18 = vmul.f32 %v5406_v2, %v6120_v52  ;;  %5128 = vmatprep.subr.bf16.mxu0 %v5152_v11 }
 0x4d4   : > { %v1605_v0 = vmul.f32 %v5408_v61, %v6116_v22 }
 0x4d6   : > { %v1621_v58 = vpack.c.bf16 %v1605_v0, %v1603_v18  ;;  %5129 = vmatpush3.bf16.msra.mxu0 %v5152_v11 }
 0x4d9   : > { %5119 = vmatmul.mubr.msk.bf16.gmra.mrb[28].mxu0 %vm859_vm2, %v1619_v32 }
 0x4da   : > { %5122 = vmatprep.mubr.msk.bf16.mxu0 %vm859_vm2, %v1620_v14 }
 0x4e1   : > { %5123 = vmatmul.mubr.msk.bf16.gmra.mrb[32].mxu0 %vm859_vm2, %v1621_v58 }
 0x55f   : > { %v5096_v43 = vpop.f32.mrb[4].mxu0 }
 0x560   : > { %v1710_v39 = vpop.f32.mrb[5].mxu0  ;;  %v1839_v8 = vmul.f32 %v5096_v43, %v5648_v37 }
 0x561   : > { %v5097_v23 = vpop.f32.mrb[6].mxu0  ;;  %v1837_v22 = vmul.f32 %v1710_v39, %v5648_v37 }
 0x562   : > { %v1713_v21 = vpop.f32.mrb[7].mxu0  ;;  %v1840_v45 = vmul.f32 %v5097_v23, %v5648_v37 }
 0x563   : > { %v1838_v16 = vmul.f32 %v1713_v21, %v5648_v37 }
 0x567   : > { %v5100_v34 = vpop.f32.mrb[8].mxu0 }
 0x568   : > { %v1847_v52 = vmul.f32 %v5100_v34, %v5651_v38  ;;  %v1726_v5 = vpop.f32.mrb[9].mxu0 }
 0x569   : > { %v1845_v10 = vmul.f32 %v1726_v5, %v5651_v38  ;;  %v5101_v59 = vpop.f32.mrb[10].mxu0 }
 0x56a   : > { %v1851_v57 = vadd.f32 %v1847_v52, %v1839_v8  ;;  %v1848_v13 = vmul.f32 %v5101_v59, %v5651_v38  ;;  %v1729_v26 = vpop.f32.mrb[11].mxu0 }
 0x56b   : > { %v1849_v60 = vadd.f32 %v1845_v10, %v1837_v22  ;;  %v1846_v4 = vmul.f32 %v1729_v26, %v5651_v38 }
 0x56c   : > { %v1852_v6 = vadd.f32 %v1848_v13, %v1840_v45 }
 0x56d   : > { %v1850_v62 = vadd.f32 %v1846_v4, %v1838_v16 }
 0x56f   : > { %v5104_v48 = vpop.f32.mrb[12].mxu0 }
 0x570   : > { %v1855_v40 = vmul.f32 %v5104_v48, %v5654_v41  ;;  %v1742_v49 = vpop.f32.mrb[13].mxu0 }
 0x571   : > { %v1853_v27 = vmul.f32 %v1742_v49, %v5654_v41  ;;  %v5105_v56 = vpop.f32.mrb[14].mxu0 }
 0x572   : > { %v1859_v44 = vadd.f32 %v1855_v40, %v1851_v57  ;;  %v1856_v35 = vmul.f32 %v5105_v56, %v5654_v41  ;;  %v1745_v63 = vpop.f32.mrb[15].mxu0 }
 0x573   : > { %v1857_v7 = vadd.f32 %v1853_v27, %v1849_v60  ;;  %v1854_v1 = vmul.f32 %v1745_v63, %v5654_v41 }
 0x574   : > { %v1860_v37 = vadd.f32 %v1856_v35, %v1852_v6 }
 0x575   : > { %v1858_v53 = vadd.f32 %v1854_v1, %v1850_v62 }
 0x57b   : > { %v5108_v19 = vpop.f32.mrb[16].mxu0 }
 0x57c   : > { %v1863_v38 = vmul.f32 %v5108_v19, %v5657_v42  ;;  %v1758_v15 = vpop.f32.mrb[17].mxu0 }
 0x57d   : > { %v1861_v9 = vmul.f32 %v1758_v15, %v5657_v42  ;;  %v5109_v55 = vpop.f32.mrb[18].mxu0 }
 0x57e   : > { %v1867_v17 = vadd.f32 %v1863_v38, %v1859_v44  ;;  %v1864_v36 = vmul.f32 %v5109_v55, %v5657_v42  ;;  %v1761_v3 = vpop.f32.mrb[19].mxu0 }
 0x57f   : > { %v1865_v54 = vadd.f32 %v1861_v9, %v1857_v7  ;;  %v1862_v12 = vmul.f32 %v1761_v3, %v5657_v42 }
 0x580   : > { %v1868_v32 = vadd.f32 %v1864_v36, %v1860_v37  ;;  %v4572_v36 = vld [vmem:[%s6748_s29] ss:$0 sm:$0xff] }
 0x581   : > { %v1866_v2 = vadd.f32 %v1862_v12, %v1858_v53 }
 0x59c   : > { %v5112_v14 = vpop.f32.mrb[20].mxu0 }
 0x59d   : > { %v1871_v41 = vmul.f32 %v5112_v14, %v5660_v46  ;;  %v1774_v61 = vpop.f32.mrb[21].mxu0 }
 0x59e   : > { %v1869_v18 = vmul.f32 %v1774_v61, %v5660_v46  ;;  %v5113_v0 = vpop.f32.mrb[22].mxu0  ;;  %v5425_v61 = vld [vmem:[#allocation2] sm:$0xff] }
 0x59f   : > { %v1875_v58 = vadd.f32 %v1871_v41, %v1867_v17  ;;  %v1872_v20 = vmul.f32 %v5113_v0, %v5660_v46  ;;  %v1777_v11 = vpop.f32.mrb[23].mxu0 }
 0x5a0   : > { %v1873_v43 = vadd.f32 %v1869_v18, %v1865_v54  ;;  %v1870_v39 = vmul.f32 %v1777_v11, %v5660_v46  ;;  %v5427_v11 = vld [vmem:[#allocation2 + $0x10] sm:$0xff] }
 0x5a1   : > { %v1876_v23 = vadd.f32 %v1872_v20, %v1868_v32 }
 0x5a2   : > { %v1874_v21 = vadd.f32 %v1870_v39, %v1866_v2 }
 0x5a4   : > { %v5116_v34 = vpop.f32.mrb[24].mxu0 }
 0x5a5   : > { %v1879_v42 = vmul.f32 %v5116_v34, %v5663_v47  ;;  %v1790_v8 = vpop.f32.mrb[25].mxu0 }
 0x5a6   : > { %v1877_v52 = vmul.f32 %v1790_v8, %v5663_v47  ;;  %v5117_v5 = vpop.f32.mrb[26].mxu0  ;;  %v2062_v8 = vld [vmem:[%s5575_s6] sm:$0xff] }
 0x5a7   : > { %v1883_v22 = vadd.f32 %v1879_v42, %v1875_v58  ;;  %v1880_v10 = vmul.f32 %v5117_v5, %v5663_v47  ;;  %v1793_v59 = vpop.f32.mrb[27].mxu0  ;;  %v5426_v58 = vld [vmem:[#allocation2 + $0x8] sm:$0xff]  ;;  %v2078_v5 = vld [vmem:[%s5575_s6 + $0x80] sm:$0xff] }
 0x5a8   : > { %v1881_v45 = vadd.f32 %v1877_v52, %v1873_v43  ;;  %v1878_v57 = vmul.f32 %v1793_v59, %v5663_v47  ;;  %v2070_v52 = vld [vmem:[%s5575_s6 + $0x40] sm:$0xff] }
 0x5a9   : > { %v1884_v13 = vadd.f32 %v1880_v10, %v1876_v23  ;;  %v5428_v23 = vld [vmem:[#allocation2 + $0x18] sm:$0xff]  ;;  %v4580_v10 = vcombine.high %v2062_v8, %v2070_v52  ;;  %v2086_v59 = vld [vmem:[%s5575_s6 + $0xc0] sm:$0xff] }
 0x5aa   : > { %v1882_v26 = vadd.f32 %v1878_v57, %v1874_v21  ;;  %v4595_v57 = vcombine.low %v2078_v5, %v2086_v59 }
 0x5ab   : > { %2344 = vmatprep.subr.bf16.mxu1 %v4580_v10 }
 0x5ac   : > { %v5120_v16 = vpop.f32.mrb[28].mxu0 }
 0x5ad   : > { %v1887_v46 = vmul.f32 %v5120_v16, %v5666_v50  ;;  %v1806_v60 = vpop.f32.mrb[29].mxu0 }
 0x5ae   : > { %v1885_v4 = vmul.f32 %v1806_v60, %v5666_v50  ;;  %v5121_v6 = vpop.f32.mrb[30].mxu0 }
 0x5af   : > { %v1891_v62 = vadd.f32 %v1887_v46, %v1883_v22  ;;  %v1888_v48 = vmul.f32 %v5121_v6, %v5666_v50  ;;  %v1809_v40 = vpop.f32.mrb[31].mxu0  ;;  %v4579_v22 = vcombine.low %v2062_v8, %v2070_v52  ;;  %v4577_v52 = vld [vmem:[%s6749_s27] ss:$0 sm:$0xff] }
 0x5b0   : > { %v1889_v49 = vadd.f32 %v1885_v4, %v1881_v45  ;;  %v1886_v27 = vmul.f32 %v1809_v40, %v5666_v50  ;;  %v4596_v45 = vcombine.high %v2078_v5, %v2086_v59 }
 0x5b1   : > { %v1892_v56 = vadd.f32 %v1888_v48, %v1884_v13  ;;  %2345 = vmatpush1.bf16.msra.mxu1 %v4579_v22 }
 0x5b2   : > { %v1890_v44 = vadd.f32 %v1886_v27, %v1882_v26  ;;  %2346 = vmatprep.subr.bf16.mxu1 %v4596_v45 }
 0x5b4   : > { %v5124_v35 = vpop.f32.mrb[32].mxu0 }
 0x5b5   : > { %v1895_v47 = vmul.f32 %v5124_v35, %v5669_v51  ;;  %v1822_v63 = vpop.f32.mrb[33].mxu0  ;;  %2347 = vmatpush1.bf16.msra.mxu1 %v4595_v57  ;;  %v4578_v57 = vld [vmem:[%s6750_s23] ss:$0 sm:$0xff] }
 0x5b6   : > { %v1893_v7 = vmul.f32 %v1822_v63, %v5669_v51  ;;  %v5125_v1 = vpop.f32.mrb[34].mxu0 }
 0x5b7   : > { %v1899_v37 = vadd.f32 %v1895_v47, %v1891_v62  ;;  %v1896_v53 = vmul.f32 %v5125_v1, %v5669_v51  ;;  %v1825_v19 = vpop.f32.mrb[35].mxu0 }
 0x5b8   : > { %v1897_v38 = vadd.f32 %v1893_v7, %v1889_v49  ;;  %v1894_v15 = vmul.f32 %v1825_v19, %v5669_v51  ;;  %v2071_v19 = vld [vmem:[%s5575_s6 + $0x48] sm:$0xff] }
 0x5b9   : > { %v1900_v9 = vadd.f32 %v1896_v53, %v1892_v56  ;;  %v2063_v53 = vld [vmem:[%s5575_s6 + $0x8] sm:$0xff] }
 0x5ba   : > { %v1898_v55 = vadd.f32 %v1894_v15, %v1890_v44  ;;  %v4581_v15 = vcombine.low %v2063_v53, %v2071_v19 }
 0x5bb   : > { %v1902_v50 = vpack.c.bf16 %v1900_v9, %v1899_v37  ;;  %v2079_v9 = vld [vmem:[%s5575_s6 + $0x88] sm:$0xff] }
 0x5bc   : > { %v1901_v17 = vpack.c.bf16 %v1898_v55, %v1897_v38  ;;  %v4582_v38 = vcombine.high %v2063_v53, %v2071_v19  ;;  %v2087_v55 = vld [vmem:[%s5575_s6 + $0xc8] sm:$0xff] }
 0x5be   : > { %5130 = vmatprep.mubr.msk.bf16.mxu0 %vm859_vm2, %v1901_v17  ;;  %2397 = vmatprep.subr.bf16.mxu0 %v4582_v38  ;;  %v5439_v17 = vmov 0  }
 0x5bf   : > { %5131 = vmatmul.mubr.msk.bf16.vlgmr.msra.gmra.mrb[36].mxu0 %vm859_vm2, %v1902_v50  ;;  %v4598_v50 = vcombine.high %v2079_v9, %v2087_v55  ;;  %2376 = vmatprep.mubr.bf16.mxu1 %v5439_v17 }
 0x5c0   : > { %2398 = vmatpush1.bf16.msra.mxu0 %v4581_v15  ;;  %2429 = vmatprep.mubr.bf16.mxu0 %v5439_v17 }
 0x5c1   : > { %2399 = vmatprep.subr.bf16.mxu0 %v4598_v50  ;;  %v2082_v50 = vld [vmem:[%s5575_s6 + $0xa0] sm:$0xff] }
 0x692   : > { %v5132_v3 = vpop.f32.mrb[36].mxu0 }
 0x693   : > { %v1966_v54 = vpop.f32.mrb[37].mxu0  ;;  %v1975_v12 = vadd.f32 %v5132_v3, %v4572_v36  ;;  %v2064_v3 = vld [vmem:[%s5575_s6 + $0x10] sm:$0xff] }
 0x694   : > { %v1967_v32 = vadd.f32 %v4572_v36, %v1966_v54  ;;  %v5133_v2 = vpop.f32.mrb[38].mxu0  ;;  %v2072_v54 = vld [vmem:[%s5575_s6 + $0x50] sm:$0xff] }
 0x695   : > { %v1969_v14 = vpop.f32.mrb[39].mxu0  ;;  %v1978_v51 = vadd.f32 %v5133_v2, %v4572_v36  ;;  %v1983_v43 = vadd.f32 %v5427_v11, %v1975_v12  ;;  %v2065_v12 = vld [vmem:[%s5575_s6 + $0x18] sm:$0xff]  ;;  %v4584_v2 = vcombine.high %v2064_v3, %v2072_v54 }
 0x696   : > { %v1970_v41 = vadd.f32 %v4572_v36, %v1969_v14  ;;  %v1981_v18 = vadd.f32 %v5425_v61, %v1967_v32  ;;  %v4597_v36 = vcombine.low %v2079_v9, %v2087_v55  ;;  %v4583_v32 = vcombine.low %v2064_v3, %v2072_v54  ;;  %v2073_v14 = vld [vmem:[%s5575_s6 + $0x58] sm:$0xff]  ;;  %v2083_v3 = vld [vmem:[%s5575_s6 + $0xa8] sm:$0xff] }
 0x697   : > { %v1984_v21 = vadd.f32 %v5428_v23, %v1978_v51  ;;  %v1993_v34 = vsel %vm859_vm2, %v1983_v43, 0.0  ;;  %v4585_v51 = vcombine.low %v2065_v12, %v2073_v14  ;;  %2450 = vmatprep.subr.bf16.mxu1 %v4584_v2  ;;  %v2091_v54 = vld [vmem:[%s5575_s6 + $0xe8] sm:$0xff] }
 0x698   : > { %v1987_v0 = vsel %vm859_vm2, %v1981_v18, 0.0  ;;  %v1982_v20 = vadd.f32 %v5426_v58, %v1970_v41  ;;  %2400 = vmatpush1.bf16.msra.mxu0 %v4597_v36  ;;  %v4586_v41 = vcombine.high %v2065_v12, %v2073_v14  ;;  %v2090_v36 = vld [vmem:[%s5575_s6 + $0xe0] sm:$0xff]  ;;  %v4606_v14 = vcombine.high %v2083_v3, %v2091_v54 }
 0x699   : > { %1988 = vadd.xlane.f32.xlu0 %v1987_v0  ;;  %v1996_v42 = vsel %vm859_vm2, %v1984_v21, 0.0  ;;  %v4604_v2 = vcombine.high %v2082_v50, %v2090_v36 }
 0x69a   : > { %v1990_v39 = vsel %vm859_vm2, %v1982_v20, 0.0  ;;  %2503 = vmatprep.subr.bf16.mxu0 %v4586_v41  ;;  %v2076_v41 = vld [vmem:[%s5575_s6 + $0x70] sm:$0xff] }
 0x69b   : > { %1991 = vadd.xlane.f32.xlu1 %v1990_v39 }
 0x69d   : > { %1994 = vadd.xlane.f32.xlu0 %v1993_v34 }
 0x69f   : > { %1997 = vadd.xlane.f32.xlu1 %v1996_v42 }
 0x726   : > { %v1989_v13 = vpop.xlane.xlu0 %1988 }
 0x727   : > { %v2000_v26 = vmul.f32 0.03125, %v1989_v13 }
 0x728   : > { %v1992_v16 = vpop.xlane.xlu1 %1991 }
 0x729   : > { %v6223_v46 = vsub.f32 %v1981_v18, %v2000_v26  ;;  %v2001_v60 = vmul.f32 0.03125, %v1992_v16  ;;  %v2080_v16 = vld [vmem:[%s5575_s6 + $0x90] sm:$0xff] }
 0x72a   : > { %v1995_v4 = vpop.xlane.xlu0 %1994 }
 0x72b   : > { %v6225_v6 = vsub.f32 %v1982_v20, %v2001_v60  ;;  %v2002_v62 = vmul.f32 0.03125, %v1995_v4  ;;  %v2008_v48 = vmul.f32 %v6223_v46, %v6223_v46 }
 0x72c   : > { %v1998_v40 = vpop.xlane.xlu1 %1997 }
 0x72d   : > { %v6229_v49 = vsub.f32 %v1983_v43, %v2002_v62  ;;  %v2003_v27 = vmul.f32 0.03125, %v1998_v40  ;;  %v2012_v56 = vsel %vm859_vm2, %v2008_v48, 0.0  ;;  %v2009_v44 = vmul.f32 %v6225_v6, %v6225_v6  ;;  %v2088_v62 = vld [vmem:[%s5575_s6 + $0xd0] sm:$0xff]  ;;  %v2081_v48 = vld [vmem:[%s5575_s6 + $0x98] sm:$0xff] }
 0x72e   : > { %2013 = vadd.xlane.f32.xlu0 %v2012_v56  ;;  %v2089_v40 = vld [vmem:[%s5575_s6 + $0xd8] sm:$0xff]  ;;  %v4599_v53 = vcombine.low %v2080_v16, %v2088_v62 }
 0x72f   : > { %v6234_v35 = vsub.f32 %v1984_v21, %v2003_v27  ;;  %v2015_v47 = vsel %vm859_vm2, %v2009_v44, 0.0  ;;  %v2010_v63 = vmul.f32 %v6229_v49, %v6229_v49  ;;  %v4600_v44 = vcombine.high %v2080_v16, %v2088_v62  ;;  %v5159_v16 = vld [vmem:[%s5590_s28 + $0x8] sm:$0xff]   ;;  %v5162_v62 = vld [vmem:[%s5590_s28 + $0xd0] sm:$0xff]  }
 0x730   : > { %2016 = vadd.xlane.f32.xlu1 %v2015_v47  ;;  %v4602_v47 = vcombine.high %v2081_v48, %v2089_v40  ;;  %v4601_v19 = vcombine.low %v2081_v48, %v2089_v40  ;;  %v5163_v48 = vld [vmem:[%s5590_s28 + $0x10] sm:$0xff]  }
 0x731   : > { %v2018_v7 = vsel %vm859_vm2, %v2010_v63, 0.0  ;;  %v2011_v1 = vmul.f32 %v6234_v35, %v6234_v35  ;;  %v2066_v63 = vld [vmem:[%s5575_s6 + $0x20] sm:$0xff]  ;;  %v5164_v40 = vld [vmem:[%s5590_s28 + $0x90] sm:$0xff]  }
 0x732   : > { %2019 = vadd.xlane.f32.xlu0 %v2018_v7 }
 0x733   : > { %v2021_v37 = vsel %vm859_vm2, %v2011_v1, 0.0  ;;  %v2075_v1 = vld [vmem:[%s5575_s6 + $0x68] sm:$0xff] }
 0x734   : > { %2022 = vadd.xlane.f32.xlu1 %v2021_v37 }
 0x7bb   : > { %v2014_v61 = vpop.xlane.xlu0 %2013 }
 0x7bc   : > { %v2024_v18 = vmul.f32 0.03125, %v2014_v61  ;;  %v2069_v61 = vld [vmem:[%s5575_s6 + $0x38] sm:$0xff] }
 0x7bd   : > { %v2017_v0 = vpop.xlane.xlu1 %2016 }
 0x7be   : > { %v2028_v58 = vadd.f32 1e-05, %v2024_v18  ;;  %v2025_v20 = vmul.f32 0.03125, %v2017_v0  ;;  %v2077_v18 = vld [vmem:[%s5575_s6 + $0x78] sm:$0xff]  ;;  %v4603_v0 = vcombine.low %v2082_v50, %v2090_v36  ;;  %v5180_v50 = vld [vmem:[%s5590_s28 + $0xb0] sm:$0xff]  }
 0x7bf   : > { %v2020_v11 = vpop.xlane.xlu0 %2019  ;;  %v5181_v36 = vld [vmem:[%s5590_s28 + $0x78] sm:$0xff]  }
 0x7c0   : > { %5409 = vrsqrt.f32 %v2028_v58  ;;  %v2029_v43 = vadd.f32 1e-05, %v2025_v20  ;;  %v2026_v39 = vmul.f32 0.03125, %v2020_v11  ;;  %v4605_v58 = vcombine.low %v2083_v3, %v2091_v54  ;;  %v5182_v3 = vld [vmem:[%s5590_s28 + $0xf8] sm:$0xff]  }
 0x7c1   : > { %v2023_v23 = vpop.xlane.xlu1 %2022  ;;  %v4594_v11 = vcombine.high %v2069_v61, %v2077_v18  ;;  %v5183_v54 = vld [vmem:[%s5590_s28 + $0x38] sm:$0xff]  }
 0x7c2   : > { %5411 = vrsqrt.f32 %v2029_v43  ;;  %v2030_v21 = vadd.f32 1e-05, %v2026_v39  ;;  %v2027_v34 = vmul.f32 0.03125, %v2023_v23  ;;  %v2084_v43 = vld [vmem:[%s5575_s6 + $0xb0] sm:$0xff]  ;;  %v2085_v23 = vld [vmem:[%s5575_s6 + $0xb8] sm:$0xff] }
 0x7c3   : > { %v2092_v39 = vld [vmem:[%s5575_s6 + $0xf0] sm:$0xff] }
 0x7c4   : > { %5413 = vrsqrt.f32 %v2030_v21  ;;  %v2031_v42 = vadd.f32 1e-05, %v2027_v34  ;;  %v2093_v21 = vld [vmem:[%s5575_s6 + $0xf8] sm:$0xff] }
 0x7c6   : > { %5415 = vrsqrt.f32 %v2031_v42  ;;  %v4593_v42 = vcombine.low %v2069_v61, %v2077_v18 }
 0x7ca   : > { %v5410_v8 = vpop.eup %5409 }
 0x7cb   : > { %v2036_v5 = vmul.f32 %v5410_v8, %v6223_v46  ;;  %v4608_v8 = vcombine.high %v2084_v43, %v2092_v39 }
 0x7cc   : > { %v5412_v22 = vpop.eup %5411 }
 0x7cd   : > { %v2046_v10 = vmul.f32 %v4577_v52, %v2036_v5  ;;  %v2037_v59 = vmul.f32 %v5412_v22, %v6225_v6  ;;  %v4607_v5 = vcombine.low %v2084_v43, %v2092_v39  ;;  %v4609_v22 = vcombine.low %v2085_v23, %v2093_v21 }
 0x7ce   : > { %v5414_v45 = vpop.eup %5413 }
 0x7cf   : > { %v2047_v13 = vmul.f32 %v4577_v52, %v2037_v59  ;;  %v6266_v60 = vadd.f32 %v4578_v57, %v2046_v10  ;;  %v2038_v46 = vmul.f32 %v5414_v45, %v6229_v49  ;;  %v2074_v49 = vld [vmem:[%s5575_s6 + $0x60] sm:$0xff] }
 0x7d0   : > { %v5416_v26 = vpop.eup %5415  ;;  %v4588_v38 = vcombine.high %v2066_v63, %v2074_v49  ;;  %v4587_v12 = vcombine.low %v2066_v63, %v2074_v49  ;;  %v5153_v10 = vld [vmem:[%s5590_s28 + $0x40] sm:$0xff]  }
 0x7d1   : > { %v6268_v4 = vadd.f32 %v4578_v57, %v2047_v13  ;;  %v2039_v6 = vmul.f32 %v5416_v26, %v6234_v35  ;;  %v2048_v7 = vmul.f32 %v4577_v52, %v2038_v46  ;;  %v2067_v35 = vld [vmem:[%s5575_s6 + $0x28] sm:$0xff]  ;;  %v5154_v59 = vld [vmem:[%s5590_s28 + $0xc0] sm:$0xff]  }
 0x7d2   : > { %v4590_v15 = vcombine.high %v2067_v35, %v2075_v1  ;;  %v5155_v45 = vld [vmem:[%s5590_s28] sm:$0xff]   ;;  %v5157_v13 = vld [vmem:[%s5590_s28 + $0x48] sm:$0xff]  }
 0x7d3   : > { %v6277_v27 = vpack.c.bf16 %v6268_v4, %v6266_v60  ;;  %v2049_v56 = vmul.f32 %v4577_v52, %v2039_v6  ;;  %v6291_v9 = vadd.f32 %v4578_v57, %v2048_v7  ;;  %v4610_v52 = vcombine.high %v2085_v23, %v2093_v21  ;;  %v5158_v26 = vld [vmem:[%s5590_s28 + $0xc8] sm:$0xff]   ;;  %v5161_v6 = vld [vmem:[%s5590_s28 + $0x50] sm:$0xff]   ;;  %v5170_v63 = vld [vmem:[%s5590_s28 + $0xe0] sm:$0xff]  }
 0x7d4   : > { %v5160_v46 = vld [vmem:[%s5590_s28 + $0x88] sm:$0xff]   ;;  %v5171_v7 = vld [vmem:[%s5590_s28 + $0x20] sm:$0xff]  }
 0x7d5   : > { %4611 = vmatmul.mubr.msk.bf16.vlgmr.msra.gmra.mrb[32].mxu1 %vm859_vm2, %v6277_v27  ;;  %4613 = vmatmul.mubr.msk.bf16.vlgmr.msra.gmra.mrb[40].mxu0 %vm859_vm2, %v6277_v27  ;;  %v6289_v37 = vadd.f32 %v4578_v57, %v2049_v56  ;;  %v5156_v57 = vld [vmem:[%s5590_s28 + $0x80] sm:$0xff]   ;;  %v5167_v56 = vld [vmem:[%s5590_s28 + $0x18] sm:$0xff]  }
 0x7d6   : > { %2386 = vmatprep.mubr.bf16.mxu1 %v5439_v17  ;;  %2439 = vmatprep.mubr.bf16.mxu0 %v5439_v17  ;;  %v5172_v49 = vld [vmem:[%s5590_s28 + $0xa0] sm:$0xff]  }
 0x7d7   : > { %2451 = vmatpush1.bf16.msra.mxu1 %v4583_v32  ;;  %2504 = vmatpush1.bf16.msra.mxu0 %v4585_v51  ;;  %v6295_v55 = vpack.c.bf16 %v6289_v37, %v6291_v9  ;;  %v4589_v32 = vcombine.low %v2067_v35, %v2075_v1  ;;  %v2068_v51 = vld [vmem:[%s5575_s6 + $0x30] sm:$0xff]  ;;  %v5173_v35 = vld [vmem:[%s5590_s28 + $0x68] sm:$0xff]  }
 0x7d8   : > { %2452 = vmatprep.subr.bf16.mxu1 %v4600_v44  ;;  %2505 = vmatprep.subr.bf16.mxu0 %v4602_v47  ;;  %v4592_v20 = vcombine.high %v2068_v51, %v2076_v41  ;;  %v4591_v34 = vcombine.low %v2068_v51, %v2076_v41  ;;  %v5168_v44 = vld [vmem:[%s5590_s28 + $0x98] sm:$0xff]   ;;  %v5169_v47 = vld [vmem:[%s5590_s28 + $0x60] sm:$0xff]   ;;  %v5174_v1 = vld [vmem:[%s5590_s28 + $0xe8] sm:$0xff]  }
 0x7db   : > { %2453 = vmatpush1.bf16.msra.mxu1 %v4599_v53  ;;  %2506 = vmatpush1.bf16.msra.mxu0 %v4601_v19  ;;  %v5175_v53 = vld [vmem:[%s5590_s28 + $0x28] sm:$0xff]  }
 0x7dc   : > { %2556 = vmatprep.subr.bf16.mxu1 %v4588_v38  ;;  %2609 = vmatprep.subr.bf16.mxu0 %v4590_v15  ;;  %v5176_v19 = vld [vmem:[%s5590_s28 + $0xa8] sm:$0xff]   ;;  %v5177_v38 = vld [vmem:[%s5590_s28 + $0x70] sm:$0xff]  }
 0x7dd   : > { %4612 = vmatmul.mubr.msk.bf16.gmra.mrb[36].mxu1 %vm859_vm2, %v6295_v55  ;;  %4614 = vmatmul.mubr.msk.bf16.gmra.mrb[44].mxu0 %vm859_vm2, %v6295_v55  ;;  %v5178_v15 = vld [vmem:[%s5590_s28 + $0xf0] sm:$0xff]  }
 0x7de   : > { %2482 = vmatprep.mubr.bf16.mxu1 %v5439_v17  ;;  %2535 = vmatprep.mubr.bf16.mxu0 %v5439_v17 }
 0x7e5   : > { %4615 = vmatmul.mubr.msk.bf16.vlgmr.msra.gmra.mrb[40].mxu1 %vm859_vm2, %v6277_v27  ;;  %4617 = vmatmul.mubr.msk.bf16.vlgmr.msra.gmra.mrb[48].mxu0 %vm859_vm2, %v6277_v27 }
 0x7e6   : > { %2492 = vmatprep.mubr.bf16.mxu1 %v5439_v17  ;;  %2545 = vmatprep.mubr.bf16.mxu0 %v5439_v17 }
 0x7e7   : > { %2557 = vmatpush1.bf16.msra.mxu1 %v4587_v12  ;;  %2610 = vmatpush1.bf16.msra.mxu0 %v4589_v32  ;;  %v5184_v12 = vld [vmem:[%s5590_s28 + $0xb8] sm:$0xff]   ;;  %v5185_v32 = vld [vmem:[%s5590_s28 + $0x140] sm:$0xff]  }
 0x7e8   : > { %2558 = vmatprep.subr.bf16.mxu1 %v4604_v2  ;;  %2611 = vmatprep.subr.bf16.mxu0 %v4606_v14  ;;  %v5186_v2 = vld [vmem:[%s5590_s28 + $0x1c0] sm:$0xff]  }
 0x7e9   : > { %v6384_v14 = vld [vmem:[%s5580_s7] sm:$0xff] }
 0x7ea   : > { %v2101_v51 = vrot.slane %v6384_v14, %v5623_v24  ;;  %v2109_v41 = vrot.slane %v6384_v14, %v5635_v28  ;;  %v2105_v61 = vrot.slane %v6384_v14, %v5625_v25  ;;  %v2113_v18 = vrot.slane %v6384_v14, %v5637_v29 }
 0x7eb   : > { %2559 = vmatpush1.bf16.msra.mxu1 %v4603_v0  ;;  %2612 = vmatpush1.bf16.msra.mxu0 %v4605_v58 }
 0x7ec   : > { %2662 = vmatprep.subr.bf16.mxu1 %v4592_v20  ;;  %2715 = vmatprep.subr.bf16.mxu0 %v4594_v11 }
 0x7ed   : > { %4616 = vmatmul.mubr.msk.bf16.gmra.mrb[44].mxu1 %vm859_vm2, %v6295_v55  ;;  %4618 = vmatmul.mubr.msk.bf16.gmra.mrb[52].mxu0 %vm859_vm2, %v6295_v55 }
 0x7ee   : > { %2588 = vmatprep.mubr.bf16.mxu1 %v5439_v17  ;;  %2641 = vmatprep.mubr.bf16.mxu0 %v5439_v17 }
 0x7f5   : > { %4619 = vmatmul.mubr.msk.bf16.vlgmr.msra.gmra.mrb[48].mxu1 %vm859_vm2, %v6277_v27  ;;  %4621 = vmatmul.mubr.msk.bf16.vlgmr.msra.gmra.mrb[56].mxu0 %vm859_vm2, %v6277_v27 }
 0x7f6   : > { %2598 = vmatprep.mubr.bf16.mxu1 %v5439_v17  ;;  %2651 = vmatprep.mubr.bf16.mxu0 %v5439_v17 }
 0x7f7   : > { %2663 = vmatpush1.bf16.msra.mxu1 %v4591_v34  ;;  %2716 = vmatpush1.bf16.msra.mxu0 %v4593_v42 }
 0x7f8   : > { %2664 = vmatprep.subr.bf16.mxu1 %v4608_v8  ;;  %2717 = vmatprep.subr.bf16.mxu0 %v4610_v52 }
 0x7fb   : > { %2665 = vmatpush1.bf16.msra.mxu1 %v4607_v5  ;;  %2718 = vmatpush1.bf16.msra.mxu0 %v4609_v22 }
 0x7fc   : > { %4814 = vmatprep.subr.bf16.mxu1 %v5153_v10  ;;  %4842 = vmatprep.subr.bf16.mxu0 %v5154_v59 }
 0x7fd   : > { %4620 = vmatmul.mubr.msk.bf16.gmra.mrb[52].mxu1 %vm859_vm2, %v6295_v55  ;;  %4622 = vmatmul.mubr.msk.bf16.gmra.mrb[60].mxu0 %vm859_vm2, %v6295_v55 }
 0x7fe   : > { %2694 = vmatprep.mubr.bf16.mxu1 %v5439_v17  ;;  %2747 = vmatprep.mubr.bf16.mxu0 %v5439_v17 }
 0x805   : > { %4623 = vmatmul.mubr.msk.bf16.vlgmr.msra.gmra.mrb[56].mxu1 %vm859_vm2, %v6277_v27  ;;  %4625 = vmatmul.mubr.msk.bf16.vlgmr.msra.gmra.mrb[64].mxu0 %vm859_vm2, %v6277_v27  ;;  %v5166_v27 = vld [vmem:[%s5590_s28 + $0xd8] sm:$0xff]  }
 0x806   : > { %2704 = vmatprep.mubr.bf16.mxu1 %v5439_v17  ;;  %2757 = vmatprep.mubr.bf16.mxu0 %v5439_v17  ;;  %v5165_v17 = vld [vmem:[%s5590_s28 + $0x58] sm:$0xff]  }
 0x807   : > { %4815 = vmatpush3.bf16.msra.mxu1 %v5155_v45  ;;  %4843 = vmatpush3.bf16.msra.mxu0 %v5156_v57 }
 0x808   : > { %4816 = vmatprep.subr.bf16.mxu1 %v5157_v13  ;;  %4844 = vmatprep.subr.bf16.mxu0 %v5158_v26 }
 0x80b   : > { %4817 = vmatpush3.bf16.msra.mxu1 %v5159_v16  ;;  %4845 = vmatpush3.bf16.msra.mxu0 %v5160_v46 }
 0x80c   : > { %4818 = vmatprep.subr.bf16.mxu1 %v5161_v6  ;;  %4846 = vmatprep.subr.bf16.mxu0 %v5162_v62 }
 0x80d   : > { %4624 = vmatmul.mubr.msk.bf16.gmra.mrb[60].mxu1 %vm859_vm2, %v6295_v55  ;;  %4626 = vmatmul.mubr.msk.bf16.gmra.mrb[68].mxu0 %vm859_vm2, %v6295_v55  ;;  %v5179_v55 = vld [vmem:[%s5590_s28 + $0x30] sm:$0xff]  }
 0x80f   : > { %4819 = vmatpush3.bf16.msra.mxu1 %v5163_v48  ;;  %4847 = vmatpush3.bf16.msra.mxu0 %v5164_v40 }
 0x810   : > { %4820 = vmatprep.subr.bf16.mxu1 %v5165_v17  ;;  %4848 = vmatprep.subr.bf16.mxu0 %v5166_v27 }
 0x813   : > { %4821 = vmatpush3.bf16.msra.mxu1 %v5167_v56  ;;  %4849 = vmatpush3.bf16.msra.mxu0 %v5168_v44 }
 0x814   : > { %4822 = vmatprep.subr.bf16.mxu1 %v5169_v47  ;;  %4850 = vmatprep.subr.bf16.mxu0 %v5170_v63  ;;  %v5187_v47 = vld [vmem:[%s5590_s28 + $0x100] sm:$0xff]  }
 0x815   : > { %v5188_v63 = vld [vmem:[%s5590_s28 + $0x180] sm:$0xff]  }
 0x817   : > { %4823 = vmatpush3.bf16.msra.mxu1 %v5171_v7  ;;  %4851 = vmatpush3.bf16.msra.mxu0 %v5172_v49 }
 0x818   : > { %4824 = vmatprep.subr.bf16.mxu1 %v5173_v35  ;;  %4852 = vmatprep.subr.bf16.mxu0 %v5174_v1 }
 0x81b   : > { %4825 = vmatpush3.bf16.msra.mxu1 %v5175_v53  ;;  %4853 = vmatpush3.bf16.msra.mxu0 %v5176_v19  ;;  %v5189_v53 = vld [vmem:[%s5590_s28 + $0x148] sm:$0xff]  }
 0x81c   : > { %4826 = vmatprep.subr.bf16.mxu1 %v5177_v38  ;;  %4854 = vmatprep.subr.bf16.mxu0 %v5178_v15  ;;  %v5190_v19 = vld [vmem:[%s5590_s28 + $0x1c8] sm:$0xff]   ;;  %v6400_v38 = vrot.slane %v6384_v14, %v5639_v30 }
 0x81f   : > { %4827 = vmatpush3.bf16.msra.mxu1 %v5179_v55  ;;  %4855 = vmatpush3.bf16.msra.mxu0 %v5180_v50 }
 0x820   : > { %4828 = vmatprep.subr.bf16.mxu1 %v5181_v36  ;;  %4856 = vmatprep.subr.bf16.mxu0 %v5182_v3  ;;  %v6404_v3 = vrot.slane %v6384_v14, %v5643_v33 }
 0x823   : > { %4829 = vmatpush3.bf16.msra.mxu1 %v5183_v54  ;;  %4857 = vmatpush3.bf16.msra.mxu0 %v5184_v12 }
 0x824   : > { %4870 = vmatprep.subr.bf16.mxu1 %v5185_v32  ;;  %4898 = vmatprep.subr.bf16.mxu0 %v5186_v2 }
 0x8a8   : > { %v2378_v0 = vpop.f32.mrb[32].mxu1  ;;  %v2431_v58 = vpop.f32.mrb[40].mxu0 }
 0x8a9   : > { %v2379_v20 = vadd.f32 %v2378_v0, %v2101_v51  ;;  %v2432_v11 = vadd.f32 %v2431_v58, %v2109_v41  ;;  %v2380_v43 = vpop.f32.mrb[33].mxu1  ;;  %v2433_v39 = vpop.f32.mrb[41].mxu0  ;;  %v6408_v0 = vrot.slane %v6384_v14, %v5641_v31 }
 0x8aa   : > { %v2381_v23 = vadd.f32 %v2380_v43, %v2105_v61  ;;  %v2434_v21 = vadd.f32 %v2433_v39, %v2113_v18  ;;  %v2382_v34 = vpop.f32.mrb[34].mxu1  ;;  %v2435_v42 = vpop.f32.mrb[42].mxu0  ;;  %v5192_v43 = vld [vmem:[%s5590_s28 + $0x188] sm:$0xff]   ;;  %v6751_v39 = vld [vmem:[#allocation4_spill] sm:$0xff] }
 0x8ab   : > { %v2383_v8 = vadd.f32 %v2382_v34, %v2101_v51  ;;  %v2436_v52 = vadd.f32 %v2435_v42, %v2109_v41  ;;  %v2384_v5 = vpop.f32.mrb[35].mxu1  ;;  %v2437_v22 = vpop.f32.mrb[43].mxu0  ;;  %v2768_v45 = vmax.f32 %v2379_v20, 0.0  ;;  %v2770_v57 = vmax.f32 %v2432_v11, 0.0  ;;  %v5191_v11 = vld [vmem:[%s5590_s28 + $0x108] sm:$0xff]   ;;  %v5193_v42 = vld [vmem:[%s5590_s28 + $0x150] sm:$0xff]  }
 0x8ac   : > { %v2385_v10 = vadd.f32 %v2384_v5, %v2105_v61  ;;  %v2438_v59 = vadd.f32 %v2437_v22, %v2113_v18  ;;  %v2769_v16 = vmax.f32 %v2381_v23, 0.0  ;;  %v2771_v46 = vmax.f32 %v2434_v21, 0.0 }
 0x8ad   : > { %v2784_v13 = vmax.f32 %v2383_v8, 0.0  ;;  %v2786_v26 = vmax.f32 %v2436_v52, 0.0  ;;  %v5194_v8 = vld [vmem:[%s5590_s28 + $0x1d0] sm:$0xff]  }
 0x8ae   : > { %v2785_v6 = vmax.f32 %v2385_v10, 0.0  ;;  %v2787_v62 = vmax.f32 %v2438_v59, 0.0 }
 0x8af   : > { %v2832_v48 = vpack.c.bf16 %v2784_v13, %v2768_v45  ;;  %v2834_v40 = vpack.c.bf16 %v2786_v26, %v2770_v57  ;;  %v5195_v13 = vld [vmem:[%s5590_s28 + $0x110] sm:$0xff]  }
 0x8b0   : > { %v2833_v17 = vpack.c.bf16 %v2785_v6, %v2769_v16  ;;  %v2835_v27 = vpack.c.bf16 %v2787_v62, %v2771_v46  ;;  %v2388_v56 = vpop.f32.mrb[36].mxu1  ;;  %v2441_v44 = vpop.f32.mrb[44].mxu0  ;;  %v5196_v26 = vld [vmem:[%s5590_s28 + $0x190] sm:$0xff]  }
 0x8b1   : > { %v2389_v7 = vadd.f32 %v2388_v56, %v2101_v51  ;;  %v2442_v49 = vadd.f32 %v2441_v44, %v2109_v41  ;;  %v2390_v35 = vpop.f32.mrb[37].mxu1  ;;  %v2443_v1 = vpop.f32.mrb[45].mxu0 }
 0x8b2   : > { %v2391_v15 = vadd.f32 %v2390_v35, %v2105_v61  ;;  %v2444_v55 = vadd.f32 %v2443_v1, %v2113_v18  ;;  %v2392_v50 = vpop.f32.mrb[38].mxu1  ;;  %v2445_v36 = vpop.f32.mrb[46].mxu0  ;;  %3927 = vmatprep.mubr.bf16.mxu1 %v2833_v17  ;;  %3976 = vmatprep.mubr.bf16.mxu0 %v2835_v27 }
 0x8b3   : > { %v2393_v54 = vadd.f32 %v2392_v50, %v2101_v51  ;;  %v2446_v12 = vadd.f32 %v2445_v36, %v2109_v41  ;;  %v2394_v32 = vpop.f32.mrb[39].mxu1  ;;  %v2447_v2 = vpop.f32.mrb[47].mxu0  ;;  %3928 = vmatmul.mubr.bf16.vlgmr.msra.gmra.mrb[64].mxu1 %v2832_v48  ;;  %3977 = vmatmul.mubr.bf16.vlgmr.msra.gmra.mrb[72].mxu0 %v2834_v40  ;;  %v6414_v51 = vrot.slane %v6384_v14, %v6751_v39  ;;  %v2800_v41 = vmax.f32 %v2389_v7, 0.0  ;;  %v5197_v48 = vld [vmem:[%s5590_s28 + $0x158] sm:$0xff]  }
 0x8b4   : > { %v2395_v58 = vadd.f32 %v2394_v32, %v2105_v61  ;;  %v2448_v20 = vadd.f32 %v2447_v2, %v2113_v18  ;;  %4871 = vmatpush3.bf16.msra.mxu1 %v5187_v47  ;;  %4899 = vmatpush3.bf16.msra.mxu0 %v5188_v63  ;;  %v2802_v23 = vmax.f32 %v2442_v49, 0.0  ;;  %v2801_v61 = vmax.f32 %v2391_v15, 0.0  ;;  %v5198_v40 = vld [vmem:[%s5590_s28 + $0x1d8] sm:$0xff]  }
 0x8b5   : > { %v2816_v21 = vmax.f32 %v2393_v54, 0.0  ;;  %v2818_v34 = vmax.f32 %v2446_v12, 0.0  ;;  %4872 = vmatprep.subr.bf16.mxu1 %v5189_v53  ;;  %4900 = vmatprep.subr.bf16.mxu0 %v5190_v19  ;;  %v2803_v18 = vmax.f32 %v2444_v55, 0.0  ;;  %v5199_v53 = vld [vmem:[%s5590_s28 + $0x118] sm:$0xff]   ;;  %v5201_v54 = vld [vmem:[%s5590_s28 + $0x160] sm:$0xff]  }
 0x8b6   : > { %v2817_v52 = vmax.f32 %v2395_v58, 0.0  ;;  %v2819_v5 = vmax.f32 %v2448_v20, 0.0  ;;  %v5200_v19 = vld [vmem:[%s5590_s28 + $0x198] sm:$0xff]   ;;  %v5202_v12 = vld [vmem:[%s5590_s28 + $0x1e0] sm:$0xff]  }
 0x8b7   : > { %v2848_v22 = vpack.c.bf16 %v2816_v21, %v2800_v41  ;;  %v2850_v10 = vpack.c.bf16 %v2818_v34, %v2802_v23  ;;  %v6439_v41 = vld [vmem:[%s5580_s7 + $0x8] sm:$0xff] }
 0x8b8   : > { %v2849_v14 = vpack.c.bf16 %v2817_v52, %v2801_v61  ;;  %v2851_v59 = vpack.c.bf16 %v2819_v5, %v2803_v18  ;;  %4873 = vmatpush3.bf16.msra.mxu1 %v5191_v11  ;;  %4901 = vmatpush3.bf16.msra.mxu0 %v5192_v43  ;;  %v2484_v45 = vpop.f32.mrb[40].mxu1  ;;  %v2537_v57 = vpop.f32.mrb[48].mxu0  ;;  %v5204_v61 = vld [vmem:[%s5590_s28 + $0x1a0] sm:$0xff]  }
 0x8b9   : > { %v2485_v16 = vadd.f32 %v2484_v45, %v6400_v38  ;;  %v2538_v46 = vadd.f32 %v2537_v57, %v6404_v3  ;;  %v2486_v6 = vpop.f32.mrb[41].mxu1  ;;  %v2539_v62 = vpop.f32.mrb[49].mxu0  ;;  %4874 = vmatprep.subr.bf16.mxu1 %v5193_v42  ;;  %4902 = vmatprep.subr.bf16.mxu0 %v5194_v8  ;;  %v5203_v8 = vld [vmem:[%s5590_s28 + $0x120] sm:$0xff]  }
 0x8ba   : > { %v2487_v17 = vadd.f32 %v2486_v6, %v6408_v0  ;;  %v2540_v27 = vadd.f32 %v2539_v62, %v6414_v51  ;;  %v2488_v56 = vpop.f32.mrb[42].mxu1  ;;  %v2541_v44 = vpop.f32.mrb[50].mxu0  ;;  %3935 = vmatprep.mubr.bf16.mxu1 %v2849_v14  ;;  %3984 = vmatprep.mubr.bf16.mxu0 %v2851_v59  ;;  %v5206_v14 = vld [vmem:[%s5590_s28 + $0x1e8] sm:$0xff]  }
 0x8bb   : > { %v2489_v47 = vadd.f32 %v2488_v56, %v6400_v38  ;;  %v2542_v63 = vadd.f32 %v2541_v44, %v6404_v3  ;;  %v2490_v7 = vpop.f32.mrb[43].mxu1  ;;  %v2543_v49 = vpop.f32.mrb[51].mxu0  ;;  %3936 = vmatmul.mubr.bf16.gmra.mrb[68].mxu1 %v2848_v22  ;;  %3985 = vmatmul.mubr.bf16.gmra.mrb[76].mxu0 %v2850_v10  ;;  %v2772_v15 = vmax.f32 %v2485_v16, 0.0  ;;  %v2774_v55 = vmax.f32 %v2538_v46, 0.0  ;;  %v5205_v10 = vld [vmem:[%s5590_s28 + $0x168] sm:$0xff]  }
 0x8bc   : > { %v2491_v35 = vadd.f32 %v2490_v7, %v6408_v0  ;;  %v2544_v1 = vadd.f32 %v2543_v49, %v6414_v51  ;;  %4875 = vmatpush3.bf16.msra.mxu1 %v5195_v13  ;;  %4903 = vmatpush3.bf16.msra.mxu0 %v5196_v26  ;;  %v2773_v32 = vmax.f32 %v2487_v17, 0.0  ;;  %v2775_v2 = vmax.f32 %v2540_v27, 0.0 }
 0x8bd   : > { %v2788_v50 = vmax.f32 %v2489_v47, 0.0  ;;  %v2790_v36 = vmax.f32 %v2542_v63, 0.0  ;;  %4876 = vmatprep.subr.bf16.mxu1 %v5197_v48  ;;  %4904 = vmatprep.subr.bf16.mxu0 %v5198_v40  ;;  %v6451_v26 = vrot.slane %v6439_v41, %v5623_v24  ;;  %v6457_v48 = vrot.slane %v6439_v41, %v5635_v28 }
 0x8be   : > { %v2789_v58 = vmax.f32 %v2491_v35, 0.0  ;;  %v2791_v20 = vmax.f32 %v2544_v1, 0.0  ;;  %v6461_v40 = vrot.slane %v6439_v41, %v5625_v25  ;;  %v6469_v27 = vrot.slane %v6439_v41, %v5637_v29  ;;  %v5209_v25 = vld [vmem:[%s5590_s28 + $0x170] sm:$0xff]  }
 0x8bf   : > { %v6434_v11 = vpack.c.bf16 %v2788_v50, %v2772_v15  ;;  %v6436_v43 = vpack.c.bf16 %v2790_v36, %v2774_v55  ;;  %v5211_v55 = vld [vmem:[%s5590_s28 + $0x130] sm:$0xff]  }
 0x8c0   : > { %v2837_v23 = vpack.c.bf16 %v2789_v58, %v2773_v32  ;;  %v2839_v21 = vpack.c.bf16 %v2791_v20, %v2775_v2  ;;  %4877 = vmatpush3.bf16.msra.mxu1 %v5199_v53  ;;  %4905 = vmatpush3.bf16.msra.mxu0 %v5200_v19  ;;  %v2494_v34 = vpop.f32.mrb[44].mxu1  ;;  %v2547_v42 = vpop.f32.mrb[52].mxu0  ;;  %v5212_v50 = vld [vmem:[%s5590_s28 + $0x1b0] sm:$0xff]   ;;  %v5213_v2 = vld [vmem:[%s5590_s28 + $0x178] sm:$0xff]  }
 0x8c1   : > { %v2495_v18 = vadd.f32 %v2494_v34, %v6400_v38  ;;  %v2548_v52 = vadd.f32 %v2547_v42, %v6404_v3  ;;  %v2496_v5 = vpop.f32.mrb[45].mxu1  ;;  %v2549_v22 = vpop.f32.mrb[53].mxu0  ;;  %4878 = vmatprep.subr.bf16.mxu1 %v5201_v54  ;;  %4906 = vmatprep.subr.bf16.mxu0 %v5202_v12  ;;  %v5214_v58 = vld [vmem:[%s5590_s28 + $0x1f8] sm:$0xff]  }
 0x8c2   : > { %v2497_v59 = vadd.f32 %v2496_v5, %v6408_v0  ;;  %v2550_v45 = vadd.f32 %v2549_v22, %v6414_v51  ;;  %v2498_v57 = vpop.f32.mrb[46].mxu1  ;;  %v2551_v13 = vpop.f32.mrb[54].mxu0  ;;  %4025 = vmatprep.mubr.bf16.mxu1 %v2837_v23  ;;  %4074 = vmatprep.mubr.bf16.mxu0 %v2839_v21  ;;  %v5215_v22 = vld [vmem:[%s5590_s28 + $0x138] sm:$0xff]  }
 0x8c3   : > { %v2499_v16 = vadd.f32 %v2498_v57, %v6400_v38  ;;  %v2552_v46 = vadd.f32 %v2551_v13, %v6404_v3  ;;  %v2500_v6 = vpop.f32.mrb[47].mxu1  ;;  %v2553_v62 = vpop.f32.mrb[55].mxu0  ;;  %v5207_v38 = vld [vmem:[%s5590_s28 + $0x128] sm:$0xff]   ;;  %v2804_v56 = vmax.f32 %v2495_v18, 0.0  ;;  %v2806_v28 = vmax.f32 %v2548_v52, 0.0  ;;  %v5217_v13 = vld [vmem:[%s5590_s28 + $0x240] sm:$0xff]  }
 0x8c4   : > { %v2501_v17 = vadd.f32 %v2500_v6, %v6408_v0  ;;  %v2554_v24 = vadd.f32 %v2553_v62, %v6414_v51  ;;  %4879 = vmatpush3.bf16.msra.mxu1 %v5203_v8  ;;  %4907 = vmatpush3.bf16.msra.mxu0 %v5204_v61  ;;  %v5208_v3 = vld [vmem:[%s5590_s28 + $0x1a8] sm:$0xff]   ;;  %v5210_v0 = vld [vmem:[%s5590_s28 + $0x1f0] sm:$0xff]   ;;  %v2805_v63 = vmax.f32 %v2497_v59, 0.0  ;;  %v2807_v51 = vmax.f32 %v2550_v45, 0.0 }
 0x8c5   : > { %v2820_v44 = vmax.f32 %v2499_v16, 0.0  ;;  %v2822_v47 = vmax.f32 %v2552_v46, 0.0  ;;  %4880 = vmatprep.subr.bf16.mxu1 %v5205_v10  ;;  %4908 = vmatprep.subr.bf16.mxu0 %v5206_v14  ;;  %v5216_v10 = vld [vmem:[%s5590_s28 + $0x1b8] sm:$0xff]   ;;  %v5218_v16 = vld [vmem:[%s5590_s28 + $0x2c0] sm:$0xff]  }
 0x8c6   : > { %v2821_v7 = vmax.f32 %v2501_v17, 0.0  ;;  %v2823_v49 = vmax.f32 %v2554_v24, 0.0 }
 0x8c7   : > { %v6473_v35 = vpack.c.bf16 %v2820_v44, %v2804_v56  ;;  %v6475_v1 = vpack.c.bf16 %v2822_v47, %v2806_v28 }
 0x8c8   : > { %v6477_v29 = vpack.c.bf16 %v2821_v7, %v2805_v63  ;;  %v6479_v53 = vpack.c.bf16 %v2823_v49, %v2807_v51  ;;  %4881 = vmatpush3.bf16.msra.mxu1 %v5207_v38  ;;  %4909 = vmatpush3.bf16.msra.mxu0 %v5208_v3  ;;  %v2590_v19 = vpop.f32.mrb[48].mxu1  ;;  %v2643_v15 = vpop.f32.mrb[56].mxu0  ;;  %v5219_v51 = vld [vmem:[%s5590_s28 + $0x200] sm:$0xff]  }
 0x8c9   : > { %v2591_v36 = vadd.f32 %v2590_v19, %v6451_v26  ;;  %v2644_v54 = vadd.f32 %v2643_v15, %v6457_v48  ;;  %v2592_v12 = vpop.f32.mrb[49].mxu1  ;;  %v2645_v32 = vpop.f32.mrb[57].mxu0  ;;  %4882 = vmatprep.subr.bf16.mxu1 %v5209_v25  ;;  %4910 = vmatprep.subr.bf16.mxu0 %v5210_v0  ;;  %v5220_v7 = vld [vmem:[%s5590_s28 + $0x280] sm:$0xff]  }
 0x8ca   : > { %v2593_v20 = vadd.f32 %v2592_v12, %v6461_v40  ;;  %v2646_v23 = vadd.f32 %v2645_v32, %v6469_v27  ;;  %v2594_v21 = vpop.f32.mrb[50].mxu1  ;;  %v2647_v34 = vpop.f32.mrb[58].mxu0  ;;  %v6519_v12 = vrot.slane %v6439_v41, %v5643_v33 }
 0x8cb   : > { %v2595_v42 = vadd.f32 %v2594_v21, %v6451_v26  ;;  %v2648_v8 = vadd.f32 %v2647_v34, %v6457_v48  ;;  %v2596_v61 = vpop.f32.mrb[51].mxu1  ;;  %v2649_v18 = vpop.f32.mrb[59].mxu0  ;;  %v2776_v14 = vmax.f32 %v2591_v36, 0.0  ;;  %v2778_v59 = vmax.f32 %v2644_v54, 0.0  ;;  %v5222_v36 = vld [vmem:[%s5590_s28 + $0x2c8] sm:$0xff]  }
 0x8cc   : > { %v2597_v52 = vadd.f32 %v2596_v61, %v6461_v40  ;;  %v2650_v5 = vadd.f32 %v2649_v18, %v6469_v27  ;;  %4883 = vmatpush3.bf16.msra.mxu1 %v5211_v55  ;;  %4911 = vmatpush3.bf16.msra.mxu0 %v5212_v50  ;;  %v2777_v46 = vmax.f32 %v2593_v20, 0.0  ;;  %v2779_v6 = vmax.f32 %v2646_v23, 0.0  ;;  %v5221_v50 = vld [vmem:[%s5590_s28 + $0x248] sm:$0xff]  }
 0x8cd   : > { %v2792_v45 = vmax.f32 %v2595_v42, 0.0  ;;  %v2794_v57 = vmax.f32 %v2648_v8, 0.0  ;;  %4884 = vmatprep.subr.bf16.mxu1 %v5213_v2  ;;  %4912 = vmatprep.subr.bf16.mxu0 %v5214_v58  ;;  %v6515_v54 = vrot.slane %v6439_v41, %v5639_v30  ;;  %v6527_v30 = vrot.slane %v6439_v41, %v5641_v31  ;;  %v5223_v31 = vld [vmem:[%s5590_s28 + $0x208] sm:$0xff]  }
 0x8ce   : > { %v2793_v62 = vmax.f32 %v2597_v52, 0.0  ;;  %v2795_v17 = vmax.f32 %v2650_v5, 0.0 }
 0x8cf   : > { %v6497_v24 = vpack.c.bf16 %v2792_v45, %v2776_v14  ;;  %v6499_v38 = vpack.c.bf16 %v2794_v57, %v2778_v59  ;;  %v5227_v45 = vld [vmem:[%s5590_s28 + $0x210] sm:$0xff]  }
 0x8d0   : > { %v6501_v3 = vpack.c.bf16 %v2793_v62, %v2777_v46  ;;  %v6503_v56 = vpack.c.bf16 %v2795_v17, %v2779_v6  ;;  %4885 = vmatpush3.bf16.msra.mxu1 %v5215_v22  ;;  %4913 = vmatpush3.bf16.msra.mxu0 %v5216_v10  ;;  %v2600_v28 = vpop.f32.mrb[52].mxu1  ;;  %v2653_v44 = vpop.f32.mrb[60].mxu0  ;;  %v5228_v57 = vld [vmem:[%s5590_s28 + $0x290] sm:$0xff]   ;;  %v5229_v62 = vld [vmem:[%s5590_s28 + $0x258] sm:$0xff]  }
 0x8d1   : > { %v2601_v47 = vadd.f32 %v2600_v28, %v6451_v26  ;;  %v2654_v25 = vadd.f32 %v2653_v44, %v6457_v48  ;;  %v2602_v0 = vpop.f32.mrb[53].mxu1  ;;  %v2655_v63 = vpop.f32.mrb[61].mxu0  ;;  %4926 = vmatprep.subr.bf16.mxu1 %v5217_v13  ;;  %4954 = vmatprep.subr.bf16.mxu0 %v5218_v16  ;;  %v5230_v17 = vld [vmem:[%s5590_s28 + $0x2d8] sm:$0xff]  }
 0x8d2   : > { %v2603_v49 = vadd.f32 %v2602_v0, %v6461_v40  ;;  %v2656_v19 = vadd.f32 %v2655_v63, %v6469_v27  ;;  %v2604_v15 = vpop.f32.mrb[54].mxu1  ;;  %v2657_v55 = vpop.f32.mrb[62].mxu0 }
 0x8d3   : > { %v2605_v32 = vadd.f32 %v2604_v15, %v6451_v26  ;;  %v2658_v2 = vadd.f32 %v2657_v55, %v6457_v48  ;;  %4026 = vmatmul.mubr.bf16.vlgmr.msra.gmra.mrb[72].mxu1 %v6434_v11  ;;  %4075 = vmatmul.mubr.bf16.vlgmr.msra.gmra.mrb[80].mxu0 %v6436_v43  ;;  %v2606_v58 = vpop.f32.mrb[55].mxu1  ;;  %v2659_v20 = vpop.f32.mrb[63].mxu0  ;;  %v6535_v11 = vrot.slane %v6439_v41, %v6751_v39  ;;  %v2808_v43 = vmax.f32 %v2601_v47, 0.0  ;;  %v5226_v39 = vld [vmem:[%s5590_s28 + $0x2d0] sm:$0xff]  }
 0x8d4   : > { %v2607_v23 = vadd.f32 %v2606_v58, %v6461_v40  ;;  %v2660_v33 = vadd.f32 %v2659_v20, %v6469_v27  ;;  %4033 = vmatprep.mubr.bf16.mxu1 %v6477_v29  ;;  %4082 = vmatprep.mubr.bf16.mxu0 %v6479_v53  ;;  %v2810_v26 = vmax.f32 %v2654_v25, 0.0  ;;  %v5224_v40 = vld [vmem:[%s5590_s28 + $0x288] sm:$0xff]   ;;  %v2809_v34 = vmax.f32 %v2603_v49, 0.0  ;;  %v5225_v53 = vld [vmem:[%s5590_s28 + $0x250] sm:$0xff]  }
 0x8d5   : > { %v2824_v48 = vmax.f32 %v2605_v32, 0.0  ;;  %v2826_v21 = vmax.f32 %v2658_v2, 0.0  ;;  %4927 = vmatpush3.bf16.msra.mxu1 %v5219_v51  ;;  %4955 = vmatpush3.bf16.msra.mxu0 %v5220_v7  ;;  %v2811_v27 = vmax.f32 %v2656_v19, 0.0  ;;  %v5234_v32 = vld [vmem:[%s5590_s28 + $0x2e0] sm:$0xff]  }
 0x8d6   : > { %v2825_v42 = vmax.f32 %v2607_v23, 0.0  ;;  %v2827_v29 = vmax.f32 %v2660_v33, 0.0  ;;  %4928 = vmatprep.subr.bf16.mxu1 %v5221_v50  ;;  %4956 = vmatprep.subr.bf16.mxu0 %v5222_v36 }
 0x8d7   : > { %v6541_v41 = vpack.c.bf16 %v2824_v48, %v2808_v43  ;;  %v6543_v8 = vpack.c.bf16 %v2826_v21, %v2810_v26 }
 0x8d8   : > { %v6545_v61 = vpack.c.bf16 %v2825_v42, %v2809_v34  ;;  %v6547_v18 = vpack.c.bf16 %v2827_v29, %v2811_v27  ;;  %v2696_v52 = vpop.f32.mrb[56].mxu1  ;;  %v2749_v5 = vpop.f32.mrb[64].mxu0 }
 0x8d9   : > { %4929 = vmatpush3.bf16.msra.mxu1 %v5223_v31  ;;  %4957 = vmatpush3.bf16.msra.mxu0 %v5224_v40  ;;  %v2697_v22 = vadd.f32 %v2696_v52, %v6515_v54  ;;  %v2750_v10 = vadd.f32 %v2749_v5, %v6519_v12  ;;  %v2698_v14 = vpop.f32.mrb[57].mxu1  ;;  %v2751_v59 = vpop.f32.mrb[65].mxu0  ;;  %v5235_v31 = vld [vmem:[%s5590_s28 + $0x220] sm:$0xff]  }
 0x8da   : > { %v2699_v13 = vadd.f32 %v2698_v14, %v6527_v30  ;;  %v2752_v16 = vadd.f32 %v2751_v59, %v6535_v11  ;;  %v2700_v46 = vpop.f32.mrb[58].mxu1  ;;  %v2753_v6 = vpop.f32.mrb[66].mxu0  ;;  %4930 = vmatprep.subr.bf16.mxu1 %v5225_v53  ;;  %4958 = vmatprep.subr.bf16.mxu0 %v5226_v39  ;;  %v5236_v40 = vld [vmem:[%s5590_s28 + $0x2a0] sm:$0xff]   ;;  %v5237_v53 = vld [vmem:[%s5590_s28 + $0x268] sm:$0xff]  }
 0x8db   : > { %v2701_v28 = vadd.f32 %v2700_v46, %v6515_v54  ;;  %v2754_v44 = vadd.f32 %v2753_v6, %v6519_v12  ;;  %4034 = vmatmul.mubr.bf16.gmra.mrb[76].mxu1 %v6473_v35  ;;  %4083 = vmatmul.mubr.bf16.gmra.mrb[84].mxu0 %v6475_v1  ;;  %v2702_v47 = vpop.f32.mrb[59].mxu1  ;;  %v2755_v25 = vpop.f32.mrb[67].mxu0  ;;  %v2780_v51 = vmax.f32 %v2697_v22, 0.0  ;;  %v2782_v7 = vmax.f32 %v2750_v10, 0.0  ;;  %v5231_v35 = vld [vmem:[%s5590_s28 + $0x218] sm:$0xff]   ;;  %v5238_v39 = vld [vmem:[%s5590_s28 + $0x2e8] sm:$0xff]  }
 0x8dc   : > { %v2703_v0 = vadd.f32 %v2702_v47, %v6527_v30  ;;  %v2756_v63 = vadd.f32 %v2755_v25, %v6535_v11  ;;  %4123 = vmatprep.mubr.bf16.mxu1 %v6501_v3  ;;  %4172 = vmatprep.mubr.bf16.mxu0 %v6503_v56  ;;  %v5232_v1 = vld [vmem:[%s5590_s28 + $0x298] sm:$0xff]   ;;  %v2781_v15 = vmax.f32 %v2699_v13, 0.0  ;;  %v2783_v55 = vmax.f32 %v2752_v16, 0.0  ;;  %v5233_v3 = vld [vmem:[%s5590_s28 + $0x260] sm:$0xff]   ;;  %v5239_v46 = vld [vmem:[%s5590_s28 + $0x228] sm:$0xff]  }
 0x8dd   : > { %v2796_v49 = vmax.f32 %v2701_v28, 0.0  ;;  %v2798_v19 = vmax.f32 %v2754_v44, 0.0  ;;  %4931 = vmatpush3.bf16.msra.mxu1 %v5227_v45  ;;  %4959 = vmatpush3.bf16.msra.mxu0 %v5228_v57  ;;  %v5240_v6 = vld [vmem:[%s5590_s28 + $0x2a8] sm:$0xff]  }
 0x8de   : > { %v2797_v50 = vmax.f32 %v2703_v0, 0.0  ;;  %v2799_v36 = vmax.f32 %v2756_v63, 0.0  ;;  %4932 = vmatprep.subr.bf16.mxu1 %v5229_v62  ;;  %4960 = vmatprep.subr.bf16.mxu0 %v5230_v17  ;;  %v5243_v0 = vld [vmem:[%s5590_s28 + $0x230] sm:$0xff]  }
 0x8df   : > { %v6569_v56 = vpack.c.bf16 %v2796_v49, %v2780_v51  ;;  %v6571_v2 = vpack.c.bf16 %v2798_v19, %v2782_v7  ;;  %v5244_v63 = vld [vmem:[%s5590_s28 + $0x2b0] sm:$0xff]   ;;  %v5245_v51 = vld [vmem:[%s5590_s28 + $0x278] sm:$0xff]  }
 0x8e0   : > { %v6573_v58 = vpack.c.bf16 %v2797_v50, %v2781_v15  ;;  %v6575_v20 = vpack.c.bf16 %v2799_v36, %v2783_v55  ;;  %v2706_v23 = vpop.f32.mrb[60].mxu1  ;;  %v2759_v33 = vpop.f32.mrb[68].mxu0  ;;  %v5246_v7 = vld [vmem:[%s5590_s28 + $0x2f8] sm:$0xff]   ;;  %v5251_v15 = vld [vmem:[%s5590_s28 + $0x300] sm:$0xff]   ;;  %v5253_v50 = vld [vmem:[%s5590_s28 + $0x348] sm:$0xff]  }
 0x8e1   : > { %4933 = vmatpush3.bf16.msra.mxu1 %v5231_v35  ;;  %4961 = vmatpush3.bf16.msra.mxu0 %v5232_v1  ;;  %v2707_v43 = vadd.f32 %v2706_v23, %v6515_v54  ;;  %v2760_v26 = vadd.f32 %v2759_v33, %v6519_v12  ;;  %v2708_v48 = vpop.f32.mrb[61].mxu1  ;;  %v2761_v21 = vpop.f32.mrb[69].mxu0  ;;  %v5247_v49 = vld [vmem:[%s5590_s28 + $0x238] sm:$0xff]   ;;  %v5249_v35 = vld [vmem:[%s5590_s28 + $0x340] sm:$0xff]   ;;  %v5254_v36 = vld [vmem:[%s5590_s28 + $0x3c8] sm:$0xff]  }
 0x8e2   : > { %v2709_v34 = vadd.f32 %v2708_v48, %v6527_v30  ;;  %v2762_v27 = vadd.f32 %v2761_v21, %v6535_v11  ;;  %v2710_v42 = vpop.f32.mrb[62].mxu1  ;;  %v2763_v29 = vpop.f32.mrb[70].mxu0  ;;  %4934 = vmatprep.subr.bf16.mxu1 %v5233_v3  ;;  %4962 = vmatprep.subr.bf16.mxu0 %v5234_v32  ;;  %v5248_v19 = vld [vmem:[%s5590_s28 + $0x2b8] sm:$0xff]   ;;  %v5250_v1 = vld [vmem:[%s5590_s28 + $0x3c0] sm:$0xff]   ;;  %v5255_v3 = vld [vmem:[%s5590_s28 + $0x308] sm:$0xff]  }
 0x8e3   : > { %v2711_v52 = vadd.f32 %v2710_v42, %v6515_v54  ;;  %v2764_v5 = vadd.f32 %v2763_v29, %v6519_v12  ;;  %v2712_v22 = vpop.f32.mrb[63].mxu1  ;;  %v2765_v10 = vpop.f32.mrb[71].mxu0  ;;  %v2812_v45 = vmax.f32 %v2707_v43, 0.0  ;;  %v2814_v57 = vmax.f32 %v2760_v26, 0.0  ;;  %v5252_v55 = vld [vmem:[%s5590_s28 + $0x380] sm:$0xff]   ;;  %v5256_v32 = vld [vmem:[%s5590_s28 + $0x388] sm:$0xff]  }
 0x8e4   : > { %v2713_v14 = vadd.f32 %v2712_v22, %v6527_v30  ;;  %v2766_v59 = vadd.f32 %v2765_v10, %v6535_v11  ;;  %v2813_v54 = vmax.f32 %v2709_v34, 0.0  ;;  %v2815_v12 = vmax.f32 %v2762_v27, 0.0  ;;  %v5241_v30 = vld [vmem:[%s5590_s28 + $0x270] sm:$0xff]   ;;  %v5263_v43 = vld [vmem:[%s5590_s28 + $0x318] sm:$0xff]   ;;  %v5265_v48 = vld [vmem:[%s5590_s28 + $0x360] sm:$0xff]  }
 0x8e5   : > { %v2828_v13 = vmax.f32 %v2711_v52, 0.0  ;;  %v2830_v16 = vmax.f32 %v2764_v5, 0.0  ;;  %4935 = vmatpush3.bf16.msra.mxu1 %v5235_v31  ;;  %4963 = vmatpush3.bf16.msra.mxu0 %v5236_v40  ;;  %v5242_v11 = vld [vmem:[%s5590_s28 + $0x2f0] sm:$0xff]   ;;  %v5264_v26 = vld [vmem:[%s5590_s28 + $0x398] sm:$0xff]   ;;  %v5266_v21 = vld [vmem:[%s5590_s28 + $0x3e0] sm:$0xff]  }
 0x8e6   : > { %v2829_v62 = vmax.f32 %v2713_v14, 0.0  ;;  %v2831_v17 = vmax.f32 %v2766_v59, 0.0  ;;  %4936 = vmatprep.subr.bf16.mxu1 %v5237_v53  ;;  %4964 = vmatprep.subr.bf16.mxu0 %v5238_v39  ;;  %v5257_v23 = vld [vmem:[%s5590_s28 + $0x350] sm:$0xff]   ;;  %v5271_v31 = vld [vmem:[%s5590_s28 + $0x328] sm:$0xff]   ;;  %v5277_v53 = vld [vmem:[%s5590_s28 + $0x378] sm:$0xff]  }
 0x8e7   : > { %v6593_v28 = vpack.c.bf16 %v2828_v13, %v2812_v45  ;;  %v6595_v44 = vpack.c.bf16 %v2830_v16, %v2814_v57  ;;  %v5258_v33 = vld [vmem:[%s5590_s28 + $0x3d0] sm:$0xff]   ;;  %v5272_v40 = vld [vmem:[%s5590_s28 + $0x3a8] sm:$0xff]   ;;  %v5278_v39 = vld [vmem:[%s5590_s28 + $0x3f8] sm:$0xff]  }
 0x8e8   : > { %v6597_v47 = vpack.c.bf16 %v2829_v62, %v2813_v54  ;;  %v6599_v25 = vpack.c.bf16 %v2831_v17, %v2815_v12  ;;  %v5273_v34 = vld [vmem:[%s5590_s28 + $0x370] sm:$0xff]   ;;  %v5279_v52 = vld [vmem:[%s5590_s28 + $0x338] sm:$0xff]   ;;  %v4627_v14 = vld [vmem:[%s702_s2] ss:$0 sm:$0xff] }
 0x8e9   : > { %4937 = vmatpush3.bf16.msra.mxu1 %v5239_v46  ;;  %4965 = vmatpush3.bf16.msra.mxu0 %v5240_v6  ;;  %v5274_v27 = vld [vmem:[%s5590_s28 + $0x3f0] sm:$0xff]   ;;  %v5280_v5 = vld [vmem:[%s5590_s28 + $0x3b8] sm:$0xff]  }
 0x8ea   : > { %4938 = vmatprep.subr.bf16.mxu1 %v5241_v30  ;;  %4966 = vmatprep.subr.bf16.mxu0 %v5242_v11  ;;  %v5275_v42 = vld [vmem:[%s5590_s28 + $0x330] sm:$0xff]  }
 0x8eb   : > { %v5276_v29 = vld [vmem:[%s5590_s28 + $0x3b0] sm:$0xff]  }
 0x8ed   : > { %4939 = vmatpush3.bf16.msra.mxu1 %v5243_v0  ;;  %4967 = vmatpush3.bf16.msra.mxu0 %v5244_v63 }
 0x8ee   : > { %4940 = vmatprep.subr.bf16.mxu1 %v5245_v51  ;;  %4968 = vmatprep.subr.bf16.mxu0 %v5246_v7 }
 0x8f1   : > { %4941 = vmatpush3.bf16.msra.mxu1 %v5247_v49  ;;  %4969 = vmatpush3.bf16.msra.mxu0 %v5248_v19 }
 0x8f2   : > { %4982 = vmatprep.subr.bf16.mxu1 %v5249_v35  ;;  %5010 = vmatprep.subr.bf16.mxu0 %v5250_v1 }
 0x8f4   : > { %4124 = vmatmul.mubr.bf16.vlgmr.msra.gmra.mrb[80].mxu1 %v6497_v24  ;;  %4173 = vmatmul.mubr.bf16.vlgmr.msra.gmra.mrb[88].mxu0 %v6499_v38  ;;  %v5259_v24 = vld [vmem:[%s5590_s28 + $0x310] sm:$0xff]  }
 0x8f5   : > { %4131 = vmatprep.mubr.bf16.mxu1 %v6545_v61  ;;  %4180 = vmatprep.mubr.bf16.mxu0 %v6547_v18  ;;  %v5260_v38 = vld [vmem:[%s5590_s28 + $0x390] sm:$0xff]   ;;  %v5261_v61 = vld [vmem:[%s5590_s28 + $0x358] sm:$0xff]  }
 0x8f6   : > { %4983 = vmatpush3.bf16.msra.mxu1 %v5251_v15  ;;  %5011 = vmatpush3.bf16.msra.mxu0 %v5252_v55  ;;  %v5262_v18 = vld [vmem:[%s5590_s28 + $0x3d8] sm:$0xff]  }
 0x8f7   : > { %4984 = vmatprep.subr.bf16.mxu1 %v5253_v50  ;;  %5012 = vmatprep.subr.bf16.mxu0 %v5254_v36 }
 0x8fa   : > { %4985 = vmatpush3.bf16.msra.mxu1 %v5255_v3  ;;  %5013 = vmatpush3.bf16.msra.mxu0 %v5256_v32 }
 0x8fb   : > { %4986 = vmatprep.subr.bf16.mxu1 %v5257_v23  ;;  %5014 = vmatprep.subr.bf16.mxu0 %v5258_v33 }
 0x8fc   : > { %4132 = vmatmul.mubr.bf16.gmra.mrb[84].mxu1 %v6541_v41  ;;  %4181 = vmatmul.mubr.bf16.gmra.mrb[92].mxu0 %v6543_v8  ;;  %v5267_v41 = vld [vmem:[%s5590_s28 + $0x320] sm:$0xff]  }
 0x8fd   : > { %4221 = vmatprep.mubr.bf16.mxu1 %v6573_v58  ;;  %4270 = vmatprep.mubr.bf16.mxu0 %v6575_v20  ;;  %v5268_v8 = vld [vmem:[%s5590_s28 + $0x3a0] sm:$0xff]   ;;  %v5269_v58 = vld [vmem:[%s5590_s28 + $0x368] sm:$0xff]  }
 0x8fe   : > { %4987 = vmatpush3.bf16.msra.mxu1 %v5259_v24  ;;  %5015 = vmatpush3.bf16.msra.mxu0 %v5260_v38  ;;  %v5270_v20 = vld [vmem:[%s5590_s28 + $0x3e8] sm:$0xff]  }
 0x8ff   : > { %4988 = vmatprep.subr.bf16.mxu1 %v5261_v61  ;;  %5016 = vmatprep.subr.bf16.mxu0 %v5262_v18 }
 0x902   : > { %4989 = vmatpush3.bf16.msra.mxu1 %v5263_v43  ;;  %5017 = vmatpush3.bf16.msra.mxu0 %v5264_v26 }
 0x903   : > { %4990 = vmatprep.subr.bf16.mxu1 %v5265_v48  ;;  %5018 = vmatprep.subr.bf16.mxu0 %v5266_v21 }
 0x906   : > { %4991 = vmatpush3.bf16.msra.mxu1 %v5267_v41  ;;  %5019 = vmatpush3.bf16.msra.mxu0 %v5268_v8 }
 0x907   : > { %4992 = vmatprep.subr.bf16.mxu1 %v5269_v58  ;;  %5020 = vmatprep.subr.bf16.mxu0 %v5270_v20 }
 0x90a   : > { %4993 = vmatpush3.bf16.msra.mxu1 %v5271_v31  ;;  %5021 = vmatpush3.bf16.msra.mxu0 %v5272_v40 }
 0x90b   : > { %4994 = vmatprep.subr.bf16.mxu1 %v5273_v34  ;;  %5022 = vmatprep.subr.bf16.mxu0 %v5274_v27 }
 0x90e   : > { %4995 = vmatpush3.bf16.msra.mxu1 %v5275_v42  ;;  %5023 = vmatpush3.bf16.msra.mxu0 %v5276_v29 }
 0x90f   : > { %4996 = vmatprep.subr.bf16.mxu1 %v5277_v53  ;;  %5024 = vmatprep.subr.bf16.mxu0 %v5278_v39 }
 0x912   : > { %4997 = vmatpush3.bf16.msra.mxu1 %v5279_v52  ;;  %5025 = vmatpush3.bf16.msra.mxu0 %v5280_v5 }
 0x915   : > { %4222 = vmatmul.mubr.bf16.vlgmr.msra.gmra.mrb[88].mxu1 %v6569_v56  ;;  %4271 = vmatmul.mubr.bf16.vlgmr.msra.gmra.mrb[96].mxu0 %v6571_v2 }
 0x916   : > { %4229 = vmatprep.mubr.bf16.mxu1 %v6597_v47  ;;  %4278 = vmatprep.mubr.bf16.mxu0 %v6599_v25 }
 0x91d   : > { %4230 = vmatmul.mubr.bf16.gmra.mrb[92].mxu1 %v6593_v28  ;;  %4279 = vmatmul.mubr.bf16.gmra.mrb[100].mxu0 %v6595_v44 }
 0x986   : > { %v4830_v22 = vpop.f32.mrb[64].mxu1  ;;  %v4858_v10 = vpop.f32.mrb[72].mxu0 }
 0x987   : > { %v4831_v59 = vpop.f32.mrb[65].mxu1  ;;  %v4859_v45 = vpop.f32.mrb[73].mxu0 }
 0x988   : > { %v4832_v56 = vadd.f32 %v4831_v59, %v4830_v22  ;;  %v4860_v57 = vadd.f32 %v4859_v45, %v4858_v10  ;;  %v4833_v2 = vpop.f32.mrb[66].mxu1  ;;  %v4861_v13 = vpop.f32.mrb[74].mxu0 }
 0x989   : > { %v4834_v16 = vpop.f32.mrb[67].mxu1  ;;  %v4862_v46 = vpop.f32.mrb[75].mxu0 }
 0x98a   : > { %v3930_v6 = vadd.f32 %v4832_v56, %v4627_v14  ;;  %v4835_v54 = vadd.f32 %v4834_v16, %v4833_v2  ;;  %v4863_v12 = vadd.f32 %v4862_v46, %v4861_v13 }
 0x98c   : > { %v3979_v62 = vadd.f32 %v4860_v57, %v3930_v6  ;;  %v3933_v17 = vadd.f32 %v4835_v54, %v4627_v14 }
 0x98e   : > { %v3982_v30 = vadd.f32 %v4863_v12, %v3933_v17  ;;  %v4836_v11 = vpop.f32.mrb[68].mxu1  ;;  %v4864_v28 = vpop.f32.mrb[76].mxu0 }
 0x98f   : > { %v4837_v44 = vpop.f32.mrb[69].mxu1  ;;  %v4865_v47 = vpop.f32.mrb[77].mxu0 }
 0x990   : > { %v4838_v25 = vadd.f32 %v4837_v44, %v4836_v11  ;;  %v4866_v0 = vadd.f32 %v4865_v47, %v4864_v28  ;;  %v4839_v63 = vpop.f32.mrb[70].mxu1  ;;  %v4867_v51 = vpop.f32.mrb[78].mxu0 }
 0x991   : > { %v4840_v7 = vpop.f32.mrb[71].mxu1  ;;  %v4868_v49 = vpop.f32.mrb[79].mxu0 }
 0x992   : > { %v3938_v19 = vadd.f32 %v4838_v25, %v4627_v14  ;;  %v4841_v35 = vadd.f32 %v4840_v7, %v4839_v63  ;;  %v4869_v1 = vadd.f32 %v4868_v49, %v4867_v51 }
 0x994   : > { %v3987_v15 = vadd.f32 %v4866_v0, %v3938_v19  ;;  %v3941_v55 = vadd.f32 %v4841_v35, %v4627_v14 }
 0x996   : > { %v3990_v50 = vadd.f32 %v4869_v1, %v3941_v55 }
 0x9a6   : > { %v4886_v36 = vpop.f32.mrb[72].mxu1  ;;  %v4914_v3 = vpop.f32.mrb[80].mxu0 }
 0x9a7   : > { %v4887_v32 = vpop.f32.mrb[73].mxu1  ;;  %v4915_v23 = vpop.f32.mrb[81].mxu0 }
 0x9a8   : > { %v4888_v33 = vadd.f32 %v4887_v32, %v4886_v36  ;;  %v4916_v24 = vadd.f32 %v4915_v23, %v4914_v3  ;;  %v4889_v38 = vpop.f32.mrb[74].mxu1  ;;  %v4917_v61 = vpop.f32.mrb[82].mxu0 }
 0x9a9   : > { %v4890_v18 = vpop.f32.mrb[75].mxu1  ;;  %v4918_v43 = vpop.f32.mrb[83].mxu0 }
 0x9aa   : > { %v4028_v26 = vadd.f32 %v4888_v33, %v3979_v62  ;;  %v4891_v48 = vadd.f32 %v4890_v18, %v4889_v38  ;;  %v4919_v21 = vadd.f32 %v4918_v43, %v4917_v61 }
 0x9ac   : > { %v4077_v41 = vadd.f32 %v4916_v24, %v4028_v26  ;;  %v4031_v8 = vadd.f32 %v4891_v48, %v3982_v30 }
 0x9ae   : > { %v4080_v58 = vadd.f32 %v4919_v21, %v4031_v8  ;;  %v4892_v20 = vpop.f32.mrb[76].mxu1  ;;  %v4920_v31 = vpop.f32.mrb[84].mxu0 }
 0x9af   : > { %v4893_v40 = vpop.f32.mrb[77].mxu1  ;;  %v4921_v34 = vpop.f32.mrb[85].mxu0 }
 0x9b0   : > { %v4894_v27 = vadd.f32 %v4893_v40, %v4892_v20  ;;  %v4922_v42 = vadd.f32 %v4921_v34, %v4920_v31  ;;  %v4895_v29 = vpop.f32.mrb[78].mxu1  ;;  %v4923_v53 = vpop.f32.mrb[86].mxu0 }
 0x9b1   : > { %v4896_v39 = vpop.f32.mrb[79].mxu1  ;;  %v4924_v52 = vpop.f32.mrb[87].mxu0 }
 0x9b2   : > { %v4036_v5 = vadd.f32 %v4894_v27, %v3987_v15  ;;  %v4897_v22 = vadd.f32 %v4896_v39, %v4895_v29  ;;  %v4925_v10 = vadd.f32 %v4924_v52, %v4923_v53 }
 0x9b4   : > { %v4085_v14 = vadd.f32 %v4922_v42, %v4036_v5  ;;  %v4039_v59 = vadd.f32 %v4897_v22, %v3990_v50 }
 0x9b6   : > { %v4088_v45 = vadd.f32 %v4925_v10, %v4039_v59 }
 0x9c7   : > { %v4942_v56 = vpop.f32.mrb[80].mxu1  ;;  %v4970_v57 = vpop.f32.mrb[88].mxu0 }
 0x9c8   : > { %v4943_v2 = vpop.f32.mrb[81].mxu1  ;;  %v4971_v13 = vpop.f32.mrb[89].mxu0 }
 0x9c9   : > { %v4944_v16 = vadd.f32 %v4943_v2, %v4942_v56  ;;  %v4972_v46 = vadd.f32 %v4971_v13, %v4970_v57  ;;  %v4945_v6 = vpop.f32.mrb[82].mxu1  ;;  %v4973_v54 = vpop.f32.mrb[90].mxu0 }
 0x9ca   : > { %v4946_v12 = vpop.f32.mrb[83].mxu1  ;;  %v4974_v62 = vpop.f32.mrb[91].mxu0 }
 0x9cb   : > { %v4126_v17 = vadd.f32 %v4944_v16, %v4077_v41  ;;  %v4947_v30 = vadd.f32 %v4946_v12, %v4945_v6  ;;  %v4975_v11 = vadd.f32 %v4974_v62, %v4973_v54 }
 0x9cd   : > { %v4175_v28 = vadd.f32 %v4972_v46, %v4126_v17  ;;  %v4129_v44 = vadd.f32 %v4947_v30, %v4080_v58 }
 0x9cf   : > { %v4178_v47 = vadd.f32 %v4975_v11, %v4129_v44  ;;  %v4948_v25 = vpop.f32.mrb[84].mxu1  ;;  %v4976_v0 = vpop.f32.mrb[92].mxu0 }
 0x9d0   : > { %v4949_v63 = vpop.f32.mrb[85].mxu1  ;;  %v4977_v51 = vpop.f32.mrb[93].mxu0 }
 0x9d1   : > { %v4950_v7 = vadd.f32 %v4949_v63, %v4948_v25  ;;  %v4978_v49 = vadd.f32 %v4977_v51, %v4976_v0  ;;  %v4951_v19 = vpop.f32.mrb[86].mxu1  ;;  %v4979_v35 = vpop.f32.mrb[94].mxu0 }
 0x9d2   : > { %v4952_v1 = vpop.f32.mrb[87].mxu1  ;;  %v4980_v15 = vpop.f32.mrb[95].mxu0 }
 0x9d3   : > { %v4134_v55 = vadd.f32 %v4950_v7, %v4085_v14  ;;  %v4953_v50 = vadd.f32 %v4952_v1, %v4951_v19  ;;  %v4981_v36 = vadd.f32 %v4980_v15, %v4979_v35 }
 0x9d5   : > { %v4183_v3 = vadd.f32 %v4978_v49, %v4134_v55  ;;  %v4137_v32 = vadd.f32 %v4953_v50, %v4088_v45 }
 0x9d7   : > { %v4186_v23 = vadd.f32 %v4981_v36, %v4137_v32 }
 0x9e8   : > { %v4998_v33 = vpop.f32.mrb[88].mxu1  ;;  %v5026_v24 = vpop.f32.mrb[96].mxu0 }
 0x9e9   : > { %v4999_v38 = vpop.f32.mrb[89].mxu1  ;;  %v5027_v61 = vpop.f32.mrb[97].mxu0 }
 0x9ea   : > { %v5000_v18 = vadd.f32 %v4999_v38, %v4998_v33  ;;  %v5028_v43 = vadd.f32 %v5027_v61, %v5026_v24  ;;  %v5001_v26 = vpop.f32.mrb[90].mxu1  ;;  %v5029_v48 = vpop.f32.mrb[98].mxu0 }
 0x9eb   : > { %v5002_v21 = vpop.f32.mrb[91].mxu1  ;;  %v5030_v41 = vpop.f32.mrb[99].mxu0 }
 0x9ec   : > { %v4224_v8 = vadd.f32 %v5000_v18, %v4175_v28  ;;  %v5003_v58 = vadd.f32 %v5002_v21, %v5001_v26  ;;  %v5031_v20 = vadd.f32 %v5030_v41, %v5029_v48  ;;  %v4756_v41 = vld [vmem:[%s705_s5] ss:$0 sm:$0xff] }
 0x9ee   : > { %v4273_v31 = vadd.f32 %v5028_v43, %v4224_v8  ;;  %v4227_v40 = vadd.f32 %v5003_v58, %v4178_v47 }
 0x9f0   : > { %v4276_v34 = vadd.f32 %v5031_v20, %v4227_v40  ;;  %v5004_v27 = vpop.f32.mrb[92].mxu1  ;;  %v5032_v42 = vpop.f32.mrb[100].mxu0  ;;  %v4287_v29 = vadd.f32 %v4273_v31, %v6266_v60  ;;  %v4757_v20 = vld [vmem:[%s708_s1] ss:$0 sm:$0xff]  ;;  %s6752_s1 = sld [smem:[#allocation12_spill]] (!%p4758_p5) }
 0x9f1   : > { %v5005_v53 = vpop.f32.mrb[93].mxu1  ;;  %v5033_v39 = vpop.f32.mrb[101].mxu0 }
 0x9f2   : > { %v5006_v52 = vadd.f32 %v5005_v53, %v5004_v27  ;;  %v5034_v5 = vadd.f32 %v5033_v39, %v5032_v42  ;;  %v5007_v22 = vpop.f32.mrb[94].mxu1  ;;  %v5035_v10 = vpop.f32.mrb[102].mxu0  ;;  %v4293_v14 = vsel %vm859_vm2, %v4287_v29, 0.0  ;;  %v4288_v59 = vadd.f32 %v4276_v34, %v6268_v4 }
 0x9f3   : > { %v5008_v45 = vpop.f32.mrb[95].mxu1  ;;  %v5036_v56 = vpop.f32.mrb[103].mxu0  ;;  %4294 = vadd.xlane.f32.xlu0 %v4293_v14 }
 0x9f4   : > { %v4232_v57 = vadd.f32 %v5006_v52, %v4183_v3  ;;  %v5009_v2 = vadd.f32 %v5008_v45, %v5007_v22  ;;  %v5037_v13 = vadd.f32 %v5036_v56, %v5035_v10  ;;  %v4296_v16 = vsel %vm859_vm2, %v4288_v59, 0.0 }
 0x9f5   : > { %4297 = vadd.xlane.f32.xlu1 %v4296_v16 }
 0x9f6   : > { %v4281_v60 = vadd.f32 %v5034_v5, %v4232_v57  ;;  %v4235_v46 = vadd.f32 %v5009_v2, %v4186_v23 }
 0x9f8   : > { %v4284_v6 = vadd.f32 %v5037_v13, %v4235_v46  ;;  %v4289_v54 = vadd.f32 %v4281_v60, %v6291_v9 }
 0x9fa   : > { %v4299_v12 = vsel %vm859_vm2, %v4289_v54, 0.0  ;;  %v4290_v62 = vadd.f32 %v4284_v6, %v6289_v37 }
 0x9fb   : > { %4300 = vadd.xlane.f32.xlu0 %v4299_v12 }
 0x9fc   : > { %v4302_v4 = vsel %vm859_vm2, %v4290_v62, 0.0 }
 0x9fd   : > { %4303 = vadd.xlane.f32.xlu1 %v4302_v4 }
 0xa80   : > { %v4295_v17 = vpop.xlane.xlu0 %4294 }
 0xa81   : > { %v4305_v30 = vmul.f32 0.03125, %v4295_v17 }
 0xa82   : > { %v4298_v11 = vpop.xlane.xlu1 %4297 }
 0xa83   : > { %v4309_v28 = vsub.f32 %v4287_v29, %v4305_v30  ;;  %v4306_v44 = vmul.f32 0.03125, %v4298_v11 }
 0xa85   : > { %v4310_v47 = vsub.f32 %v4288_v59, %v4306_v44  ;;  %v4313_v25 = vmul.f32 %v4309_v28, %v4309_v28 }
 0xa87   : > { %v4317_v0 = vsel %vm859_vm2, %v4313_v25, 0.0  ;;  %v4314_v63 = vmul.f32 %v4310_v47, %v4310_v47 }
 0xa88   : > { %4318 = vadd.xlane.f32.xlu0 %v4317_v0  ;;  %v4301_v9 = vpop.xlane.xlu0 %4300 }
 0xa89   : > { %v4307_v51 = vmul.f32 0.03125, %v4301_v9  ;;  %v4320_v7 = vsel %vm859_vm2, %v4314_v63, 0.0 }
 0xa8a   : > { %4321 = vadd.xlane.f32.xlu1 %v4320_v7  ;;  %v4304_v37 = vpop.xlane.xlu1 %4303 }
 0xa8b   : > { %v4311_v49 = vsub.f32 %v4289_v54, %v4307_v51  ;;  %v4308_v19 = vmul.f32 0.03125, %v4304_v37 }
 0xa8d   : > { %v4312_v35 = vsub.f32 %v4290_v62, %v4308_v19  ;;  %v4315_v1 = vmul.f32 %v4311_v49, %v4311_v49 }
 0xa8f   : > { %v4323_v15 = vsel %vm859_vm2, %v4315_v1, 0.0  ;;  %v4316_v55 = vmul.f32 %v4312_v35, %v4312_v35 }
 0xa90   : > { %4324 = vadd.xlane.f32.xlu0 %v4323_v15 }
 0xa91   : > { %v4326_v50 = vsel %vm859_vm2, %v4316_v55, 0.0 }
 0xa92   : > { %4327 = vadd.xlane.f32.xlu1 %v4326_v50 }
 0xb15   : > { %v4319_v36 = vpop.xlane.xlu0 %4318 }
 0xb16   : > { %v4329_v3 = vmul.f32 0.03125, %v4319_v36 }
 0xb17   : > { %v4322_v32 = vpop.xlane.xlu1 %4321 }
 0xb18   : > { %v4333_v23 = vadd.f32 1e-05, %v4329_v3  ;;  %v4330_v33 = vmul.f32 0.03125, %v4322_v32 }
 0xb1a   : > { %5417 = vrsqrt.f32 %v4333_v23  ;;  %v4334_v24 = vadd.f32 1e-05, %v4330_v33 }
 0xb1c   : > { %5419 = vrsqrt.f32 %v4334_v24 }
 0xb1d   : > { %v4325_v38 = vpop.xlane.xlu0 %4324 }
 0xb1e   : > { %v4331_v61 = vmul.f32 0.03125, %v4325_v38 }
 0xb1f   : > { %v4328_v18 = vpop.xlane.xlu1 %4327 }
 0xb20   : > { %v4335_v43 = vadd.f32 1e-05, %v4331_v61  ;;  %v4332_v26 = vmul.f32 0.03125, %v4328_v18 }
 0xb22   : > { %5421 = vrsqrt.f32 %v4335_v43  ;;  %v4336_v48 = vadd.f32 1e-05, %v4332_v26 }
 0xb24   : > { %v5418_v21 = vpop.eup %5417  ;;  %5423 = vrsqrt.f32 %v4336_v48 }
 0xb25   : > { %v4341_v8 = vmul.f32 %v5418_v21, %v4309_v28 }
 0xb26   : > { %v5420_v58 = vpop.eup %5419 }
 0xb27   : > { %v4351_v31 = vmul.f32 %v4756_v41, %v4341_v8  ;;  %v4342_v40 = vmul.f32 %v5420_v58, %v4310_v47 }
 0xb29   : > { %v4361_v34 = vadd.f32 %v4757_v20, %v4351_v31  ;;  %v4352_v27 = vmul.f32 %v4756_v41, %v4342_v40 }
 0xb2b   : > { %4365 = vst.msk [vmem:[#allocation2] sm:$0xff] %vm859_vm2, %v4361_v34  ;;  %v4362_v42 = vadd.f32 %v4757_v20, %v4352_v27  ;;  %4373 = vst.msk [vmem:[%s6752_s1] sm:$0xff] (!%p4758_p5), %vm859_vm2, %v4361_v34 }
 0xb2c   : > { %v5422_v29 = vpop.eup %5421 }
 0xb2d   : > { %4366 = vst.msk [vmem:[#allocation2 + $0x8] sm:$0xff] %vm859_vm2, %v4362_v42  ;;  %v4343_v53 = vmul.f32 %v5422_v29, %v4311_v49  ;;  %4374 = vst.msk [vmem:[%s6752_s1 + $0x8] sm:$0xff] (!%p4758_p5), %vm859_vm2, %v4362_v42 }
 0xb2e   : > { %v5424_v39 = vpop.eup %5423 }
 0xb2f   : > { %v4353_v52 = vmul.f32 %v4756_v41, %v4343_v53  ;;  %v4344_v5 = vmul.f32 %v5424_v39, %v4312_v35  ;;  %4372 = sbr.rel (%p4758_p5) target bundleno = 2870 (0xb36), region = 96 }
 0xb31   : > { %v4363_v22 = vadd.f32 %v4757_v20, %v4353_v52  ;;  %v4354_v10 = vmul.f32 %v4756_v41, %v4344_v5 }
 0xb33   : > { %4367 = vst.msk [vmem:[#allocation2 + $0x10] sm:$0xff] %vm859_vm2, %v4363_v22  ;;  %v4364_v14 = vadd.f32 %v4757_v20, %v4354_v10  ;;  %4375 = vst.msk [vmem:[%s6752_s1 + $0x10] sm:$0xff] (!%p4758_p5), %vm859_vm2, %v4363_v22 }
 0xb35   : > { %4368 = vst.msk [vmem:[#allocation2 + $0x18] sm:$0xff] %vm859_vm2, %v4364_v14  ;;  %4376 = vst.msk [vmem:[%s6752_s1 + $0x18] sm:$0xff] (!%p4758_p5), %vm859_vm2, %v4364_v14 }
 0xb36 PF: > { %s6753_s25 = sld [smem:[#allocation3_spill]] }
 0xb3c   : > { %s27_s24 = sadd.s32 1, %s6753_s25  }
 0xb3d   : > { %p24_p6 = scmp.ge.s32.totalorder %s27_s24, 4  }
 0xb3f   :  { %26 = sbr.rel (!%p24_p6) target bundleno = 9 (0x9), region = 155 }

</bundles_post_ra>
